<compile_context>
chip_gen: v7x
topology: tpu7x:2x2x1
jax: 0.10.0
libtpu: 0.0.40
codegen_flags: <defaults>
</compile_context>

<pallas_src>
import functools
import math

import jax
import jax.numpy as jnp
from jax.experimental import pallas as pl
from jax.experimental.pallas import tpu as pltpu


# ---------------------------------------------------------------------------
# Kernels
# ---------------------------------------------------------------------------

def _conv_rows(src_ref, w_ref, row0, n_rows, wo, ksize):
    """Stride-1 conv of `n_rows` rows x `wo` cols with kw pre-folded into K.

    src_ref : (1, Hp, wo, K) VMEM block, K = ksize * Cin (kw-major fold).
    w_ref   : (ksize, K, Cout) VMEM block.
    Returns an f32 (n_rows * wo, Cout) accumulator.
    """
    kk = w_ref.shape[1]
    acc = None
    for kh in range(ksize):
        patch = src_ref[0, pl.ds(row0 + kh, n_rows), :, :].reshape(n_rows * wo, kk)
        d = jnp.dot(patch, w_ref[kh], preferred_element_type=jnp.float32)
        # First dot initializes the accumulator; subsequent dots are back-to-back
        # (no VPU work interleaved) so the MXU result chain stays MRB-friendly.
        acc = d if acc is None else acc + d
    return acc


def _conv_bn_relu_pool_kernel(x0_ref, x1_ref, w_ref, scale_ref, shift_ref,
                              o_ref, *, ksize):
    """Conv(k, s=1, 'same') + BN + ReLU + MaxPool(2, 2) for one row tile."""
    tp, wo, cout = o_ref.shape[1], o_ref.shape[2], o_ref.shape[3]
    t = 2 * tp                                            # conv rows this step
    row0 = pl.multiple_of(pl.program_id(1) * t, t & (-t))
    scale, shift = scale_ref[...], shift_ref[...]

    pooled = None
    # Column-parity decomposition of the 2x2/2 max-pool: the even/odd conv
    # column phases are independent convs over the two parity-folded inputs, so
    # the width pooling is a plain elementwise max of the two phase results.
    for src in (x0_ref, x1_ref):
        acc = _conv_rows(src, w_ref, row0, t, wo, ksize)          # (t*wo, C) f32
        y = jnp.maximum(acc * scale + shift, 0.0)                 # BN + ReLU (f32)
        y = y.reshape(tp, 2, wo, cout)
        y = jnp.maximum(y[:, 0], y[:, 1])                         # pool rows
        pooled = y if pooled is None else jnp.maximum(pooled, y)  # pool cols
    o_ref[0] = pooled.astype(o_ref.dtype)


def _conv_bn_relu_kernel(x_ref, w_ref, scale_ref, shift_ref, o_ref, *, ksize):
    """Conv(k, s=1, 'same') + BN + ReLU (last block: no pooling)."""
    t, wo, cout = o_ref.shape[1], o_ref.shape[2], o_ref.shape[3]
    row0 = pl.multiple_of(pl.program_id(1) * t, t & (-t))
    acc = _conv_rows(x_ref, w_ref, row0, t, wo, ksize)
    y = jnp.maximum(acc * scale_ref[...] + shift_ref[...], 0.0)
    o_ref[0] = y.reshape(t, wo, cout).astype(o_ref.dtype)


# ---------------------------------------------------------------------------
# Per-block wrapper
# ---------------------------------------------------------------------------

def _row_tile(ho, wo, pool, row_tile=None, target_m=512):
    """Pick a pooled/output row tile so the matmul M dim ~ target_m rows."""
    per_row = (2 if pool else 1) * wo
    tp = row_tile if row_tile is not None else max(1, target_m // max(1, per_row))
    tp = max(1, min(tp, ho))
    while ho % tp:
        tp -= 1
    return tp


def cnn_block_pallas(x_nhwc, w_hwio, scale, shift, *, ksize, pool,
                     compute_dtype=jnp.bfloat16, row_tile=None):
    """One CNNBlock (+ optional fused MaxPool): NHWC in -> NHWC out (compute_dtype).

    The kw kernel taps are folded into the matmul contraction (im2col-lite on
    the width axis only), so each of the `ksize` per-kh dots has K = ksize*Cin.
    Pooled blocks feed the two column-parity phases as two folded inputs.
    """
    N, H, W, Cin = x_nhwc.shape
    Cout = w_hwio.shape[-1]
    assert ksize % 2 == 1, "parity-split pooling assumes odd kernel size"
    p = ksize // 2
    cd = jnp.dtype(compute_dtype)
    sublane = 8 * (4 // cd.itemsize)            # f32: 8, bf16: 16
    K = ksize * Cin

    # One fused pad + strided-gather + concat per phase in XLA; the activation
    # already arrives in compute_dtype from the previous block (no extra cast).
    xp = jnp.pad(x_nhwc.astype(cd), ((0, 0), (p, p), (p, p), (0, 0)))
    Hp = H + 2 * p
    wf = w_hwio.astype(cd).reshape(ksize, K, Cout)          # kw folded into K
    sc = scale.reshape(1, Cout).astype(jnp.float32)
    sh = shift.reshape(1, Cout).astype(jnp.float32)

    if pool:
        assert H % 2 == 0 and W % 2 == 0, "2x2/2 max-pool needs even spatial dims"
        Ho, Wk = H // 2, W // 2
    else:
        Ho, Wk = H, W
    # Pad the output width to a sublane multiple so the in-kernel
    # (rows, wo, K) -> (rows*wo, K) reshape is layout-free (no per-row fallback).
    Wo = -(-Wk // sublane) * sublane

    def fold(par, stride):
        cols = [xp[:, :, par + kw: par + kw + stride * Wk: stride, :]
                for kw in range(ksize)]
        xf = jnp.concatenate(cols, axis=-1)                 # (N, Hp, Wk, K)
        if Wo > Wk:
            xf = jnp.pad(xf, ((0, 0), (0, 0), (0, Wo - Wk), (0, 0)))
        return xf

    if pool:
        operands = (fold(0, 2), fold(1, 2), wf, sc, sh)
        kernel = functools.partial(_conv_bn_relu_pool_kernel, ksize=ksize)
        in_specs = [
            pl.BlockSpec((1, Hp, Wo, K), lambda n, r: (n, 0, 0, 0)),
            pl.BlockSpec((1, Hp, Wo, K), lambda n, r: (n, 0, 0, 0)),
            pl.BlockSpec((ksize, K, Cout), lambda n, r: (0, 0, 0)),
            pl.BlockSpec((1, Cout), lambda n, r: (0, 0)),
            pl.BlockSpec((1, Cout), lambda n, r: (0, 0)),
        ]
        n_in = 2
    else:
        operands = (fold(0, 1), wf, sc, sh)
        kernel = functools.partial(_conv_bn_relu_kernel, ksize=ksize)
        in_specs = [
            pl.BlockSpec((1, Hp, Wo, K), lambda n, r: (n, 0, 0, 0)),
            pl.BlockSpec((ksize, K, Cout), lambda n, r: (0, 0, 0)),
            pl.BlockSpec((1, Cout), lambda n, r: (0, 0)),
            pl.BlockSpec((1, Cout), lambda n, r: (0, 0)),
        ]
        n_in = 1

    tp = _row_tile(Ho, Wo, pool, row_tile)
    t = (2 if pool else 1) * tp
    grid = (N, Ho // tp)
    out_shape = jax.ShapeDtypeStruct((N, Ho, Wo, Cout), cd)
    out_specs = pl.BlockSpec((1, tp, Wo, Cout), lambda n, r: (n, r, 0, 0))

    # Explicit VMEM budget: double-buffered operand/output blocks + f32
    # accumulators + headroom, capped at 40 MiB (v7x has 64 MiB per TC).
    it = cd.itemsize
    blk_bytes = (n_in * Hp * Wo * K * it        # folded inputs (VMEM-resident)
                 + ksize * K * Cout * it        # weights
                 + 2 * Cout * 4                 # scale / shift
                 + tp * Wo * Cout * it)         # output tile
    acc_bytes = 2 * t * Wo * Cout * 4
    vmem_limit = int(min(2 * blk_bytes + acc_bytes + (8 << 20), 40 << 20))

    out = pl.pallas_call(
        kernel,
        out_shape=out_shape,
        grid_spec=pltpu.PrefetchScalarGridSpec(
            num_scalar_prefetch=0,
            grid=grid,
            in_specs=in_specs,
            out_specs=out_specs,
        ),
        compiler_params=pltpu.CompilerParams(
            # No cross-step accumulator -> both axes can shard across TCs (v7x).
            dimension_semantics=("parallel", "parallel"),
            vmem_limit_bytes=vmem_limit),
    )(*operands)
    return out[:, :, :Wk, :] if Wo > Wk else out


# ---------------------------------------------------------------------------
# Module plumbing (configs, synthetic params, BN fusion, forward)
# ---------------------------------------------------------------------------

def raster_encoder_configs(c_in):
    # Mirrors RasterEncoder.__init__; MaxPool(2, 2) after all but the last block.
    return [
        dict(in_channels=c_in, out_channels=32, kernel_size=7, pool=True),
        dict(in_channels=32, out_channels=64, kernel_size=7, pool=True),
        dict(in_channels=64, out_channels=128, kernel_size=5, pool=True),
        dict(in_channels=128, out_channels=256, kernel_size=5, pool=True),
        dict(in_channels=256, out_channels=512, kernel_size=3, pool=False),
    ]


def init_params(key, configs):
    """Deterministic synthetic parameters (no checkpoint load)."""
    params = []
    for cfg in configs:
        cin, cout, k = cfg["in_channels"], cfg["out_channels"], cfg["kernel_size"]
        key, k1, k2, k3, k4, k5, k6 = jax.random.split(key, 7)
        w_std = 1.0 / math.sqrt(cin * k * k)
        params.append(dict(
            # PyTorch Conv2d weight layout: (Cout, Cin, kH, kW)
            w=w_std * jax.random.normal(k1, (cout, cin, k, k), jnp.float32),
            b=0.05 * jax.random.normal(k2, (cout,), jnp.float32),
            gamma=1.0 + 0.1 * jax.random.normal(k3, (cout,), jnp.float32),
            beta=0.1 * jax.random.normal(k4, (cout,), jnp.float32),
            mean=0.05 * jax.random.normal(k5, (cout,), jnp.float32),
            var=1.0 + 0.1 * jax.random.uniform(k6, (cout,), jnp.float32),
        ))
    return params


def fuse_block_params(p, eps=1e-5):
    """OIHW -> HWIO conv weights; fold conv bias + eval BN into scale/shift."""
    w_hwio = jnp.transpose(p["w"], (2, 3, 1, 0))     # (kH, kW, Cin, Cout)
    scale = p["gamma"] / jnp.sqrt(p["var"] + eps)
    shift = p["beta"] + scale * (p["b"] - p["mean"])
    return w_hwio, scale, shift


def raster_encoder_forward(x_nchw, params, configs, input_shape,
                           compute_dtype=jnp.bfloat16):
    assert tuple(x_nchw.shape[1:]) == tuple(input_shape), \
        f"Wrong input shape: Expected {input_shape} but got {tuple(x_nchw.shape[1:])}"
    x = jnp.transpose(x_nchw, (0, 2, 3, 1))          # NCHW -> NHWC
    for p_, cfg in zip(params, configs):
        w_hwio, scale, shift = fuse_block_params(p_)
        x = cnn_block_pallas(x, w_hwio, scale, shift,
                             ksize=cfg["kernel_size"], pool=cfg["pool"],
                             compute_dtype=compute_dtype)
    return jnp.transpose(x, (0, 3, 1, 2)).astype(jnp.float32)  # NHWC -> NCHW


def _reference_forward(x_nchw, params, configs, eps=1e-5):
    """Plain-JAX (XLA) f32 reference for correctness checking."""
    x = jnp.transpose(x_nchw, (0, 2, 3, 1))
    for p_, cfg in zip(params, configs):
        k = cfg["kernel_size"]
        pad = k // 2
        w = jnp.transpose(p_["w"], (2, 3, 1, 0))     # OIHW -> HWIO
        y = jax.lax.conv_general_dilated(
            x, w, window_strides=(1, 1),
            padding=[(pad, pad), (pad, pad)],
            dimension_numbers=("NHWC", "HWIO", "NHWC"))
        scale = p_["gamma"] / jnp.sqrt(p_["var"] + eps)
        shift = p_["beta"] + scale * (p_["b"] - p_["mean"])
        y = jnp.maximum(y * scale + shift, 0.0)
        if cfg["pool"]:
            y = jax.lax.reduce_window(y, -jnp.inf, jax.lax.max,
                                      (1, 2, 2, 1), (1, 2, 2, 1), "VALID")
        x = y
    return jnp.transpose(x, (0, 3, 1, 2))


if __name__ == "__main__":
    # Small synthetic version of HOME's rasterized map input.
    input_shape = (4, 32, 32)    # (C, H, W)
    batch = 2
    configs = raster_encoder_configs(input_shape[0])

    key = jax.random.PRNGKey(0)
    kx, kp = jax.random.split(key)
    x = jax.random.normal(kx, (batch,) + input_shape, jnp.float32)
    params = init_params(kp, configs)

    ref = _reference_forward(x, params, configs)

    # f32 compute path: tight correctness check of the fused conv/BN/ReLU/pool.
    out_f32 = jax.block_until_ready(
        raster_encoder_forward(x, params, configs, input_shape,
                               compute_dtype=jnp.float32))
    # spatial: 32 -> 16 -> 8 -> 4 -> 2 -> 2 ; channels: 4 -> ... -> 512
    assert out_f32.shape == (batch, 512, 2, 2), out_f32.shape
    assert jnp.allclose(out_f32, ref, atol=2e-3, rtol=2e-3), \
        float(jnp.max(jnp.abs(out_f32 - ref)))

    # bf16 MXU path (default performance path): relative-error check, since
    # activations are re-quantized to bf16 at every block boundary.
    out_bf16 = jax.block_until_ready(
        raster_encoder_forward(x, params, configs, input_shape,
                               compute_dtype=jnp.bfloat16))
    assert out_bf16.shape == (batch, 512, 2, 2), out_bf16.shape
    rel = float(jnp.linalg.norm(out_bf16 - ref) /
                (jnp.linalg.norm(ref) + 1e-12))
    assert rel < 5e-2, rel

    print("KERNEL_OK")
</pallas_src>

<mosaic_0001>
module attributes {stable_mosaic.version = 11 : i64} {
  func.func @_conv_bn_relu_pool_kernel(%arg0: i32, %arg1: i32, %arg2: memref<1x38x16x28xf32, #tpu.memory_space<vmem>>, %arg3: memref<1x38x16x28xf32, #tpu.memory_space<vmem>>, %arg4: memref<7x28x32xf32, #tpu.memory_space<vmem>>, %arg5: memref<1x32xf32, #tpu.memory_space<vmem>>, %arg6: memref<1x32xf32, #tpu.memory_space<vmem>>, %arg7: memref<1x16x16x32xf32, #tpu.memory_space<vmem>>) attributes {dimension_semantics = [#tpu.dimension_semantics<parallel>, #tpu.dimension_semantics<parallel>], iteration_bounds = array<i64: 2, 1>, scalar_prefetch = 0 : i64, scratch_operands = 0 : i64, tpu.core_type = #tpu.core_type<tc>, window_params = [{transform_indices = @transform_0, window_bounds = array<i64: 1, 38, 16, 28>}, {transform_indices = @transform_1, window_bounds = array<i64: 1, 38, 16, 28>}, {pipeline_mode = #tpu.pipeline_mode<synchronous>, transform_indices = @transform_2, window_bounds = array<i64: 7, 28, 32>}, {pipeline_mode = #tpu.pipeline_mode<synchronous>, transform_indices = @transform_3, window_bounds = array<i64: 1, 32>}, {pipeline_mode = #tpu.pipeline_mode<synchronous>, transform_indices = @transform_4, window_bounds = array<i64: 1, 32>}, {transform_indices = @transform_5, window_bounds = array<i64: 1, 16, 16, 32>}]} {
    %c32_i32 = arith.constant 32 : i32
    %0 = arith.muli %arg1, %c32_i32 : i32
    %1 = tpu.assume_multiple %0, 32 : i32
    %c0 = arith.constant 0 : index
    %c0_0 = arith.constant 0 : index
    %2 = vector.load %arg5[%c0, %c0_0] : memref<1x32xf32, #tpu.memory_space<vmem>>, vector<1x32xf32>
    %c0_1 = arith.constant 0 : index
    %c0_2 = arith.constant 0 : index
    %3 = vector.load %arg6[%c0_1, %c0_2] : memref<1x32xf32, #tpu.memory_space<vmem>>, vector<1x32xf32>
    %c0_i32 = arith.constant 0 : i32
    %4 = arith.addi %1, %c0_i32 : i32
    %c0_3 = arith.constant 0 : index
    %5 = arith.index_cast %4 : i32 to index
    %c0_4 = arith.constant 0 : index
    %c0_5 = arith.constant 0 : index
    %6 = vector.load %arg2[%c0_3, %5, %c0_4, %c0_5] : memref<1x38x16x28xf32, #tpu.memory_space<vmem>>, vector<1x32x16x28xf32>
    %7 = vector.shape_cast %6 : vector<1x32x16x28xf32> to vector<32x16x28xf32>
    %8 = vector.shape_cast %7 : vector<32x16x28xf32> to vector<512x28xf32>
    %c0_6 = arith.constant 0 : index
    %c0_7 = arith.constant 0 : index
    %c0_8 = arith.constant 0 : index
    %9 = vector.load %arg4[%c0_6, %c0_7, %c0_8] : memref<7x28x32xf32, #tpu.memory_space<vmem>>, vector<1x28x32xf32>
    %10 = vector.shape_cast %9 : vector<1x28x32xf32> to vector<28x32xf32>
    %cst = arith.constant dense<0.000000e+00> : vector<512x32xf32>
    %11 = tpu.matmul %8, %10, %cst {dimension_numbers = #tpu.dot_dimension_numbers<[1], [0], [0], [1], [0, 0, 1, 1], [], []>} : vector<512x28xf32>, vector<28x32xf32>, vector<512x32xf32> -> vector<512x32xf32>
    %c1_i32 = arith.constant 1 : i32
    %12 = arith.addi %1, %c1_i32 : i32
    %c0_9 = arith.constant 0 : index
    %13 = arith.index_cast %12 : i32 to index
    %c0_10 = arith.constant 0 : index
    %c0_11 = arith.constant 0 : index
    %14 = vector.load %arg2[%c0_9, %13, %c0_10, %c0_11] : memref<1x38x16x28xf32, #tpu.memory_space<vmem>>, vector<1x32x16x28xf32>
    %15 = vector.shape_cast %14 : vector<1x32x16x28xf32> to vector<32x16x28xf32>
    %16 = vector.shape_cast %15 : vector<32x16x28xf32> to vector<512x28xf32>
    %c1 = arith.constant 1 : index
    %c0_12 = arith.constant 0 : index
    %c0_13 = arith.constant 0 : index
    %17 = vector.load %arg4[%c1, %c0_12, %c0_13] : memref<7x28x32xf32, #tpu.memory_space<vmem>>, vector<1x28x32xf32>
    %18 = vector.shape_cast %17 : vector<1x28x32xf32> to vector<28x32xf32>
    %cst_14 = arith.constant dense<0.000000e+00> : vector<512x32xf32>
    %19 = tpu.matmul %16, %18, %cst_14 {dimension_numbers = #tpu.dot_dimension_numbers<[1], [0], [0], [1], [0, 0, 1, 1], [], []>} : vector<512x28xf32>, vector<28x32xf32>, vector<512x32xf32> -> vector<512x32xf32>
    %20 = arith.addf %11, %19 : vector<512x32xf32>
    %c2_i32 = arith.constant 2 : i32
    %21 = arith.addi %1, %c2_i32 : i32
    %c0_15 = arith.constant 0 : index
    %22 = arith.index_cast %21 : i32 to index
    %c0_16 = arith.constant 0 : index
    %c0_17 = arith.constant 0 : index
    %23 = vector.load %arg2[%c0_15, %22, %c0_16, %c0_17] : memref<1x38x16x28xf32, #tpu.memory_space<vmem>>, vector<1x32x16x28xf32>
    %24 = vector.shape_cast %23 : vector<1x32x16x28xf32> to vector<32x16x28xf32>
    %25 = vector.shape_cast %24 : vector<32x16x28xf32> to vector<512x28xf32>
    %c2 = arith.constant 2 : index
    %c0_18 = arith.constant 0 : index
    %c0_19 = arith.constant 0 : index
    %26 = vector.load %arg4[%c2, %c0_18, %c0_19] : memref<7x28x32xf32, #tpu.memory_space<vmem>>, vector<1x28x32xf32>
    %27 = vector.shape_cast %26 : vector<1x28x32xf32> to vector<28x32xf32>
    %cst_20 = arith.constant dense<0.000000e+00> : vector<512x32xf32>
    %28 = tpu.matmul %25, %27, %cst_20 {dimension_numbers = #tpu.dot_dimension_numbers<[1], [0], [0], [1], [0, 0, 1, 1], [], []>} : vector<512x28xf32>, vector<28x32xf32>, vector<512x32xf32> -> vector<512x32xf32>
    %29 = arith.addf %20, %28 : vector<512x32xf32>
    %c3_i32 = arith.constant 3 : i32
    %30 = arith.addi %1, %c3_i32 : i32
    %c0_21 = arith.constant 0 : index
    %31 = arith.index_cast %30 : i32 to index
    %c0_22 = arith.constant 0 : index
    %c0_23 = arith.constant 0 : index
    %32 = vector.load %arg2[%c0_21, %31, %c0_22, %c0_23] : memref<1x38x16x28xf32, #tpu.memory_space<vmem>>, vector<1x32x16x28xf32>
    %33 = vector.shape_cast %32 : vector<1x32x16x28xf32> to vector<32x16x28xf32>
    %34 = vector.shape_cast %33 : vector<32x16x28xf32> to vector<512x28xf32>
    %c3 = arith.constant 3 : index
    %c0_24 = arith.constant 0 : index
    %c0_25 = arith.constant 0 : index
    %35 = vector.load %arg4[%c3, %c0_24, %c0_25] : memref<7x28x32xf32, #tpu.memory_space<vmem>>, vector<1x28x32xf32>
    %36 = vector.shape_cast %35 : vector<1x28x32xf32> to vector<28x32xf32>
    %cst_26 = arith.constant dense<0.000000e+00> : vector<512x32xf32>
    %37 = tpu.matmul %34, %36, %cst_26 {dimension_numbers = #tpu.dot_dimension_numbers<[1], [0], [0], [1], [0, 0, 1, 1], [], []>} : vector<512x28xf32>, vector<28x32xf32>, vector<512x32xf32> -> vector<512x32xf32>
    %38 = arith.addf %29, %37 : vector<512x32xf32>
    %c4_i32 = arith.constant 4 : i32
    %39 = arith.addi %1, %c4_i32 : i32
    %c0_27 = arith.constant 0 : index
    %40 = arith.index_cast %39 : i32 to index
    %c0_28 = arith.constant 0 : index
    %c0_29 = arith.constant 0 : index
    %41 = vector.load %arg2[%c0_27, %40, %c0_28, %c0_29] : memref<1x38x16x28xf32, #tpu.memory_space<vmem>>, vector<1x32x16x28xf32>
    %42 = vector.shape_cast %41 : vector<1x32x16x28xf32> to vector<32x16x28xf32>
    %43 = vector.shape_cast %42 : vector<32x16x28xf32> to vector<512x28xf32>
    %c4 = arith.constant 4 : index
    %c0_30 = arith.constant 0 : index
    %c0_31 = arith.constant 0 : index
    %44 = vector.load %arg4[%c4, %c0_30, %c0_31] : memref<7x28x32xf32, #tpu.memory_space<vmem>>, vector<1x28x32xf32>
    %45 = vector.shape_cast %44 : vector<1x28x32xf32> to vector<28x32xf32>
    %cst_32 = arith.constant dense<0.000000e+00> : vector<512x32xf32>
    %46 = tpu.matmul %43, %45, %cst_32 {dimension_numbers = #tpu.dot_dimension_numbers<[1], [0], [0], [1], [0, 0, 1, 1], [], []>} : vector<512x28xf32>, vector<28x32xf32>, vector<512x32xf32> -> vector<512x32xf32>
    %47 = arith.addf %38, %46 : vector<512x32xf32>
    %c5_i32 = arith.constant 5 : i32
    %48 = arith.addi %1, %c5_i32 : i32
    %c0_33 = arith.constant 0 : index
    %49 = arith.index_cast %48 : i32 to index
    %c0_34 = arith.constant 0 : index
    %c0_35 = arith.constant 0 : index
    %50 = vector.load %arg2[%c0_33, %49, %c0_34, %c0_35] : memref<1x38x16x28xf32, #tpu.memory_space<vmem>>, vector<1x32x16x28xf32>
    %51 = vector.shape_cast %50 : vector<1x32x16x28xf32> to vector<32x16x28xf32>
    %52 = vector.shape_cast %51 : vector<32x16x28xf32> to vector<512x28xf32>
    %c5 = arith.constant 5 : index
    %c0_36 = arith.constant 0 : index
    %c0_37 = arith.constant 0 : index
    %53 = vector.load %arg4[%c5, %c0_36, %c0_37] : memref<7x28x32xf32, #tpu.memory_space<vmem>>, vector<1x28x32xf32>
    %54 = vector.shape_cast %53 : vector<1x28x32xf32> to vector<28x32xf32>
    %cst_38 = arith.constant dense<0.000000e+00> : vector<512x32xf32>
    %55 = tpu.matmul %52, %54, %cst_38 {dimension_numbers = #tpu.dot_dimension_numbers<[1], [0], [0], [1], [0, 0, 1, 1], [], []>} : vector<512x28xf32>, vector<28x32xf32>, vector<512x32xf32> -> vector<512x32xf32>
    %56 = arith.addf %47, %55 : vector<512x32xf32>
    %c6_i32 = arith.constant 6 : i32
    %57 = arith.addi %1, %c6_i32 : i32
    %c0_39 = arith.constant 0 : index
    %58 = arith.index_cast %57 : i32 to index
    %c0_40 = arith.constant 0 : index
    %c0_41 = arith.constant 0 : index
    %59 = vector.load %arg2[%c0_39, %58, %c0_40, %c0_41] : memref<1x38x16x28xf32, #tpu.memory_space<vmem>>, vector<1x32x16x28xf32>
    %60 = vector.shape_cast %59 : vector<1x32x16x28xf32> to vector<32x16x28xf32>
    %61 = vector.shape_cast %60 : vector<32x16x28xf32> to vector<512x28xf32>
    %c6 = arith.constant 6 : index
    %c0_42 = arith.constant 0 : index
    %c0_43 = arith.constant 0 : index
    %62 = vector.load %arg4[%c6, %c0_42, %c0_43] : memref<7x28x32xf32, #tpu.memory_space<vmem>>, vector<1x28x32xf32>
    %63 = vector.shape_cast %62 : vector<1x28x32xf32> to vector<28x32xf32>
    %cst_44 = arith.constant dense<0.000000e+00> : vector<512x32xf32>
    %64 = tpu.matmul %61, %63, %cst_44 {dimension_numbers = #tpu.dot_dimension_numbers<[1], [0], [0], [1], [0, 0, 1, 1], [], []>} : vector<512x28xf32>, vector<28x32xf32>, vector<512x32xf32> -> vector<512x32xf32>
    %65 = arith.addf %56, %64 : vector<512x32xf32>
    %66 = vector.broadcast %2 : vector<1x32xf32> to vector<512x32xf32>
    %67 = arith.mulf %65, %66 : vector<512x32xf32>
    %68 = vector.broadcast %3 : vector<1x32xf32> to vector<512x32xf32>
    %69 = arith.addf %67, %68 : vector<512x32xf32>
    %cst_45 = arith.constant 0.000000e+00 : f32
    %70 = vector.broadcast %cst_45 : f32 to vector<512x32xf32>
    %71 = arith.maximumf %69, %70 : vector<512x32xf32>
    %72 = vector.shape_cast %71 : vector<512x32xf32> to vector<16x2x16x32xf32>
    %73 = vector.extract_strided_slice %72 {offsets = [0, 0, 0, 0], sizes = [16, 1, 16, 32], strides = [1, 1, 1, 1]} : vector<16x2x16x32xf32> to vector<16x1x16x32xf32>
    %74 = vector.shape_cast %73 : vector<16x1x16x32xf32> to vector<16x16x32xf32>
    %75 = vector.extract_strided_slice %72 {offsets = [0, 1, 0, 0], sizes = [16, 1, 16, 32], strides = [1, 1, 1, 1]} : vector<16x2x16x32xf32> to vector<16x1x16x32xf32>
    %76 = vector.shape_cast %75 : vector<16x1x16x32xf32> to vector<16x16x32xf32>
    %77 = arith.maximumf %74, %76 : vector<16x16x32xf32>
    %c0_i32_46 = arith.constant 0 : i32
    %78 = arith.addi %1, %c0_i32_46 : i32
    %c0_47 = arith.constant 0 : index
    %79 = arith.index_cast %78 : i32 to index
    %c0_48 = arith.constant 0 : index
    %c0_49 = arith.constant 0 : index
    %80 = vector.load %arg3[%c0_47, %79, %c0_48, %c0_49] : memref<1x38x16x28xf32, #tpu.memory_space<vmem>>, vector<1x32x16x28xf32>
    %81 = vector.shape_cast %80 : vector<1x32x16x28xf32> to vector<32x16x28xf32>
    %82 = vector.shape_cast %81 : vector<32x16x28xf32> to vector<512x28xf32>
    %c0_50 = arith.constant 0 : index
    %c0_51 = arith.constant 0 : index
    %c0_52 = arith.constant 0 : index
    %83 = vector.load %arg4[%c0_50, %c0_51, %c0_52] : memref<7x28x32xf32, #tpu.memory_space<vmem>>, vector<1x28x32xf32>
    %84 = vector.shape_cast %83 : vector<1x28x32xf32> to vector<28x32xf32>
    %cst_53 = arith.constant dense<0.000000e+00> : vector<512x32xf32>
    %85 = tpu.matmul %82, %84, %cst_53 {dimension_numbers = #tpu.dot_dimension_numbers<[1], [0], [0], [1], [0, 0, 1, 1], [], []>} : vector<512x28xf32>, vector<28x32xf32>, vector<512x32xf32> -> vector<512x32xf32>
    %c1_i32_54 = arith.constant 1 : i32
    %86 = arith.addi %1, %c1_i32_54 : i32
    %c0_55 = arith.constant 0 : index
    %87 = arith.index_cast %86 : i32 to index
    %c0_56 = arith.constant 0 : index
    %c0_57 = arith.constant 0 : index
    %88 = vector.load %arg3[%c0_55, %87, %c0_56, %c0_57] : memref<1x38x16x28xf32, #tpu.memory_space<vmem>>, vector<1x32x16x28xf32>
    %89 = vector.shape_cast %88 : vector<1x32x16x28xf32> to vector<32x16x28xf32>
    %90 = vector.shape_cast %89 : vector<32x16x28xf32> to vector<512x28xf32>
    %c1_58 = arith.constant 1 : index
    %c0_59 = arith.constant 0 : index
    %c0_60 = arith.constant 0 : index
    %91 = vector.load %arg4[%c1_58, %c0_59, %c0_60] : memref<7x28x32xf32, #tpu.memory_space<vmem>>, vector<1x28x32xf32>
    %92 = vector.shape_cast %91 : vector<1x28x32xf32> to vector<28x32xf32>
    %cst_61 = arith.constant dense<0.000000e+00> : vector<512x32xf32>
    %93 = tpu.matmul %90, %92, %cst_61 {dimension_numbers = #tpu.dot_dimension_numbers<[1], [0], [0], [1], [0, 0, 1, 1], [], []>} : vector<512x28xf32>, vector<28x32xf32>, vector<512x32xf32> -> vector<512x32xf32>
    %94 = arith.addf %85, %93 : vector<512x32xf32>
    %c2_i32_62 = arith.constant 2 : i32
    %95 = arith.addi %1, %c2_i32_62 : i32
    %c0_63 = arith.constant 0 : index
    %96 = arith.index_cast %95 : i32 to index
    %c0_64 = arith.constant 0 : index
    %c0_65 = arith.constant 0 : index
    %97 = vector.load %arg3[%c0_63, %96, %c0_64, %c0_65] : memref<1x38x16x28xf32, #tpu.memory_space<vmem>>, vector<1x32x16x28xf32>
    %98 = vector.shape_cast %97 : vector<1x32x16x28xf32> to vector<32x16x28xf32>
    %99 = vector.shape_cast %98 : vector<32x16x28xf32> to vector<512x28xf32>
    %c2_66 = arith.constant 2 : index
    %c0_67 = arith.constant 0 : index
    %c0_68 = arith.constant 0 : index
    %100 = vector.load %arg4[%c2_66, %c0_67, %c0_68] : memref<7x28x32xf32, #tpu.memory_space<vmem>>, vector<1x28x32xf32>
    %101 = vector.shape_cast %100 : vector<1x28x32xf32> to vector<28x32xf32>
    %cst_69 = arith.constant dense<0.000000e+00> : vector<512x32xf32>
    %102 = tpu.matmul %99, %101, %cst_69 {dimension_numbers = #tpu.dot_dimension_numbers<[1], [0], [0], [1], [0, 0, 1, 1], [], []>} : vector<512x28xf32>, vector<28x32xf32>, vector<512x32xf32> -> vector<512x32xf32>
    %103 = arith.addf %94, %102 : vector<512x32xf32>
    %c3_i32_70 = arith.constant 3 : i32
    %104 = arith.addi %1, %c3_i32_70 : i32
    %c0_71 = arith.constant 0 : index
    %105 = arith.index_cast %104 : i32 to index
    %c0_72 = arith.constant 0 : index
    %c0_73 = arith.constant 0 : index
    %106 = vector.load %arg3[%c0_71, %105, %c0_72, %c0_73] : memref<1x38x16x28xf32, #tpu.memory_space<vmem>>, vector<1x32x16x28xf32>
    %107 = vector.shape_cast %106 : vector<1x32x16x28xf32> to vector<32x16x28xf32>
    %108 = vector.shape_cast %107 : vector<32x16x28xf32> to vector<512x28xf32>
    %c3_74 = arith.constant 3 : index
    %c0_75 = arith.constant 0 : index
    %c0_76 = arith.constant 0 : index
    %109 = vector.load %arg4[%c3_74, %c0_75, %c0_76] : memref<7x28x32xf32, #tpu.memory_space<vmem>>, vector<1x28x32xf32>
    %110 = vector.shape_cast %109 : vector<1x28x32xf32> to vector<28x32xf32>
    %cst_77 = arith.constant dense<0.000000e+00> : vector<512x32xf32>
    %111 = tpu.matmul %108, %110, %cst_77 {dimension_numbers = #tpu.dot_dimension_numbers<[1], [0], [0], [1], [0, 0, 1, 1], [], []>} : vector<512x28xf32>, vector<28x32xf32>, vector<512x32xf32> -> vector<512x32xf32>
    %112 = arith.addf %103, %111 : vector<512x32xf32>
    %c4_i32_78 = arith.constant 4 : i32
    %113 = arith.addi %1, %c4_i32_78 : i32
    %c0_79 = arith.constant 0 : index
    %114 = arith.index_cast %113 : i32 to index
    %c0_80 = arith.constant 0 : index
    %c0_81 = arith.constant 0 : index
    %115 = vector.load %arg3[%c0_79, %114, %c0_80, %c0_81] : memref<1x38x16x28xf32, #tpu.memory_space<vmem>>, vector<1x32x16x28xf32>
    %116 = vector.shape_cast %115 : vector<1x32x16x28xf32> to vector<32x16x28xf32>
    %117 = vector.shape_cast %116 : vector<32x16x28xf32> to vector<512x28xf32>
    %c4_82 = arith.constant 4 : index
    %c0_83 = arith.constant 0 : index
    %c0_84 = arith.constant 0 : index
    %118 = vector.load %arg4[%c4_82, %c0_83, %c0_84] : memref<7x28x32xf32, #tpu.memory_space<vmem>>, vector<1x28x32xf32>
    %119 = vector.shape_cast %118 : vector<1x28x32xf32> to vector<28x32xf32>
    %cst_85 = arith.constant dense<0.000000e+00> : vector<512x32xf32>
    %120 = tpu.matmul %117, %119, %cst_85 {dimension_numbers = #tpu.dot_dimension_numbers<[1], [0], [0], [1], [0, 0, 1, 1], [], []>} : vector<512x28xf32>, vector<28x32xf32>, vector<512x32xf32> -> vector<512x32xf32>
    %121 = arith.addf %112, %120 : vector<512x32xf32>
    %c5_i32_86 = arith.constant 5 : i32
    %122 = arith.addi %1, %c5_i32_86 : i32
    %c0_87 = arith.constant 0 : index
    %123 = arith.index_cast %122 : i32 to index
    %c0_88 = arith.constant 0 : index
    %c0_89 = arith.constant 0 : index
    %124 = vector.load %arg3[%c0_87, %123, %c0_88, %c0_89] : memref<1x38x16x28xf32, #tpu.memory_space<vmem>>, vector<1x32x16x28xf32>
    %125 = vector.shape_cast %124 : vector<1x32x16x28xf32> to vector<32x16x28xf32>
    %126 = vector.shape_cast %125 : vector<32x16x28xf32> to vector<512x28xf32>
    %c5_90 = arith.constant 5 : index
    %c0_91 = arith.constant 0 : index
    %c0_92 = arith.constant 0 : index
    %127 = vector.load %arg4[%c5_90, %c0_91, %c0_92] : memref<7x28x32xf32, #tpu.memory_space<vmem>>, vector<1x28x32xf32>
    %128 = vector.shape_cast %127 : vector<1x28x32xf32> to vector<28x32xf32>
    %cst_93 = arith.constant dense<0.000000e+00> : vector<512x32xf32>
    %129 = tpu.matmul %126, %128, %cst_93 {dimension_numbers = #tpu.dot_dimension_numbers<[1], [0], [0], [1], [0, 0, 1, 1], [], []>} : vector<512x28xf32>, vector<28x32xf32>, vector<512x32xf32> -> vector<512x32xf32>
    %130 = arith.addf %121, %129 : vector<512x32xf32>
    %c6_i32_94 = arith.constant 6 : i32
    %131 = arith.addi %1, %c6_i32_94 : i32
    %c0_95 = arith.constant 0 : index
    %132 = arith.index_cast %131 : i32 to index
    %c0_96 = arith.constant 0 : index
    %c0_97 = arith.constant 0 : index
    %133 = vector.load %arg3[%c0_95, %132, %c0_96, %c0_97] : memref<1x38x16x28xf32, #tpu.memory_space<vmem>>, vector<1x32x16x28xf32>
    %134 = vector.shape_cast %133 : vector<1x32x16x28xf32> to vector<32x16x28xf32>
    %135 = vector.shape_cast %134 : vector<32x16x28xf32> to vector<512x28xf32>
    %c6_98 = arith.constant 6 : index
    %c0_99 = arith.constant 0 : index
    %c0_100 = arith.constant 0 : index
    %136 = vector.load %arg4[%c6_98, %c0_99, %c0_100] : memref<7x28x32xf32, #tpu.memory_space<vmem>>, vector<1x28x32xf32>
    %137 = vector.shape_cast %136 : vector<1x28x32xf32> to vector<28x32xf32>
    %cst_101 = arith.constant dense<0.000000e+00> : vector<512x32xf32>
    %138 = tpu.matmul %135, %137, %cst_101 {dimension_numbers = #tpu.dot_dimension_numbers<[1], [0], [0], [1], [0, 0, 1, 1], [], []>} : vector<512x28xf32>, vector<28x32xf32>, vector<512x32xf32> -> vector<512x32xf32>
    %139 = arith.addf %130, %138 : vector<512x32xf32>
    %140 = vector.broadcast %2 : vector<1x32xf32> to vector<512x32xf32>
    %141 = arith.mulf %139, %140 : vector<512x32xf32>
    %142 = vector.broadcast %3 : vector<1x32xf32> to vector<512x32xf32>
    %143 = arith.addf %141, %142 : vector<512x32xf32>
    %cst_102 = arith.constant 0.000000e+00 : f32
    %144 = vector.broadcast %cst_102 : f32 to vector<512x32xf32>
    %145 = arith.maximumf %143, %144 : vector<512x32xf32>
    %146 = vector.shape_cast %145 : vector<512x32xf32> to vector<16x2x16x32xf32>
    %147 = vector.extract_strided_slice %146 {offsets = [0, 0, 0, 0], sizes = [16, 1, 16, 32], strides = [1, 1, 1, 1]} : vector<16x2x16x32xf32> to vector<16x1x16x32xf32>
    %148 = vector.shape_cast %147 : vector<16x1x16x32xf32> to vector<16x16x32xf32>
    %149 = vector.extract_strided_slice %146 {offsets = [0, 1, 0, 0], sizes = [16, 1, 16, 32], strides = [1, 1, 1, 1]} : vector<16x2x16x32xf32> to vector<16x1x16x32xf32>
    %150 = vector.shape_cast %149 : vector<16x1x16x32xf32> to vector<16x16x32xf32>
    %151 = arith.maximumf %148, %150 : vector<16x16x32xf32>
    %152 = arith.maximumf %77, %151 : vector<16x16x32xf32>
    %c0_103 = arith.constant 0 : index
    %c0_104 = arith.constant 0 : index
    %c0_105 = arith.constant 0 : index
    %c0_106 = arith.constant 0 : index
    %153 = vector.load %arg7[%c0_103, %c0_104, %c0_105, %c0_106] : memref<1x16x16x32xf32, #tpu.memory_space<vmem>>, vector<1x16x16x32xf32>
    %154 = vector.shape_cast %153 : vector<1x16x16x32xf32> to vector<16x16x32xf32>
    %155 = vector.shape_cast %152 : vector<16x16x32xf32> to vector<1x16x16x32xf32>
    tpu.vector_store %arg7[%c0_103, %c0_104, %c0_105, %c0_106], %155 {strides = array<i32>} : memref<1x16x16x32xf32, #tpu.memory_space<vmem>>, vector<1x16x16x32xf32>,
    return
  }
  func.func @transform_0(%arg0: i32, %arg1: i32) -> (i32, i32, i32, i32) {
    %c0_i32 = arith.constant 0 : i32
    %c0_i32_0 = arith.constant 0 : i32
    %c0_i32_1 = arith.constant 0 : i32
    %c0_i32_2 = arith.constant 0 : i32
    return %arg0, %c0_i32, %c0_i32_0, %c0_i32_1 : i32, i32, i32, i32
  }
  func.func @transform_1(%arg0: i32, %arg1: i32) -> (i32, i32, i32, i32) {
    %c0_i32 = arith.constant 0 : i32
    %c0_i32_0 = arith.constant 0 : i32
    %c0_i32_1 = arith.constant 0 : i32
    %c0_i32_2 = arith.constant 0 : i32
    return %arg0, %c0_i32, %c0_i32_0, %c0_i32_1 : i32, i32, i32, i32
  }
  func.func @transform_2(%arg0: i32, %arg1: i32) -> (i32, i32, i32) {
    %c0_i32 = arith.constant 0 : i32
    %c0_i32_0 = arith.constant 0 : i32
    %c0_i32_1 = arith.constant 0 : i32
    %c0_i32_2 = arith.constant 0 : i32
    return %c0_i32, %c0_i32_0, %c0_i32_1 : i32, i32, i32
  }
  func.func @transform_3(%arg0: i32, %arg1: i32) -> (i32, i32) {
    %c0_i32 = arith.constant 0 : i32
    %c0_i32_0 = arith.constant 0 : i32
    %c0_i32_1 = arith.constant 0 : i32
    return %c0_i32, %c0_i32_0 : i32, i32
  }
  func.func @transform_4(%arg0: i32, %arg1: i32) -> (i32, i32) {
    %c0_i32 = arith.constant 0 : i32
    %c0_i32_0 = arith.constant 0 : i32
    %c0_i32_1 = arith.constant 0 : i32
    return %c0_i32, %c0_i32_0 : i32, i32
  }
  func.func @transform_5(%arg0: i32, %arg1: i32) -> (i32, i32, i32, i32) {
    %c0_i32 = arith.constant 0 : i32
    %c0_i32_0 = arith.constant 0 : i32
    %c0_i32_1 = arith.constant 0 : i32
    return %arg0, %arg1, %c0_i32, %c0_i32_0 : i32, i32, i32, i32
  }
}

</mosaic_0001>

<bundles_post_ra>
// kernel: tpu_custom_call.1
= control target key start
LH: loop header
LB: loop body
LE: loop exit
PB: predicated region body
PF: predicated region fallthrough
CT: control target
= control target key end

     0   :  { %10 = vsyncpa [#allocation3], 0  ;;  %s19422_s0 = inlined_call_operand.vmem [shape: f32[2,38,16,28], index: 0, kind: input, shape index: {}]   ;;  %s19423_s1 = inlined_call_operand.vmem [shape: f32[2,38,16,28], index: 1, kind: input, shape index: {}]   ;;  %s19424_s2 = inlined_call_operand.vmem [shape: f32[7,28,32], index: 2, kind: input, shape index: {}]   ;;  %s19425_s3 = inlined_call_operand.vmem [shape: f32[1,32], index: 3, kind: input, shape index: {}]   ;;  %s19426_s4 = inlined_call_operand.vmem [shape: f32[1,32], index: 4, kind: input, shape index: {}]   ;;  %s19427_s5 = inlined_call_operand.hbm [shape: f32[2,16,16,32], index: 5, kind: output, shape index: {}]  }
   0x1   :  { %12 = vsyncpa [#allocation3 + $0x1], 0  ;;  %s15847_s18 = smov 0   ;;  %s15849_s19 = smov 0  }
   0x2   :  { %s15851_s20 = smov 0   ;;  %s15853_s21 = smov 0  }
   0x3   :  { %s15855_s22 = smov 0   ;;  %s15857_s23 = smov 0  }
   0x4 LB: > { %s10638_s24 = sadd.s32 4294967295, %s15811_s23   ;;  %s10639_s25 = sadd.s32 4294967294, %s15811_s23   ;;  %s15811_s23 = sphi %s15857_s23, %s18_s23   ;;  %s15807_s22 = sphi %s15855_s22, %s20107_s22   ;;  %s15803_s21 = sphi %s15853_s21, %s20106_s21   ;;  %s15799_s20 = sphi %s15851_s20, %s20105_s20   ;;  %s15795_s19 = sphi %s15849_s19, %s20104_s19   ;;  %s15791_s18 = sphi %s15847_s18, %s20103_s18  }
   0x5   : > { %s30_s26 = sadd.s32 1, %s15807_s22  ;;  %s154_s27 = sadd.s32 1, %s15799_s20 }
   0x6   : > { %p32_p0 = scmp.ge.s32.totalorder %s30_s26, 2  ;;  %p164_p1 = scmp.ne.s32.totalorder %s15799_s20, %s15795_s19 }
   0x7   : > { %p165_p2 = scmp.eq.s32.totalorder %s10638_s24, 1  ;;  %p170_p3 = scmp.ne.s32.totalorder %s15795_s19, %s15791_s18 }
   0x8   : > { %s20109_s26 = smov (%p32_p0, %s30_s26), 0  ;;  %p171_p5 = scmp.eq.s32.totalorder %s10639_s25, 1 }
   0x9   : > { %p15887_p4 = por %p165_p2, %p164_p1  ;;  %s149_s29 = ssub.s32 %s15807_s22, %s20109_s26 }
   0xa   : > { %p10642_p6 = scmp.ge.s32.totalorder %s15811_s23, 1  ;;  %p152_p7 = scmp.eq.s32.totalorder %s149_s29, 0 }
   0xb   : > { %p15894_p8 = por %p171_p5, %p170_p3  ;;  %p214_p9 = scmp.lt.s32.totalorder %s15811_s23, 3 }
   0xc   : > { %s15900_s6 = scalar_select %p152_p7, %s15799_s20, %s154_s27  }
   0xd   : > { %p215_p10 = pnand %p10642_p6, %p214_p9 }
   0xf   : > { %218 = sbr.rel (%p215_p10) target bundleno = 1163 (0x48b), region = 40 }
  0x16   : > { %v10710_v0 = vld [vmem:[%s19424_s2 + $0x20] sm:$0xff]  ;;  %v10711_v1 = vld [vmem:[%s19424_s2 + $0x28] sm:$0xff]  ;;  %v10712_v2 = vld [vmem:[%s19424_s2 + $0x30] sm:$0xff]  ;;  %vm596_vm0 = vcmask 1043456   ;;  %p247_p11 = scmp.lt.s32.totalorder %s15803_s21, 1  ;;  %vm15813_vm1 = vmmov 1  }
  0x17   : > { %v14764_v3 = vpack.c.bf16 %v10711_v1, %v10710_v0  ;;  %v10713_v4 = vld [vmem:[%s19424_s2 + $0x38] sm:$0xf]  ;;  %vm15915_vm2 = vmpackc.low %vm596_vm0, %vm15813_vm1  ;;  %v327_v7 = vld [vmem:[%s19424_s2] sm:$0xff]  ;;  %vm403_vm3 = vcmask 228352   ;;  %vm10451_vm4 = vcmask 261120   ;;  %s12355_s13 = sshll.u32 %s15803_s21, 12 }
  0x18   : > { %v14768_v5 = vpack.c.bf16 %v10713_v4, %v10712_v2  ;;  %s248_s15 = scalar_select %p247_p11, %s15803_s21, 1  ;;  %v328_v8 = vld [vmem:[%s19424_s2 + $0x8] sm:$0xff]  ;;  %v329_v10 = vld [vmem:[%s19424_s2 + $0x10] sm:$0xff]  ;;  %v330_v13 = vld [vmem:[%s19424_s2 + $0x18] sm:$0xf] }
  0x19   : > { %14765 = vmatprep.subr.bf16.mxu0 %v14764_v3  ;;  %14835 = vmatprep.subr.bf16.mxu1 %v14764_v3  ;;  %v14774_v9 = vpack.c.bf16 %v328_v8, %v327_v7  ;;  %v14778_v18 = vpack.c.bf16 %v330_v13, %v329_v10  ;;  %v10908_v59 = vld [vmem:[%s19424_s2 + $0x40] sm:$0xff]  ;;  %v10909_v60 = vld [vmem:[%s19424_s2 + $0x48] sm:$0xff]  ;;  %s19366_s17 = scalar_lea.hbm %s19427_s5, %s12355_s13  ;;  %s15814_s25 = smov [#allocation2]  }
  0x1a   : > { %14767 = vmatpush3.bf16.msra.mxu0 %v14764_v3  ;;  %14837 = vmatpush3.bf16.msra.mxu1 %v14764_v3  ;;  %s15672_s27 = smul.u32 608, %s248_s15  ;;  %v16200_v63 = vpack.c.bf16 %v10909_v60, %v10908_v59 }
  0x1b   : > { %14770 = vmatprep.subr.msk.bf16.mxu0 %vm15915_vm2, %v14768_v5  ;;  %14840 = vmatprep.subr.msk.bf16.mxu1 %vm15915_vm2, %v14768_v5 }
  0x1c   : > { %s15933_s8 = scalar_lea.vmem %s19422_s0, %s15672_s27  ;;  %s15938_s11 = scalar_lea.vmem %s19423_s1, %s15672_s27 }
  0x1d   : > { %v15944_v11 = vld [vmem:[%s15933_s8 + $0x10] sm:$0xff]  ;;  %v15957_v14 = vld [vmem:[%s15933_s8 + $0x18] sm:$0xff]  ;;  %v15967_v16 = vld [vmem:[%s15933_s8 + $0x20] sm:$0xff]  ;;  %s15737_s27 = sshll.u32 %s15814_s25, 4  ;;  %s15738_s27 = int_to_ptr.vmem [resolvable:$false] %s15737_s27 }
  0x1e   : > { %v15947_v12 = vld [vmem:[%s15938_s11 + $0x10] sm:$0xff]  ;;  %14773 = vmatpush3.bf16.msk.msra.mxu0 %vm15915_vm2, %v14768_v5  ;;  %14843 = vmatpush3.bf16.msk.msra.mxu1 %vm15915_vm2, %v14768_v5  ;;  %v15960_v15 = vld [vmem:[%s15938_s11 + $0x18] sm:$0xff]  ;;  %v15970_v17 = vld [vmem:[%s15938_s11 + $0x20] sm:$0xff] }
  0x1f   : > { %13316 = vmatprep.mubr.msk.f32.mxu0 %vm403_vm3, %v15944_v11  ;;  %14044 = vmatprep.mubr.msk.f32.mxu1 %vm403_vm3, %v15947_v12  ;;  %v15977_v19 = vld [vmem:[%s15933_s8 + $0x28] sm:$0xff]  ;;  %v15987_v21 = vld [vmem:[%s15933_s8 + $0x30] sm:$0xff]  ;;  %v16005_v23 = vld [vmem:[%s15933_s8 + $0x38] sm:$0xff] }
  0x20   : > { %14775 = vmatprep.subr.bf16.mxu0 %v14774_v9  ;;  %14845 = vmatprep.subr.bf16.mxu1 %v14774_v9  ;;  %v15980_v20 = vld [vmem:[%s15938_s11 + $0x28] sm:$0xff]  ;;  %v15990_v22 = vld [vmem:[%s15938_s11 + $0x30] sm:$0xff]  ;;  %v16008_v24 = vld [vmem:[%s15938_s11 + $0x38] sm:$0xff] }
  0x21   : > { %13317 = vmatmul.mubr.msk.f32.vlgmr.msra.gmra.mrb[0].mxu0 %vm403_vm3, %v15957_v14  ;;  %14045 = vmatmul.mubr.msk.f32.vlgmr.msra.gmra.mrb[0].mxu1 %vm403_vm3, %v15960_v15  ;;  %v16011_v25 = vld [vmem:[%s15933_s8 + $0x40] sm:$0xff]  ;;  %v16029_v27 = vld [vmem:[%s15933_s8 + $0x48] sm:$0xff]  ;;  %v16035_v29 = vld [vmem:[%s15933_s8 + $0x50] sm:$0xff] }
  0x22   : > { %14777 = vmatpush3.bf16.msra.mxu0 %v14774_v9  ;;  %14847 = vmatpush3.bf16.msra.mxu1 %v14774_v9  ;;  %v16014_v26 = vld [vmem:[%s15938_s11 + $0x40] sm:$0xff]  ;;  %v16032_v28 = vld [vmem:[%s15938_s11 + $0x48] sm:$0xff]  ;;  %v16038_v30 = vld [vmem:[%s15938_s11 + $0x50] sm:$0xff] }
  0x23   : > { %13319 = vmatprep.mubr.msk.f32.mxu0 %vm403_vm3, %v15967_v16  ;;  %14047 = vmatprep.mubr.msk.f32.mxu1 %vm403_vm3, %v15970_v17  ;;  %v16049_v31 = vld [vmem:[%s15933_s8 + $0x58] sm:$0xff]  ;;  %v16055_v33 = vld [vmem:[%s15933_s8 + $0x60] sm:$0xff]  ;;  %v16069_v35 = vld [vmem:[%s15933_s8 + $0x68] sm:$0xff] }
  0x24   : > { %14780 = vmatprep.subr.msk.bf16.mxu0 %vm15915_vm2, %v14778_v18  ;;  %14850 = vmatprep.subr.msk.bf16.mxu1 %vm15915_vm2, %v14778_v18  ;;  %v16052_v32 = vld [vmem:[%s15938_s11 + $0x58] sm:$0xff]  ;;  %v16058_v34 = vld [vmem:[%s15938_s11 + $0x60] sm:$0xff]  ;;  %v16072_v36 = vld [vmem:[%s15938_s11 + $0x68] sm:$0xff] }
  0x25   : > { %13320 = vmatmul.mubr.msk.f32.gmra.mrb[2].mxu0 %vm403_vm3, %v15977_v19  ;;  %14048 = vmatmul.mubr.msk.f32.gmra.mrb[2].mxu1 %vm403_vm3, %v15980_v20  ;;  %v16075_v37 = vld [vmem:[%s15933_s8 + $0x70] sm:$0xff]  ;;  %v16089_v39 = vld [vmem:[%s15933_s8 + $0x78] sm:$0xff]  ;;  %v16095_v41 = vld [vmem:[%s15933_s8 + $0x80] sm:$0xff] }
  0x26   : > { %13322 = vmatprep.mubr.msk.f32.mxu0 %vm403_vm3, %v15987_v21  ;;  %14050 = vmatprep.mubr.msk.f32.mxu1 %vm403_vm3, %v15990_v22  ;;  %v16078_v38 = vld [vmem:[%s15938_s11 + $0x70] sm:$0xff]  ;;  %v16092_v40 = vld [vmem:[%s15938_s11 + $0x78] sm:$0xff]  ;;  %v16098_v42 = vld [vmem:[%s15938_s11 + $0x80] sm:$0xff] }
  0x27   : > { %14783 = vmatpush3.bf16.msk.msra.mxu0 %vm15915_vm2, %v14778_v18  ;;  %14853 = vmatpush3.bf16.msk.msra.mxu1 %vm15915_vm2, %v14778_v18  ;;  %v16109_v43 = vld [vmem:[%s15933_s8 + $0x88] sm:$0xff]  ;;  %v16115_v45 = vld [vmem:[%s15933_s8 + $0x90] sm:$0xff]  ;;  %v16129_v47 = vld [vmem:[%s15933_s8 + $0x98] sm:$0xff] }
  0x28   : > { %v16112_v44 = vld [vmem:[%s15938_s11 + $0x88] sm:$0xff]  ;;  %v16118_v46 = vld [vmem:[%s15938_s11 + $0x90] sm:$0xff]  ;;  %v16132_v48 = vld [vmem:[%s15938_s11 + $0x98] sm:$0xff]  ;;  %14785 = vmatprep.subr.bf16.mxu0 %v16200_v63  ;;  %14855 = vmatprep.subr.bf16.mxu1 %v16200_v63 }
  0x29   : > { %13323 = vmatmul.mubr.msk.f32.gmra.mrb[4].mxu0 %vm403_vm3, %v16005_v23  ;;  %14051 = vmatmul.mubr.msk.f32.gmra.mrb[4].mxu1 %vm403_vm3, %v16008_v24  ;;  %v16135_v49 = vld [vmem:[%s15933_s8 + $0xa0] sm:$0xff]  ;;  %v16149_v51 = vld [vmem:[%s15933_s8 + $0xa8] sm:$0xff]  ;;  %v16155_v53 = vld [vmem:[%s15933_s8 + $0xb0] sm:$0xff] }
  0x2a   : > { %13325 = vmatprep.mubr.msk.f32.mxu0 %vm403_vm3, %v16011_v25  ;;  %14053 = vmatprep.mubr.msk.f32.mxu1 %vm403_vm3, %v16014_v26  ;;  %v16138_v50 = vld [vmem:[%s15938_s11 + $0xa0] sm:$0xff]  ;;  %v16152_v52 = vld [vmem:[%s15938_s11 + $0xa8] sm:$0xff]  ;;  %v16158_v54 = vld [vmem:[%s15938_s11 + $0xb0] sm:$0xff] }
  0x2b   : > { %v16169_v55 = vld [vmem:[%s15933_s8 + $0xb8] sm:$0xff]  ;;  %v16175_v57 = vld [vmem:[%s15933_s8 + $0xc0] sm:$0xff]  ;;  %v16195_v61 = vld [vmem:[%s15933_s8 + $0xc8] sm:$0xff] }
  0x2c   : > { %v16172_v56 = vld [vmem:[%s15938_s11 + $0xb8] sm:$0xff]  ;;  %v16178_v58 = vld [vmem:[%s15938_s11 + $0xc0] sm:$0xff]  ;;  %v16198_v62 = vld [vmem:[%s15938_s11 + $0xc8] sm:$0xff] }
  0x2d   : > { %13326 = vmatmul.mubr.msk.f32.gmra.mrb[6].mxu0 %vm403_vm3, %v16029_v27  ;;  %14054 = vmatmul.mubr.msk.f32.gmra.mrb[6].mxu1 %vm403_vm3, %v16032_v28  ;;  %v16203_v0 = vld [vmem:[%s15933_s8 + $0xd0] sm:$0xff]  ;;  %v16219_v2 = vld [vmem:[%s15933_s8 + $0xd8] sm:$0xff]  ;;  %v16225_v4 = vld [vmem:[%s15933_s8 + $0xe0] sm:$0xff] }
  0x2e   : > { %13328 = vmatprep.mubr.msk.f32.mxu0 %vm403_vm3, %v16035_v29  ;;  %14056 = vmatprep.mubr.msk.f32.mxu1 %vm403_vm3, %v16038_v30  ;;  %v16206_v1 = vld [vmem:[%s15938_s11 + $0xd0] sm:$0xff]  ;;  %v16222_v3 = vld [vmem:[%s15938_s11 + $0xd8] sm:$0xff]  ;;  %v16228_v5 = vld [vmem:[%s15938_s11 + $0xe0] sm:$0xff] }
  0x2f   : > { %19687 = vst [vmem:[#allocation5_spill] sm:$0xff] %v16228_v5  ;;  %v16239_v7 = vld [vmem:[%s15933_s8 + $0xe8] sm:$0xff]  ;;  %v16245_v9 = vld [vmem:[%s15933_s8 + $0xf0] sm:$0xff]  ;;  %v16259_v13 = vld [vmem:[%s15933_s8 + $0xf8] sm:$0xff] }
  0x30   : > { %19688 = vst [vmem:[#allocation6_spill] sm:$0xff] %v16239_v7  ;;  %v16242_v8 = vld [vmem:[%s15938_s11 + $0xe8] sm:$0xff]  ;;  %19690 = vst [vmem:[#allocation8_spill] sm:$0xff] %v16245_v9  ;;  %v16248_v10 = vld [vmem:[%s15938_s11 + $0xf0] sm:$0xff] }
  0x31   : > { %13329 = vmatmul.mubr.msk.f32.gmra.mrb[8].mxu0 %vm403_vm3, %v16049_v31  ;;  %14057 = vmatmul.mubr.msk.f32.gmra.mrb[8].mxu1 %vm403_vm3, %v16052_v32  ;;  %19689 = vst [vmem:[#allocation7_spill] sm:$0xff] %v16242_v8  ;;  %19691 = vst [vmem:[#allocation9_spill] sm:$0xff] %v16248_v10  ;;  %v16262_v18 = vld [vmem:[%s15938_s11 + $0xf8] sm:$0xff]  ;;  %v16265_v59 = vld [vmem:[%s15933_s8 + $0x100] sm:$0xff] }
  0x32   : > { %13331 = vmatprep.mubr.msk.f32.mxu0 %vm403_vm3, %v16055_v33  ;;  %14059 = vmatprep.mubr.msk.f32.mxu1 %vm403_vm3, %v16058_v34  ;;  %19692 = vst [vmem:[#allocation10_spill] sm:$0xff] %v16259_v13  ;;  %19693 = vst [vmem:[#allocation11_spill] sm:$0xff] %v16262_v18  ;;  %v16268_v60 = vld [vmem:[%s15938_s11 + $0x100] sm:$0xff] }
  0x33   : > { %19694 = vst [vmem:[#allocation12_spill] sm:$0xff] %v16265_v59  ;;  %19695 = vst [vmem:[#allocation13_spill] sm:$0xff] %v16268_v60 }
  0x35   : > { %13332 = vmatmul.mubr.msk.f32.gmra.mrb[10].mxu0 %vm403_vm3, %v16069_v35  ;;  %14060 = vmatmul.mubr.msk.f32.gmra.mrb[10].mxu1 %vm403_vm3, %v16072_v36 }
  0x36   : > { %13334 = vmatprep.mubr.msk.f32.mxu0 %vm403_vm3, %v16075_v37  ;;  %14062 = vmatprep.mubr.msk.f32.mxu1 %vm403_vm3, %v16078_v38 }
  0x39   : > { %13335 = vmatmul.mubr.msk.f32.gmra.mrb[12].mxu0 %vm403_vm3, %v16089_v39  ;;  %14063 = vmatmul.mubr.msk.f32.gmra.mrb[12].mxu1 %vm403_vm3, %v16092_v40 }
  0x3a   : > { %13337 = vmatprep.mubr.msk.f32.mxu0 %vm403_vm3, %v16095_v41  ;;  %14065 = vmatprep.mubr.msk.f32.mxu1 %vm403_vm3, %v16098_v42 }
  0x3d   : > { %13338 = vmatmul.mubr.msk.f32.gmra.mrb[14].mxu0 %vm403_vm3, %v16109_v43  ;;  %14066 = vmatmul.mubr.msk.f32.gmra.mrb[14].mxu1 %vm403_vm3, %v16112_v44 }
  0x3e   : > { %13340 = vmatprep.mubr.msk.f32.mxu0 %vm403_vm3, %v16115_v45  ;;  %14068 = vmatprep.mubr.msk.f32.mxu1 %vm403_vm3, %v16118_v46 }
  0x41   : > { %13341 = vmatmul.mubr.msk.f32.gmra.mrb[16].mxu0 %vm403_vm3, %v16129_v47  ;;  %14069 = vmatmul.mubr.msk.f32.gmra.mrb[16].mxu1 %vm403_vm3, %v16132_v48 }
  0x42   : > { %13343 = vmatprep.mubr.msk.f32.mxu0 %vm403_vm3, %v16135_v49  ;;  %14071 = vmatprep.mubr.msk.f32.mxu1 %vm403_vm3, %v16138_v50 }
  0x45   : > { %13344 = vmatmul.mubr.msk.f32.gmra.mrb[18].mxu0 %vm403_vm3, %v16149_v51  ;;  %14072 = vmatmul.mubr.msk.f32.gmra.mrb[18].mxu1 %vm403_vm3, %v16152_v52 }
  0x46   : > { %13346 = vmatprep.mubr.msk.f32.mxu0 %vm403_vm3, %v16155_v53  ;;  %14074 = vmatprep.mubr.msk.f32.mxu1 %vm403_vm3, %v16158_v54 }
  0x49   : > { %13347 = vmatmul.mubr.msk.f32.gmra.mrb[20].mxu0 %vm403_vm3, %v16169_v55  ;;  %14075 = vmatmul.mubr.msk.f32.gmra.mrb[20].mxu1 %vm403_vm3, %v16172_v56 }
  0x4a   : > { %13349 = vmatprep.mubr.msk.f32.mxu0 %vm403_vm3, %v16175_v57  ;;  %14077 = vmatprep.mubr.msk.f32.mxu1 %vm403_vm3, %v16178_v58 }
  0x4d   : > { %13350 = vmatmul.mubr.msk.f32.gmra.mrb[22].mxu0 %vm403_vm3, %v16195_v61  ;;  %14078 = vmatmul.mubr.msk.f32.gmra.mrb[22].mxu1 %vm403_vm3, %v16198_v62 }
  0x4e   : > { %13352 = vmatprep.mubr.msk.f32.mxu0 %vm403_vm3, %v16203_v0  ;;  %14080 = vmatprep.mubr.msk.f32.mxu1 %vm403_vm3, %v16206_v1 }
  0x51   : > { %13353 = vmatmul.mubr.msk.f32.gmra.mrb[24].mxu0 %vm403_vm3, %v16219_v2  ;;  %14081 = vmatmul.mubr.msk.f32.gmra.mrb[24].mxu1 %vm403_vm3, %v16222_v3 }
  0x52   : > { %13355 = vmatprep.mubr.msk.f32.mxu0 %vm403_vm3, %v16225_v4  ;;  %14083 = vmatprep.mubr.msk.f32.mxu1 %vm403_vm3, %v16228_v5  ;;  %v10910_v5 = vld [vmem:[%s19424_s2 + $0x50] sm:$0xff] }
  0x55   : > { %13356 = vmatmul.mubr.msk.f32.gmra.mrb[26].mxu0 %vm403_vm3, %v16239_v7  ;;  %14084 = vmatmul.mubr.msk.f32.gmra.mrb[26].mxu1 %vm403_vm3, %v16242_v8  ;;  %v16285_v8 = vld [vmem:[%s15933_s8 + $0x110] sm:$0xff] }
  0x56   : > { %13358 = vmatprep.mubr.msk.f32.mxu0 %vm403_vm3, %v16245_v9  ;;  %14086 = vmatprep.mubr.msk.f32.mxu1 %vm403_vm3, %v16248_v10  ;;  %v16279_v10 = vld [vmem:[%s15933_s8 + $0x108] sm:$0xff]  ;;  %19698 = vst [vmem:[#allocation16_spill] sm:$0xff] %v16285_v8  ;;  %v16288_v7 = vld [vmem:[%s15938_s11 + $0x110] sm:$0xff] }
  0x57   : > { %19696 = vst [vmem:[#allocation14_spill] sm:$0xff] %v16279_v10  ;;  %v16282_v9 = vld [vmem:[%s15938_s11 + $0x108] sm:$0xff]  ;;  %19699 = vst [vmem:[#allocation17_spill] sm:$0xff] %v16288_v7 }
  0x58   : > { %19697 = vst [vmem:[#allocation15_spill] sm:$0xff] %v16282_v9 }
  0x59   : > { %13359 = vmatmul.mubr.msk.f32.gmra.mrb[28].mxu0 %vm403_vm3, %v16259_v13  ;;  %14087 = vmatmul.mubr.msk.f32.gmra.mrb[28].mxu1 %vm403_vm3, %v16262_v18  ;;  %v16305_v18 = vld [vmem:[%s15933_s8 + $0x120] sm:$0xff] }
  0x5a   : > { %13361 = vmatprep.mubr.msk.f32.mxu0 %vm403_vm3, %v16265_v59  ;;  %14089 = vmatprep.mubr.msk.f32.mxu1 %vm403_vm3, %v16268_v60  ;;  %v16299_v60 = vld [vmem:[%s15933_s8 + $0x118] sm:$0xff]  ;;  %19702 = vst [vmem:[#allocation20_spill] sm:$0xff] %v16305_v18  ;;  %v16308_v13 = vld [vmem:[%s15938_s11 + $0x120] sm:$0xff] }
  0x5b   : > { %19700 = vst [vmem:[#allocation18_spill] sm:$0xff] %v16299_v60  ;;  %v16302_v59 = vld [vmem:[%s15938_s11 + $0x118] sm:$0xff]  ;;  %19703 = vst [vmem:[#allocation21_spill] sm:$0xff] %v16308_v13 }
  0x5c   : > { %19701 = vst [vmem:[#allocation19_spill] sm:$0xff] %v16302_v59 }
  0x5d   : > { %13362 = vmatmul.mubr.msk.f32.gmra.mrb[30].mxu0 %vm403_vm3, %v16279_v10  ;;  %14090 = vmatmul.mubr.msk.f32.gmra.mrb[30].mxu1 %vm403_vm3, %v16282_v9  ;;  %v16325_v9 = vld [vmem:[%s15933_s8 + $0x130] sm:$0xff] }
  0x5e   : > { %13364 = vmatprep.mubr.msk.f32.mxu0 %vm403_vm3, %v16285_v8  ;;  %14092 = vmatprep.mubr.msk.f32.mxu1 %vm403_vm3, %v16288_v7  ;;  %v16319_v7 = vld [vmem:[%s15933_s8 + $0x128] sm:$0xff]  ;;  %19706 = vst [vmem:[#allocation24_spill] sm:$0xff] %v16325_v9  ;;  %v16328_v10 = vld [vmem:[%s15938_s11 + $0x130] sm:$0xff] }
  0x5f   : > { %19704 = vst [vmem:[#allocation22_spill] sm:$0xff] %v16319_v7  ;;  %v16322_v8 = vld [vmem:[%s15938_s11 + $0x128] sm:$0xff]  ;;  %19707 = vst [vmem:[#allocation25_spill] sm:$0xff] %v16328_v10 }
  0x60   : > { %19705 = vst [vmem:[#allocation23_spill] sm:$0xff] %v16322_v8 }
  0x61   : > { %13365 = vmatmul.mubr.msk.f32.gmra.mrb[32].mxu0 %vm403_vm3, %v16299_v60  ;;  %14093 = vmatmul.mubr.msk.f32.gmra.mrb[32].mxu1 %vm403_vm3, %v16302_v59  ;;  %v16345_v59 = vld [vmem:[%s15933_s8 + $0x140] sm:$0xff] }
  0x62   : > { %13367 = vmatprep.mubr.msk.f32.mxu0 %vm403_vm3, %v16305_v18  ;;  %14095 = vmatprep.mubr.msk.f32.mxu1 %vm403_vm3, %v16308_v13  ;;  %v16339_v13 = vld [vmem:[%s15933_s8 + $0x138] sm:$0xff]  ;;  %19710 = vst [vmem:[#allocation28_spill] sm:$0xff] %v16345_v59  ;;  %v16348_v60 = vld [vmem:[%s15938_s11 + $0x140] sm:$0xff] }
  0x63   : > { %19708 = vst [vmem:[#allocation26_spill] sm:$0xff] %v16339_v13  ;;  %v16342_v18 = vld [vmem:[%s15938_s11 + $0x138] sm:$0xff]  ;;  %19711 = vst [vmem:[#allocation29_spill] sm:$0xff] %v16348_v60 }
  0x64   : > { %19709 = vst [vmem:[#allocation27_spill] sm:$0xff] %v16342_v18 }
  0x65   : > { %13368 = vmatmul.mubr.msk.f32.gmra.mrb[34].mxu0 %vm403_vm3, %v16319_v7  ;;  %14096 = vmatmul.mubr.msk.f32.gmra.mrb[34].mxu1 %vm403_vm3, %v16322_v8  ;;  %v16365_v8 = vld [vmem:[%s15933_s8 + $0x150] sm:$0xff] }
  0x66   : > { %13370 = vmatprep.mubr.msk.f32.mxu0 %vm403_vm3, %v16325_v9  ;;  %14098 = vmatprep.mubr.msk.f32.mxu1 %vm403_vm3, %v16328_v10  ;;  %v16359_v10 = vld [vmem:[%s15933_s8 + $0x148] sm:$0xff]  ;;  %19714 = vst [vmem:[#allocation32_spill] sm:$0xff] %v16365_v8  ;;  %v16368_v7 = vld [vmem:[%s15938_s11 + $0x150] sm:$0xff] }
  0x67   : > { %19712 = vst [vmem:[#allocation30_spill] sm:$0xff] %v16359_v10  ;;  %v16362_v9 = vld [vmem:[%s15938_s11 + $0x148] sm:$0xff]  ;;  %19715 = vst [vmem:[#allocation33_spill] sm:$0xff] %v16368_v7 }
  0x68   : > { %19713 = vst [vmem:[#allocation31_spill] sm:$0xff] %v16362_v9 }
  0x69   : > { %13371 = vmatmul.mubr.msk.f32.gmra.mrb[36].mxu0 %vm403_vm3, %v16339_v13  ;;  %14099 = vmatmul.mubr.msk.f32.gmra.mrb[36].mxu1 %vm403_vm3, %v16342_v18  ;;  %v16385_v18 = vld [vmem:[%s15933_s8 + $0x160] sm:$0xff] }
  0x6a   : > { %13373 = vmatprep.mubr.msk.f32.mxu0 %vm403_vm3, %v16345_v59  ;;  %14101 = vmatprep.mubr.msk.f32.mxu1 %vm403_vm3, %v16348_v60  ;;  %v16379_v60 = vld [vmem:[%s15933_s8 + $0x158] sm:$0xff]  ;;  %19718 = vst [vmem:[#allocation36_spill] sm:$0xff] %v16385_v18  ;;  %v16388_v13 = vld [vmem:[%s15938_s11 + $0x160] sm:$0xff] }
  0x6b   : > { %19716 = vst [vmem:[#allocation34_spill] sm:$0xff] %v16379_v60  ;;  %v16382_v59 = vld [vmem:[%s15938_s11 + $0x158] sm:$0xff]  ;;  %19719 = vst [vmem:[#allocation37_spill] sm:$0xff] %v16388_v13 }
  0x6c   : > { %19717 = vst [vmem:[#allocation35_spill] sm:$0xff] %v16382_v59 }
  0x6d   : > { %13374 = vmatmul.mubr.msk.f32.gmra.mrb[38].mxu0 %vm403_vm3, %v16359_v10  ;;  %14102 = vmatmul.mubr.msk.f32.gmra.mrb[38].mxu1 %vm403_vm3, %v16362_v9  ;;  %v16405_v9 = vld [vmem:[%s15933_s8 + $0x170] sm:$0xff] }
  0x6e   : > { %13376 = vmatprep.mubr.msk.f32.mxu0 %vm403_vm3, %v16365_v8  ;;  %14104 = vmatprep.mubr.msk.f32.mxu1 %vm403_vm3, %v16368_v7  ;;  %v16399_v7 = vld [vmem:[%s15933_s8 + $0x168] sm:$0xff]  ;;  %19722 = vst [vmem:[#allocation40_spill] sm:$0xff] %v16405_v9  ;;  %v16408_v10 = vld [vmem:[%s15938_s11 + $0x170] sm:$0xff] }
  0x6f   : > { %19720 = vst [vmem:[#allocation38_spill] sm:$0xff] %v16399_v7  ;;  %v16402_v8 = vld [vmem:[%s15938_s11 + $0x168] sm:$0xff]  ;;  %19723 = vst [vmem:[#allocation41_spill] sm:$0xff] %v16408_v10 }
  0x70   : > { %19721 = vst [vmem:[#allocation39_spill] sm:$0xff] %v16402_v8 }
  0x71   : > { %13377 = vmatmul.mubr.msk.f32.gmra.mrb[40].mxu0 %vm403_vm3, %v16379_v60  ;;  %14105 = vmatmul.mubr.msk.f32.gmra.mrb[40].mxu1 %vm403_vm3, %v16382_v59  ;;  %v16425_v59 = vld [vmem:[%s15933_s8 + $0x180] sm:$0xff] }
  0x72   : > { %13379 = vmatprep.mubr.msk.f32.mxu0 %vm403_vm3, %v16385_v18  ;;  %14107 = vmatprep.mubr.msk.f32.mxu1 %vm403_vm3, %v16388_v13  ;;  %v16419_v13 = vld [vmem:[%s15933_s8 + $0x178] sm:$0xff]  ;;  %19726 = vst [vmem:[#allocation44_spill] sm:$0xff] %v16425_v59  ;;  %v16428_v60 = vld [vmem:[%s15938_s11 + $0x180] sm:$0xff] }
  0x73   : > { %19724 = vst [vmem:[#allocation42_spill] sm:$0xff] %v16419_v13  ;;  %v16422_v18 = vld [vmem:[%s15938_s11 + $0x178] sm:$0xff]  ;;  %19727 = vst [vmem:[#allocation45_spill] sm:$0xff] %v16428_v60 }
  0x74   : > { %19725 = vst [vmem:[#allocation43_spill] sm:$0xff] %v16422_v18 }
  0x75   : > { %13380 = vmatmul.mubr.msk.f32.gmra.mrb[42].mxu0 %vm403_vm3, %v16399_v7  ;;  %14108 = vmatmul.mubr.msk.f32.gmra.mrb[42].mxu1 %vm403_vm3, %v16402_v8  ;;  %v16445_v8 = vld [vmem:[%s15933_s8 + $0x190] sm:$0xff] }
  0x76   : > { %13382 = vmatprep.mubr.msk.f32.mxu0 %vm403_vm3, %v16405_v9  ;;  %14110 = vmatprep.mubr.msk.f32.mxu1 %vm403_vm3, %v16408_v10  ;;  %v16439_v10 = vld [vmem:[%s15933_s8 + $0x188] sm:$0xff]  ;;  %19730 = vst [vmem:[#allocation48_spill] sm:$0xff] %v16445_v8  ;;  %v16448_v7 = vld [vmem:[%s15938_s11 + $0x190] sm:$0xff] }
  0x77   : > { %19728 = vst [vmem:[#allocation46_spill] sm:$0xff] %v16439_v10  ;;  %v16442_v9 = vld [vmem:[%s15938_s11 + $0x188] sm:$0xff]  ;;  %19731 = vst [vmem:[#allocation49_spill] sm:$0xff] %v16448_v7 }
  0x78   : > { %19729 = vst [vmem:[#allocation47_spill] sm:$0xff] %v16442_v9 }
  0x79   : > { %13383 = vmatmul.mubr.msk.f32.gmra.mrb[44].mxu0 %vm403_vm3, %v16419_v13  ;;  %14111 = vmatmul.mubr.msk.f32.gmra.mrb[44].mxu1 %vm403_vm3, %v16422_v18  ;;  %v16465_v18 = vld [vmem:[%s15933_s8 + $0x1a0] sm:$0xff] }
  0x7a   : > { %13385 = vmatprep.mubr.msk.f32.mxu0 %vm403_vm3, %v16425_v59  ;;  %14113 = vmatprep.mubr.msk.f32.mxu1 %vm403_vm3, %v16428_v60  ;;  %v16459_v60 = vld [vmem:[%s15933_s8 + $0x198] sm:$0xff]  ;;  %19734 = vst [vmem:[#allocation52_spill] sm:$0xff] %v16465_v18  ;;  %v16468_v13 = vld [vmem:[%s15938_s11 + $0x1a0] sm:$0xff] }
  0x7b   : > { %19732 = vst [vmem:[#allocation50_spill] sm:$0xff] %v16459_v60  ;;  %v16462_v59 = vld [vmem:[%s15938_s11 + $0x198] sm:$0xff]  ;;  %19735 = vst [vmem:[#allocation53_spill] sm:$0xff] %v16468_v13 }
  0x7c   : > { %19733 = vst [vmem:[#allocation51_spill] sm:$0xff] %v16462_v59 }
  0x7d   : > { %13386 = vmatmul.mubr.msk.f32.gmra.mrb[46].mxu0 %vm403_vm3, %v16439_v10  ;;  %14114 = vmatmul.mubr.msk.f32.gmra.mrb[46].mxu1 %vm403_vm3, %v16442_v9  ;;  %v16485_v9 = vld [vmem:[%s15933_s8 + $0x1b0] sm:$0xff] }
  0x7e   : > { %13388 = vmatprep.mubr.msk.f32.mxu0 %vm403_vm3, %v16445_v8  ;;  %14116 = vmatprep.mubr.msk.f32.mxu1 %vm403_vm3, %v16448_v7  ;;  %v16479_v7 = vld [vmem:[%s15933_s8 + $0x1a8] sm:$0xff]  ;;  %19738 = vst [vmem:[#allocation56_spill] sm:$0xff] %v16485_v9  ;;  %v16488_v10 = vld [vmem:[%s15938_s11 + $0x1b0] sm:$0xff] }
  0x7f   : > { %19736 = vst [vmem:[#allocation54_spill] sm:$0xff] %v16479_v7  ;;  %v16482_v8 = vld [vmem:[%s15938_s11 + $0x1a8] sm:$0xff]  ;;  %19739 = vst [vmem:[#allocation57_spill] sm:$0xff] %v16488_v10 }
  0x80   : > { %19737 = vst [vmem:[#allocation55_spill] sm:$0xff] %v16482_v8 }
  0x81   : > { %13389 = vmatmul.mubr.msk.f32.gmra.mrb[48].mxu0 %vm403_vm3, %v16459_v60  ;;  %14117 = vmatmul.mubr.msk.f32.gmra.mrb[48].mxu1 %vm403_vm3, %v16462_v59  ;;  %v16505_v59 = vld [vmem:[%s15933_s8 + $0x1c0] sm:$0xff] }
  0x82   : > { %13391 = vmatprep.mubr.msk.f32.mxu0 %vm403_vm3, %v16465_v18  ;;  %14119 = vmatprep.mubr.msk.f32.mxu1 %vm403_vm3, %v16468_v13  ;;  %v16499_v13 = vld [vmem:[%s15933_s8 + $0x1b8] sm:$0xff]  ;;  %19742 = vst [vmem:[#allocation60_spill] sm:$0xff] %v16505_v59  ;;  %v16508_v60 = vld [vmem:[%s15938_s11 + $0x1c0] sm:$0xff] }
  0x83   : > { %19740 = vst [vmem:[#allocation58_spill] sm:$0xff] %v16499_v13  ;;  %v16502_v18 = vld [vmem:[%s15938_s11 + $0x1b8] sm:$0xff]  ;;  %19743 = vst [vmem:[#allocation61_spill] sm:$0xff] %v16508_v60 }
  0x84   : > { %19741 = vst [vmem:[#allocation59_spill] sm:$0xff] %v16502_v18 }
  0x85   : > { %13392 = vmatmul.mubr.msk.f32.gmra.mrb[50].mxu0 %vm403_vm3, %v16479_v7  ;;  %14120 = vmatmul.mubr.msk.f32.gmra.mrb[50].mxu1 %vm403_vm3, %v16482_v8  ;;  %v16525_v8 = vld [vmem:[%s15933_s8 + $0x1d0] sm:$0xff] }
  0x86   : > { %13394 = vmatprep.mubr.msk.f32.mxu0 %vm403_vm3, %v16485_v9  ;;  %14122 = vmatprep.mubr.msk.f32.mxu1 %vm403_vm3, %v16488_v10  ;;  %v16519_v10 = vld [vmem:[%s15933_s8 + $0x1c8] sm:$0xff]  ;;  %19746 = vst [vmem:[#allocation64_spill] sm:$0xff] %v16525_v8  ;;  %v16528_v7 = vld [vmem:[%s15938_s11 + $0x1d0] sm:$0xff] }
  0x87   : > { %19744 = vst [vmem:[#allocation62_spill] sm:$0xff] %v16519_v10  ;;  %v16522_v9 = vld [vmem:[%s15938_s11 + $0x1c8] sm:$0xff]  ;;  %19747 = vst [vmem:[#allocation65_spill] sm:$0xff] %v16528_v7 }
  0x88   : > { %19745 = vst [vmem:[#allocation63_spill] sm:$0xff] %v16522_v9 }
  0x89   : > { %13395 = vmatmul.mubr.msk.f32.gmra.mrb[52].mxu0 %vm403_vm3, %v16499_v13  ;;  %14123 = vmatmul.mubr.msk.f32.gmra.mrb[52].mxu1 %vm403_vm3, %v16502_v18  ;;  %v16545_v18 = vld [vmem:[%s15933_s8 + $0x1e0] sm:$0xff] }
  0x8a   : > { %13397 = vmatprep.mubr.msk.f32.mxu0 %vm403_vm3, %v16505_v59  ;;  %14125 = vmatprep.mubr.msk.f32.mxu1 %vm403_vm3, %v16508_v60  ;;  %v16539_v60 = vld [vmem:[%s15933_s8 + $0x1d8] sm:$0xff]  ;;  %19750 = vst [vmem:[#allocation68_spill] sm:$0xff] %v16545_v18  ;;  %v16548_v13 = vld [vmem:[%s15938_s11 + $0x1e0] sm:$0xff] }
  0x8b   : > { %19748 = vst [vmem:[#allocation66_spill] sm:$0xff] %v16539_v60  ;;  %v16542_v59 = vld [vmem:[%s15938_s11 + $0x1d8] sm:$0xff]  ;;  %19751 = vst [vmem:[#allocation69_spill] sm:$0xff] %v16548_v13 }
  0x8c   : > { %19749 = vst [vmem:[#allocation67_spill] sm:$0xff] %v16542_v59 }
  0x8d   : > { %13398 = vmatmul.mubr.msk.f32.gmra.mrb[54].mxu0 %vm403_vm3, %v16519_v10  ;;  %14126 = vmatmul.mubr.msk.f32.gmra.mrb[54].mxu1 %vm403_vm3, %v16522_v9  ;;  %v16565_v9 = vld [vmem:[%s15933_s8 + $0x1f0] sm:$0xff] }
  0x8e   : > { %13400 = vmatprep.mubr.msk.f32.mxu0 %vm403_vm3, %v16525_v8  ;;  %14128 = vmatprep.mubr.msk.f32.mxu1 %vm403_vm3, %v16528_v7  ;;  %v16559_v7 = vld [vmem:[%s15933_s8 + $0x1e8] sm:$0xff]  ;;  %19754 = vst [vmem:[#allocation72_spill] sm:$0xff] %v16565_v9  ;;  %v16568_v10 = vld [vmem:[%s15938_s11 + $0x1f0] sm:$0xff] }
  0x8f   : > { %19752 = vst [vmem:[#allocation70_spill] sm:$0xff] %v16559_v7  ;;  %v16562_v8 = vld [vmem:[%s15938_s11 + $0x1e8] sm:$0xff]  ;;  %19755 = vst [vmem:[#allocation73_spill] sm:$0xff] %v16568_v10 }
  0x90   : > { %19753 = vst [vmem:[#allocation71_spill] sm:$0xff] %v16562_v8 }
  0x91   : > { %13401 = vmatmul.mubr.msk.f32.gmra.mrb[56].mxu0 %vm403_vm3, %v16539_v60  ;;  %14129 = vmatmul.mubr.msk.f32.gmra.mrb[56].mxu1 %vm403_vm3, %v16542_v59  ;;  %v10708_v59 = vld [vmem:[%s15933_s8 + $0x200] sm:$0xff] }
  0x92   : > { %13403 = vmatprep.mubr.msk.f32.mxu0 %vm403_vm3, %v16545_v18  ;;  %14131 = vmatprep.mubr.msk.f32.mxu1 %vm403_vm3, %v16548_v13  ;;  %v16579_v13 = vld [vmem:[%s15933_s8 + $0x1f8] sm:$0xff]  ;;  %v11573_v60 = vld [vmem:[%s15938_s11 + $0x200] sm:$0xff] }
  0x93   : > { %19756 = vst [vmem:[#allocation74_spill] sm:$0xff] %v16579_v13  ;;  %v16582_v18 = vld [vmem:[%s15938_s11 + $0x1f8] sm:$0xff] }
  0x94   : > { %19757 = vst [vmem:[#allocation75_spill] sm:$0xff] %v16582_v18 }
  0x95   : > { %13404 = vmatmul.mubr.msk.f32.gmra.mrb[58].mxu0 %vm403_vm3, %v16559_v7  ;;  %14132 = vmatmul.mubr.msk.f32.gmra.mrb[58].mxu1 %vm403_vm3, %v16562_v8  ;;  %v263_v8 = vld [vmem:[%s15933_s8] sm:$0xff] }
  0x96   : > { %13406 = vmatprep.mubr.msk.f32.mxu0 %vm403_vm3, %v16565_v9  ;;  %14134 = vmatprep.mubr.msk.f32.mxu1 %vm403_vm3, %v16568_v10  ;;  %v10709_v9 = vld [vmem:[%s15933_s8 + $0x208] sm:$0xff]  ;;  %v5382_v7 = vld [vmem:[%s15938_s11] sm:$0xff] }
  0x97   : > { %v11574_v10 = vld [vmem:[%s15938_s11 + $0x208] sm:$0xff] }
  0x99   : > { %13407 = vmatmul.mubr.msk.f32.gmra.mrb[60].mxu0 %vm403_vm3, %v16579_v13  ;;  %14135 = vmatmul.mubr.msk.f32.gmra.mrb[60].mxu1 %vm403_vm3, %v16582_v18  ;;  %v10911_v18 = vld [vmem:[%s19424_s2 + $0x58] sm:$0xf] }
  0x9a   : > { %13409 = vmatprep.mubr.msk.f32.mxu0 %vm403_vm3, %v10708_v59  ;;  %14137 = vmatprep.mubr.msk.f32.mxu1 %vm403_vm3, %v11573_v60  ;;  %v264_v59 = vld [vmem:[%s15933_s8 + $0x8] sm:$0xff]  ;;  %v14788_v13 = vpack.c.bf16 %v10911_v18, %v10910_v5 }
  0x9b   : > { %v5383_v60 = vld [vmem:[%s15938_s11 + $0x8] sm:$0xff] }
  0x9c   : > { %v19815_v18 = vld [vmem:[#allocation62_spill] sm:$0xff] }
  0x9d   : > { %13410 = vmatmul.mubr.msk.f32.gmra.mrb[62].mxu0 %vm403_vm3, %v10709_v9  ;;  %14138 = vmatmul.mubr.msk.f32.gmra.mrb[62].mxu1 %vm403_vm3, %v11574_v10  ;;  %v11041_v9 = vld [vmem:[%s19424_s2 + $0x60] sm:$0xff]  ;;  %v11042_v10 = vld [vmem:[%s19424_s2 + $0x68] sm:$0xff] }
  0x9e   : > { %13420 = vmatprep.mubr.msk.f32.mxu0 %vm403_vm3, %v263_v8  ;;  %14148 = vmatprep.mubr.msk.f32.mxu1 %vm403_vm3, %v5382_v7  ;;  %v16626_v5 = vpack.c.bf16 %v11042_v10, %v11041_v9  ;;  %v19812_v7 = vld [vmem:[#allocation59_spill] sm:$0xff]  ;;  %v19813_v8 = vld [vmem:[#allocation60_spill] sm:$0xff]  ;;  %v19818_v9 = vld [vmem:[#allocation65_spill] sm:$0xff] }
  0x9f   : > { %v19819_v10 = vld [vmem:[#allocation66_spill] sm:$0xff] }
  0xa1   : > { %13421 = vmatmul.mubr.msk.f32.vlgmr.msra.gmra.mrb[0].mxu0 %vm403_vm3, %v264_v59  ;;  %14149 = vmatmul.mubr.msk.f32.vlgmr.msra.gmra.mrb[0].mxu1 %vm403_vm3, %v5383_v60  ;;  %v19816_v59 = vld [vmem:[#allocation63_spill] sm:$0xff]  ;;  %v19817_v60 = vld [vmem:[#allocation64_spill] sm:$0xff] }
  0xa2   : > { %14787 = vmatpush3.bf16.msra.mxu0 %v16200_v63  ;;  %14857 = vmatpush3.bf16.msra.mxu1 %v16200_v63  ;;  %v19806_v63 = vld [vmem:[#allocation53_spill] sm:$0xff] }
  0xa3   : > { %13423 = vmatprep.mubr.msk.f32.mxu0 %vm403_vm3, %v15944_v11  ;;  %14151 = vmatprep.mubr.msk.f32.mxu1 %vm403_vm3, %v15947_v12  ;;  %v19758_v11 = vld [vmem:[#allocation5_spill] sm:$0xff]  ;;  %v19759_v12 = vld [vmem:[#allocation6_spill] sm:$0xff] }
  0xa4   : > { %14790 = vmatprep.subr.msk.bf16.mxu0 %vm15915_vm2, %v14788_v13  ;;  %14860 = vmatprep.subr.msk.bf16.mxu1 %vm15915_vm2, %v14788_v13 }
  0xa5   : > { %13424 = vmatmul.mubr.msk.f32.gmra.mrb[2].mxu0 %vm403_vm3, %v15957_v14  ;;  %14152 = vmatmul.mubr.msk.f32.gmra.mrb[2].mxu1 %vm403_vm3, %v15960_v15  ;;  %v19760_v14 = vld [vmem:[#allocation7_spill] sm:$0xff]  ;;  %v19761_v15 = vld [vmem:[#allocation8_spill] sm:$0xff] }
  0xa6   : > { %13426 = vmatprep.mubr.msk.f32.mxu0 %vm403_vm3, %v15967_v16  ;;  %14154 = vmatprep.mubr.msk.f32.mxu1 %vm403_vm3, %v15970_v17  ;;  %v19762_v16 = vld [vmem:[#allocation9_spill] sm:$0xff]  ;;  %v19763_v17 = vld [vmem:[#allocation10_spill] sm:$0xff] }
  0xa7   : > { %14793 = vmatpush3.bf16.msk.msra.mxu0 %vm15915_vm2, %v14788_v13  ;;  %14863 = vmatpush3.bf16.msk.msra.mxu1 %vm15915_vm2, %v14788_v13  ;;  %v19814_v13 = vld [vmem:[#allocation61_spill] sm:$0xff] }
  0xa8   : > { %14795 = vmatprep.subr.bf16.mxu0 %v16626_v5  ;;  %14865 = vmatprep.subr.bf16.mxu1 %v16626_v5 }
  0xa9   : > { %13427 = vmatmul.mubr.msk.f32.gmra.mrb[4].mxu0 %vm403_vm3, %v15977_v19  ;;  %14155 = vmatmul.mubr.msk.f32.gmra.mrb[4].mxu1 %vm403_vm3, %v15980_v20  ;;  %v19764_v19 = vld [vmem:[#allocation11_spill] sm:$0xff]  ;;  %v19765_v20 = vld [vmem:[#allocation12_spill] sm:$0xff] }
  0xaa   : > { %13429 = vmatprep.mubr.msk.f32.mxu0 %vm403_vm3, %v15987_v21  ;;  %14157 = vmatprep.mubr.msk.f32.mxu1 %vm403_vm3, %v15990_v22  ;;  %v19766_v21 = vld [vmem:[#allocation13_spill] sm:$0xff]  ;;  %v19767_v22 = vld [vmem:[#allocation14_spill] sm:$0xff] }
  0xad   : > { %13430 = vmatmul.mubr.msk.f32.gmra.mrb[6].mxu0 %vm403_vm3, %v16005_v23  ;;  %14158 = vmatmul.mubr.msk.f32.gmra.mrb[6].mxu1 %vm403_vm3, %v16008_v24  ;;  %v19768_v23 = vld [vmem:[#allocation15_spill] sm:$0xff]  ;;  %v19769_v24 = vld [vmem:[#allocation16_spill] sm:$0xff] }
  0xae   : > { %13432 = vmatprep.mubr.msk.f32.mxu0 %vm403_vm3, %v16011_v25  ;;  %14160 = vmatprep.mubr.msk.f32.mxu1 %vm403_vm3, %v16014_v26  ;;  %v19770_v25 = vld [vmem:[#allocation17_spill] sm:$0xff]  ;;  %v19771_v26 = vld [vmem:[#allocation18_spill] sm:$0xff] }
  0xb1   : > { %13433 = vmatmul.mubr.msk.f32.gmra.mrb[8].mxu0 %vm403_vm3, %v16029_v27  ;;  %14161 = vmatmul.mubr.msk.f32.gmra.mrb[8].mxu1 %vm403_vm3, %v16032_v28  ;;  %v19772_v27 = vld [vmem:[#allocation19_spill] sm:$0xff]  ;;  %v19773_v28 = vld [vmem:[#allocation20_spill] sm:$0xff] }
  0xb2   : > { %13435 = vmatprep.mubr.msk.f32.mxu0 %vm403_vm3, %v16035_v29  ;;  %14163 = vmatprep.mubr.msk.f32.mxu1 %vm403_vm3, %v16038_v30  ;;  %v19774_v29 = vld [vmem:[#allocation21_spill] sm:$0xff]  ;;  %v19775_v30 = vld [vmem:[#allocation22_spill] sm:$0xff] }
  0xb5   : > { %13436 = vmatmul.mubr.msk.f32.gmra.mrb[10].mxu0 %vm403_vm3, %v16049_v31  ;;  %14164 = vmatmul.mubr.msk.f32.gmra.mrb[10].mxu1 %vm403_vm3, %v16052_v32  ;;  %v19776_v31 = vld [vmem:[#allocation23_spill] sm:$0xff]  ;;  %v19777_v32 = vld [vmem:[#allocation24_spill] sm:$0xff] }
  0xb6   : > { %13438 = vmatprep.mubr.msk.f32.mxu0 %vm403_vm3, %v16055_v33  ;;  %14166 = vmatprep.mubr.msk.f32.mxu1 %vm403_vm3, %v16058_v34  ;;  %v19778_v33 = vld [vmem:[#allocation25_spill] sm:$0xff]  ;;  %v19779_v34 = vld [vmem:[#allocation26_spill] sm:$0xff] }
  0xb9   : > { %13439 = vmatmul.mubr.msk.f32.gmra.mrb[12].mxu0 %vm403_vm3, %v16069_v35  ;;  %14167 = vmatmul.mubr.msk.f32.gmra.mrb[12].mxu1 %vm403_vm3, %v16072_v36  ;;  %v19780_v35 = vld [vmem:[#allocation27_spill] sm:$0xff]  ;;  %v19781_v36 = vld [vmem:[#allocation28_spill] sm:$0xff] }
  0xba   : > { %13441 = vmatprep.mubr.msk.f32.mxu0 %vm403_vm3, %v16075_v37  ;;  %14169 = vmatprep.mubr.msk.f32.mxu1 %vm403_vm3, %v16078_v38  ;;  %v19782_v37 = vld [vmem:[#allocation29_spill] sm:$0xff]  ;;  %v19783_v38 = vld [vmem:[#allocation30_spill] sm:$0xff] }
  0xbd   : > { %13442 = vmatmul.mubr.msk.f32.gmra.mrb[14].mxu0 %vm403_vm3, %v16089_v39  ;;  %14170 = vmatmul.mubr.msk.f32.gmra.mrb[14].mxu1 %vm403_vm3, %v16092_v40  ;;  %v19784_v39 = vld [vmem:[#allocation31_spill] sm:$0xff]  ;;  %v19785_v40 = vld [vmem:[#allocation32_spill] sm:$0xff] }
  0xbe   : > { %13444 = vmatprep.mubr.msk.f32.mxu0 %vm403_vm3, %v16095_v41  ;;  %14172 = vmatprep.mubr.msk.f32.mxu1 %vm403_vm3, %v16098_v42  ;;  %v19786_v41 = vld [vmem:[#allocation33_spill] sm:$0xff]  ;;  %v19787_v42 = vld [vmem:[#allocation34_spill] sm:$0xff] }
  0xc1   : > { %13445 = vmatmul.mubr.msk.f32.gmra.mrb[16].mxu0 %vm403_vm3, %v16109_v43  ;;  %14173 = vmatmul.mubr.msk.f32.gmra.mrb[16].mxu1 %vm403_vm3, %v16112_v44  ;;  %v19788_v43 = vld [vmem:[#allocation35_spill] sm:$0xff]  ;;  %v19789_v44 = vld [vmem:[#allocation36_spill] sm:$0xff] }
  0xc2   : > { %13447 = vmatprep.mubr.msk.f32.mxu0 %vm403_vm3, %v16115_v45  ;;  %14175 = vmatprep.mubr.msk.f32.mxu1 %vm403_vm3, %v16118_v46  ;;  %v19790_v45 = vld [vmem:[#allocation37_spill] sm:$0xff]  ;;  %v19791_v46 = vld [vmem:[#allocation38_spill] sm:$0xff] }
  0xc5   : > { %13448 = vmatmul.mubr.msk.f32.gmra.mrb[18].mxu0 %vm403_vm3, %v16129_v47  ;;  %14176 = vmatmul.mubr.msk.f32.gmra.mrb[18].mxu1 %vm403_vm3, %v16132_v48  ;;  %v19792_v47 = vld [vmem:[#allocation39_spill] sm:$0xff]  ;;  %v19793_v48 = vld [vmem:[#allocation40_spill] sm:$0xff] }
  0xc6   : > { %13450 = vmatprep.mubr.msk.f32.mxu0 %vm403_vm3, %v16135_v49  ;;  %14178 = vmatprep.mubr.msk.f32.mxu1 %vm403_vm3, %v16138_v50  ;;  %v19794_v49 = vld [vmem:[#allocation41_spill] sm:$0xff]  ;;  %v19795_v50 = vld [vmem:[#allocation42_spill] sm:$0xff] }
  0xc9   : > { %13451 = vmatmul.mubr.msk.f32.gmra.mrb[20].mxu0 %vm403_vm3, %v16149_v51  ;;  %14179 = vmatmul.mubr.msk.f32.gmra.mrb[20].mxu1 %vm403_vm3, %v16152_v52  ;;  %v19796_v51 = vld [vmem:[#allocation43_spill] sm:$0xff]  ;;  %v19797_v52 = vld [vmem:[#allocation44_spill] sm:$0xff] }
  0xca   : > { %13453 = vmatprep.mubr.msk.f32.mxu0 %vm403_vm3, %v16155_v53  ;;  %14181 = vmatprep.mubr.msk.f32.mxu1 %vm403_vm3, %v16158_v54  ;;  %v19798_v53 = vld [vmem:[#allocation45_spill] sm:$0xff]  ;;  %v19799_v54 = vld [vmem:[#allocation46_spill] sm:$0xff] }
  0xcd   : > { %13454 = vmatmul.mubr.msk.f32.gmra.mrb[22].mxu0 %vm403_vm3, %v16169_v55  ;;  %14182 = vmatmul.mubr.msk.f32.gmra.mrb[22].mxu1 %vm403_vm3, %v16172_v56  ;;  %v19800_v55 = vld [vmem:[#allocation47_spill] sm:$0xff]  ;;  %v19801_v56 = vld [vmem:[#allocation48_spill] sm:$0xff] }
  0xce   : > { %13456 = vmatprep.mubr.msk.f32.mxu0 %vm403_vm3, %v16175_v57  ;;  %14184 = vmatprep.mubr.msk.f32.mxu1 %vm403_vm3, %v16178_v58  ;;  %v19802_v57 = vld [vmem:[#allocation49_spill] sm:$0xff]  ;;  %v19803_v58 = vld [vmem:[#allocation50_spill] sm:$0xff] }
  0xd1   : > { %13457 = vmatmul.mubr.msk.f32.gmra.mrb[24].mxu0 %vm403_vm3, %v16195_v61  ;;  %14185 = vmatmul.mubr.msk.f32.gmra.mrb[24].mxu1 %vm403_vm3, %v16198_v62  ;;  %v19804_v61 = vld [vmem:[#allocation51_spill] sm:$0xff]  ;;  %v19805_v62 = vld [vmem:[#allocation52_spill] sm:$0xff] }
  0xd2   : > { %13459 = vmatprep.mubr.msk.f32.mxu0 %vm403_vm3, %v16203_v0  ;;  %14187 = vmatprep.mubr.msk.f32.mxu1 %vm403_vm3, %v16206_v1  ;;  %v19807_v0 = vld [vmem:[#allocation54_spill] sm:$0xff]  ;;  %v19808_v1 = vld [vmem:[#allocation55_spill] sm:$0xff] }
  0xd5   : > { %13460 = vmatmul.mubr.msk.f32.gmra.mrb[26].mxu0 %vm403_vm3, %v16219_v2  ;;  %14188 = vmatmul.mubr.msk.f32.gmra.mrb[26].mxu1 %vm403_vm3, %v16222_v3  ;;  %v19809_v2 = vld [vmem:[#allocation56_spill] sm:$0xff]  ;;  %v19810_v3 = vld [vmem:[#allocation57_spill] sm:$0xff] }
  0xd6   : > { %13462 = vmatprep.mubr.msk.f32.mxu0 %vm403_vm3, %v16225_v4  ;;  %14190 = vmatprep.mubr.msk.f32.mxu1 %vm403_vm3, %v19758_v11  ;;  %v19811_v4 = vld [vmem:[#allocation58_spill] sm:$0xff]  ;;  %v19820_v11 = vld [vmem:[#allocation67_spill] sm:$0xff] }
  0xd9   : > { %13463 = vmatmul.mubr.msk.f32.gmra.mrb[28].mxu0 %vm403_vm3, %v19759_v12  ;;  %14191 = vmatmul.mubr.msk.f32.gmra.mrb[28].mxu1 %vm403_vm3, %v19760_v14  ;;  %v19821_v12 = vld [vmem:[#allocation68_spill] sm:$0xff]  ;;  %v19822_v14 = vld [vmem:[#allocation69_spill] sm:$0xff] }
  0xda   : > { %13465 = vmatprep.mubr.msk.f32.mxu0 %vm403_vm3, %v19761_v15  ;;  %14193 = vmatprep.mubr.msk.f32.mxu1 %vm403_vm3, %v19762_v16  ;;  %v19823_v15 = vld [vmem:[#allocation70_spill] sm:$0xff]  ;;  %v19824_v16 = vld [vmem:[#allocation71_spill] sm:$0xff] }
  0xdd   : > { %13466 = vmatmul.mubr.msk.f32.gmra.mrb[30].mxu0 %vm403_vm3, %v19763_v17  ;;  %14194 = vmatmul.mubr.msk.f32.gmra.mrb[30].mxu1 %vm403_vm3, %v19764_v19  ;;  %v19825_v17 = vld [vmem:[#allocation72_spill] sm:$0xff]  ;;  %v19826_v19 = vld [vmem:[#allocation73_spill] sm:$0xff] }
  0xde   : > { %13468 = vmatprep.mubr.msk.f32.mxu0 %vm403_vm3, %v19765_v20  ;;  %14196 = vmatprep.mubr.msk.f32.mxu1 %vm403_vm3, %v19766_v21  ;;  %v10844_v20 = vld [vmem:[%s15933_s8 + $0x20] sm:$0xff] }
  0xdf   : > { %v11705_v21 = vld [vmem:[%s15938_s11 + $0x20] sm:$0xff] }
  0xe1   : > { %13469 = vmatmul.mubr.msk.f32.gmra.mrb[32].mxu0 %vm403_vm3, %v19767_v22  ;;  %14197 = vmatmul.mubr.msk.f32.gmra.mrb[32].mxu1 %vm403_vm3, %v19768_v23  ;;  %v19827_v22 = vld [vmem:[#allocation74_spill] sm:$0xff]  ;;  %v19828_v23 = vld [vmem:[#allocation75_spill] sm:$0xff] }
  0xe2   : > { %13471 = vmatprep.mubr.msk.f32.mxu0 %vm403_vm3, %v19769_v24  ;;  %14199 = vmatprep.mubr.msk.f32.mxu1 %vm403_vm3, %v19770_v25  ;;  %v11043_v24 = vld [vmem:[%s19424_s2 + $0x70] sm:$0xff]  ;;  %v11044_v25 = vld [vmem:[%s19424_s2 + $0x78] sm:$0xf] }
  0xe5   : > { %13472 = vmatmul.mubr.msk.f32.gmra.mrb[34].mxu0 %vm403_vm3, %v19771_v26  ;;  %14200 = vmatmul.mubr.msk.f32.gmra.mrb[34].mxu1 %vm403_vm3, %v19772_v27  ;;  %v10845_v26 = vld [vmem:[%s15933_s8 + $0x28] sm:$0xff] }
  0xe6   : > { %13474 = vmatprep.mubr.msk.f32.mxu0 %vm403_vm3, %v19773_v28  ;;  %14202 = vmatprep.mubr.msk.f32.mxu1 %vm403_vm3, %v19774_v29  ;;  %v11706_v27 = vld [vmem:[%s15938_s11 + $0x28] sm:$0xff]  ;;  %v16891_v28 = vld [vmem:[%s15933_s8 + $0x30] sm:$0xff] }
  0xe7   : > { %v16894_v29 = vld [vmem:[%s15938_s11 + $0x30] sm:$0xff] }
  0xe9   : > { %13475 = vmatmul.mubr.msk.f32.gmra.mrb[36].mxu0 %vm403_vm3, %v19775_v30  ;;  %14203 = vmatmul.mubr.msk.f32.gmra.mrb[36].mxu1 %vm403_vm3, %v19776_v31  ;;  %v14798_v30 = vpack.c.bf16 %v11044_v25, %v11043_v24  ;;  %v11174_v31 = vld [vmem:[%s19424_s2 + $0x80] sm:$0xff]  ;;  %v17186_v24 = vld [vmem:[%s15938_s11 + $0x108] sm:$0xff]  ;;  %v17189_v25 = vld [vmem:[%s15933_s8 + $0x110] sm:$0xff] }
  0xea   : > { %13477 = vmatprep.mubr.msk.f32.mxu0 %vm403_vm3, %v19777_v32  ;;  %14205 = vmatprep.mubr.msk.f32.mxu1 %vm403_vm3, %v19778_v33  ;;  %v11175_v32 = vld [vmem:[%s19424_s2 + $0x88] sm:$0xff]  ;;  %v16907_v33 = vld [vmem:[%s15933_s8 + $0x38] sm:$0xff]  ;;  %19830 = vst [vmem:[#allocation6_spill] sm:$0xff] %v17186_v24  ;;  %19831 = vst [vmem:[#allocation7_spill] sm:$0xff] %v17189_v25 }
  0xed   : > { %13478 = vmatmul.mubr.msk.f32.gmra.mrb[38].mxu0 %vm403_vm3, %v19779_v34  ;;  %14206 = vmatmul.mubr.msk.f32.gmra.mrb[38].mxu1 %vm403_vm3, %v19780_v35  ;;  %v16910_v34 = vld [vmem:[%s15938_s11 + $0x38] sm:$0xff]  ;;  %v16917_v35 = vld [vmem:[%s15933_s8 + $0x40] sm:$0xff] }
  0xee   : > { %13480 = vmatprep.mubr.msk.f32.mxu0 %vm403_vm3, %v19781_v36  ;;  %14208 = vmatprep.mubr.msk.f32.mxu1 %vm403_vm3, %v19782_v37  ;;  %v16920_v36 = vld [vmem:[%s15938_s11 + $0x40] sm:$0xff]  ;;  %v16937_v37 = vld [vmem:[%s15933_s8 + $0x48] sm:$0xff] }
  0xf1   : > { %13481 = vmatmul.mubr.msk.f32.gmra.mrb[40].mxu0 %vm403_vm3, %v19783_v38  ;;  %14209 = vmatmul.mubr.msk.f32.gmra.mrb[40].mxu1 %vm403_vm3, %v19784_v39  ;;  %v16940_v38 = vld [vmem:[%s15938_s11 + $0x48] sm:$0xff]  ;;  %v16943_v39 = vld [vmem:[%s15933_s8 + $0x50] sm:$0xff] }
  0xf2   : > { %13483 = vmatprep.mubr.msk.f32.mxu0 %vm403_vm3, %v19785_v40  ;;  %14211 = vmatprep.mubr.msk.f32.mxu1 %vm403_vm3, %v19786_v41  ;;  %v16946_v40 = vld [vmem:[%s15938_s11 + $0x50] sm:$0xff]  ;;  %v16963_v41 = vld [vmem:[%s15933_s8 + $0x58] sm:$0xff] }
  0xf5   : > { %13484 = vmatmul.mubr.msk.f32.gmra.mrb[42].mxu0 %vm403_vm3, %v19787_v42  ;;  %14212 = vmatmul.mubr.msk.f32.gmra.mrb[42].mxu1 %vm403_vm3, %v19788_v43  ;;  %v16966_v42 = vld [vmem:[%s15938_s11 + $0x58] sm:$0xff]  ;;  %v16969_v43 = vld [vmem:[%s15933_s8 + $0x60] sm:$0xff] }
  0xf6   : > { %13486 = vmatprep.mubr.msk.f32.mxu0 %vm403_vm3, %v19789_v44  ;;  %14214 = vmatprep.mubr.msk.f32.mxu1 %vm403_vm3, %v19790_v45  ;;  %v16972_v44 = vld [vmem:[%s15938_s11 + $0x60] sm:$0xff]  ;;  %v16983_v45 = vld [vmem:[%s15933_s8 + $0x68] sm:$0xff] }
  0xf9   : > { %13487 = vmatmul.mubr.msk.f32.gmra.mrb[44].mxu0 %vm403_vm3, %v19791_v46  ;;  %14215 = vmatmul.mubr.msk.f32.gmra.mrb[44].mxu1 %vm403_vm3, %v19792_v47  ;;  %v16986_v46 = vld [vmem:[%s15938_s11 + $0x68] sm:$0xff]  ;;  %v16989_v47 = vld [vmem:[%s15933_s8 + $0x70] sm:$0xff] }
  0xfa   : > { %13489 = vmatprep.mubr.msk.f32.mxu0 %vm403_vm3, %v19793_v48  ;;  %14217 = vmatprep.mubr.msk.f32.mxu1 %vm403_vm3, %v19794_v49  ;;  %v16992_v48 = vld [vmem:[%s15938_s11 + $0x70] sm:$0xff]  ;;  %v17003_v49 = vld [vmem:[%s15933_s8 + $0x78] sm:$0xff] }
  0xfd   : > { %13490 = vmatmul.mubr.msk.f32.gmra.mrb[46].mxu0 %vm403_vm3, %v19795_v50  ;;  %14218 = vmatmul.mubr.msk.f32.gmra.mrb[46].mxu1 %vm403_vm3, %v19796_v51  ;;  %v17006_v50 = vld [vmem:[%s15938_s11 + $0x78] sm:$0xff]  ;;  %v17009_v51 = vld [vmem:[%s15933_s8 + $0x80] sm:$0xff] }
  0xfe   : > { %13492 = vmatprep.mubr.msk.f32.mxu0 %vm403_vm3, %v19797_v52  ;;  %14220 = vmatprep.mubr.msk.f32.mxu1 %vm403_vm3, %v19798_v53  ;;  %v17012_v52 = vld [vmem:[%s15938_s11 + $0x80] sm:$0xff]  ;;  %v17023_v53 = vld [vmem:[%s15933_s8 + $0x88] sm:$0xff] }
 0x101   : > { %13493 = vmatmul.mubr.msk.f32.gmra.mrb[48].mxu0 %vm403_vm3, %v19799_v54  ;;  %14221 = vmatmul.mubr.msk.f32.gmra.mrb[48].mxu1 %vm403_vm3, %v19800_v55  ;;  %v17026_v54 = vld [vmem:[%s15938_s11 + $0x88] sm:$0xff]  ;;  %v17029_v55 = vld [vmem:[%s15933_s8 + $0x90] sm:$0xff] }
 0x102   : > { %13495 = vmatprep.mubr.msk.f32.mxu0 %vm403_vm3, %v19801_v56  ;;  %14223 = vmatprep.mubr.msk.f32.mxu1 %vm403_vm3, %v19802_v57  ;;  %v17032_v56 = vld [vmem:[%s15938_s11 + $0x90] sm:$0xff]  ;;  %v17043_v57 = vld [vmem:[%s15933_s8 + $0x98] sm:$0xff] }
 0x105   : > { %13496 = vmatmul.mubr.msk.f32.gmra.mrb[50].mxu0 %vm403_vm3, %v19803_v58  ;;  %14224 = vmatmul.mubr.msk.f32.gmra.mrb[50].mxu1 %vm403_vm3, %v19804_v61  ;;  %v17046_v58 = vld [vmem:[%s15938_s11 + $0x98] sm:$0xff]  ;;  %v17049_v61 = vld [vmem:[%s15933_s8 + $0xa0] sm:$0xff] }
 0x106   : > { %13498 = vmatprep.mubr.msk.f32.mxu0 %vm403_vm3, %v19805_v62  ;;  %14226 = vmatprep.mubr.msk.f32.mxu1 %vm403_vm3, %v19806_v63  ;;  %v17052_v62 = vld [vmem:[%s15938_s11 + $0xa0] sm:$0xff]  ;;  %v17063_v63 = vld [vmem:[%s15933_s8 + $0xa8] sm:$0xff] }
 0x109   : > { %13499 = vmatmul.mubr.msk.f32.gmra.mrb[52].mxu0 %vm403_vm3, %v19807_v0  ;;  %14227 = vmatmul.mubr.msk.f32.gmra.mrb[52].mxu1 %vm403_vm3, %v19808_v1  ;;  %v17066_v0 = vld [vmem:[%s15938_s11 + $0xa8] sm:$0xff]  ;;  %v17069_v1 = vld [vmem:[%s15933_s8 + $0xb0] sm:$0xff] }
 0x10a   : > { %13501 = vmatprep.mubr.msk.f32.mxu0 %vm403_vm3, %v19809_v2  ;;  %14229 = vmatprep.mubr.msk.f32.mxu1 %vm403_vm3, %v19810_v3  ;;  %v17072_v2 = vld [vmem:[%s15938_s11 + $0xb0] sm:$0xff]  ;;  %v17083_v3 = vld [vmem:[%s15933_s8 + $0xb8] sm:$0xff] }
 0x10d   : > { %13502 = vmatmul.mubr.msk.f32.gmra.mrb[54].mxu0 %vm403_vm3, %v19811_v4  ;;  %14230 = vmatmul.mubr.msk.f32.gmra.mrb[54].mxu1 %vm403_vm3, %v19812_v7  ;;  %v17086_v4 = vld [vmem:[%s15938_s11 + $0xb8] sm:$0xff]  ;;  %v17089_v7 = vld [vmem:[%s15933_s8 + $0xc0] sm:$0xff] }
 0x10e   : > { %13504 = vmatprep.mubr.msk.f32.mxu0 %vm403_vm3, %v19813_v8  ;;  %14232 = vmatprep.mubr.msk.f32.mxu1 %vm403_vm3, %v19814_v13  ;;  %v17092_v8 = vld [vmem:[%s15938_s11 + $0xc0] sm:$0xff]  ;;  %v17103_v13 = vld [vmem:[%s15933_s8 + $0xc8] sm:$0xff] }
 0x111   : > { %13505 = vmatmul.mubr.msk.f32.gmra.mrb[56].mxu0 %vm403_vm3, %v19815_v18  ;;  %14233 = vmatmul.mubr.msk.f32.gmra.mrb[56].mxu1 %vm403_vm3, %v19816_v59  ;;  %v17106_v18 = vld [vmem:[%s15938_s11 + $0xc8] sm:$0xff]  ;;  %v17109_v59 = vld [vmem:[%s15933_s8 + $0xd0] sm:$0xff] }
 0x112   : > { %13507 = vmatprep.mubr.msk.f32.mxu0 %vm403_vm3, %v19817_v60  ;;  %14235 = vmatprep.mubr.msk.f32.mxu1 %vm403_vm3, %v19818_v9  ;;  %v17112_v60 = vld [vmem:[%s15938_s11 + $0xd0] sm:$0xff]  ;;  %v17123_v9 = vld [vmem:[%s15933_s8 + $0xd8] sm:$0xff] }
 0x115   : > { %13508 = vmatmul.mubr.msk.f32.gmra.mrb[58].mxu0 %vm403_vm3, %v19819_v10  ;;  %14236 = vmatmul.mubr.msk.f32.gmra.mrb[58].mxu1 %vm403_vm3, %v19820_v11  ;;  %v17126_v10 = vld [vmem:[%s15938_s11 + $0xd8] sm:$0xff]  ;;  %v17129_v11 = vld [vmem:[%s15933_s8 + $0xe0] sm:$0xff] }
 0x116   : > { %13510 = vmatprep.mubr.msk.f32.mxu0 %vm403_vm3, %v19821_v12  ;;  %14238 = vmatprep.mubr.msk.f32.mxu1 %vm403_vm3, %v19822_v14  ;;  %v17132_v12 = vld [vmem:[%s15938_s11 + $0xe0] sm:$0xff]  ;;  %v17143_v14 = vld [vmem:[%s15933_s8 + $0xe8] sm:$0xff] }
 0x119   : > { %13511 = vmatmul.mubr.msk.f32.gmra.mrb[60].mxu0 %vm403_vm3, %v19823_v15  ;;  %14239 = vmatmul.mubr.msk.f32.gmra.mrb[60].mxu1 %vm403_vm3, %v19824_v16  ;;  %v17146_v15 = vld [vmem:[%s15938_s11 + $0xe8] sm:$0xff]  ;;  %v17149_v16 = vld [vmem:[%s15933_s8 + $0xf0] sm:$0xff] }
 0x11a   : > { %13513 = vmatprep.mubr.msk.f32.mxu0 %vm403_vm3, %v19825_v17  ;;  %14241 = vmatprep.mubr.msk.f32.mxu1 %vm403_vm3, %v19826_v19  ;;  %v17152_v17 = vld [vmem:[%s15938_s11 + $0xf0] sm:$0xff]  ;;  %v17163_v19 = vld [vmem:[%s15933_s8 + $0xf8] sm:$0xff] }
 0x11d   : > { %13514 = vmatmul.mubr.msk.f32.gmra.mrb[62].mxu0 %vm403_vm3, %v19827_v22  ;;  %14242 = vmatmul.mubr.msk.f32.gmra.mrb[62].mxu1 %vm403_vm3, %v19828_v23  ;;  %v17172_v22 = vld [vmem:[%s15938_s11 + $0x100] sm:$0xff]  ;;  %v17183_v23 = vld [vmem:[%s15933_s8 + $0x108] sm:$0xff] }
 0x11e   : > { %13524 = vmatprep.mubr.msk.f32.mxu0 %vm403_vm3, %v10844_v20  ;;  %14252 = vmatprep.mubr.msk.f32.mxu1 %vm403_vm3, %v11705_v21  ;;  %v17166_v20 = vld [vmem:[%s15938_s11 + $0xf8] sm:$0xff]  ;;  %v17169_v21 = vld [vmem:[%s15933_s8 + $0x100] sm:$0xff]  ;;  %19829 = vst [vmem:[#allocation5_spill] sm:$0xff] %v17183_v23 }
 0x121   : > { %13525 = vmatmul.mubr.msk.f32.vlgmr.msra.gmra.mrb[0].mxu0 %vm403_vm3, %v10845_v26  ;;  %14253 = vmatmul.mubr.msk.f32.vlgmr.msra.gmra.mrb[0].mxu1 %vm403_vm3, %v11706_v27  ;;  %v17192_v26 = vld [vmem:[%s15938_s11 + $0x110] sm:$0xff]  ;;  %v17203_v27 = vld [vmem:[%s15933_s8 + $0x118] sm:$0xff] }
 0x122   : > { %14797 = vmatpush3.bf16.msra.mxu0 %v16626_v5  ;;  %14867 = vmatpush3.bf16.msra.mxu1 %v16626_v5  ;;  %v16926_v5 = vpack.c.bf16 %v11175_v32, %v11174_v31  ;;  %19832 = vst [vmem:[#allocation8_spill] sm:$0xff] %v17192_v26  ;;  %19833 = vst [vmem:[#allocation9_spill] sm:$0xff] %v17203_v27  ;;  %v17209_v31 = vld [vmem:[%s15933_s8 + $0x120] sm:$0xff] }
 0x123   : > { %13527 = vmatprep.mubr.msk.f32.mxu0 %vm403_vm3, %v16891_v28  ;;  %14255 = vmatprep.mubr.msk.f32.mxu1 %vm403_vm3, %v16894_v29  ;;  %19835 = vst [vmem:[#allocation11_spill] sm:$0xff] %v17209_v31  ;;  %v17212_v32 = vld [vmem:[%s15938_s11 + $0x120] sm:$0xff] }
 0x124   : > { %14800 = vmatprep.subr.msk.bf16.mxu0 %vm15915_vm2, %v14798_v30  ;;  %14870 = vmatprep.subr.msk.bf16.mxu1 %vm15915_vm2, %v14798_v30  ;;  %19836 = vst [vmem:[#allocation12_spill] sm:$0xff] %v17212_v32 }
 0x125   : > { %13528 = vmatmul.mubr.msk.f32.gmra.mrb[2].mxu0 %vm403_vm3, %v16907_v33  ;;  %14256 = vmatmul.mubr.msk.f32.gmra.mrb[2].mxu1 %vm403_vm3, %v16910_v34 }
 0x126   : > { %13530 = vmatprep.mubr.msk.f32.mxu0 %vm403_vm3, %v16917_v35  ;;  %14258 = vmatprep.mubr.msk.f32.mxu1 %vm403_vm3, %v16920_v36 }
 0x127   : > { %14803 = vmatpush3.bf16.msk.msra.mxu0 %vm15915_vm2, %v14798_v30  ;;  %14873 = vmatpush3.bf16.msk.msra.mxu1 %vm15915_vm2, %v14798_v30  ;;  %v17206_v30 = vld [vmem:[%s15938_s11 + $0x118] sm:$0xff] }
 0x128   : > { %14805 = vmatprep.subr.bf16.mxu0 %v16926_v5  ;;  %14875 = vmatprep.subr.bf16.mxu1 %v16926_v5  ;;  %19834 = vst [vmem:[#allocation10_spill] sm:$0xff] %v17206_v30 }
 0x129   : > { %13531 = vmatmul.mubr.msk.f32.gmra.mrb[4].mxu0 %vm403_vm3, %v16937_v37  ;;  %14259 = vmatmul.mubr.msk.f32.gmra.mrb[4].mxu1 %vm403_vm3, %v16940_v38 }
 0x12a   : > { %13533 = vmatprep.mubr.msk.f32.mxu0 %vm403_vm3, %v16943_v39  ;;  %14261 = vmatprep.mubr.msk.f32.mxu1 %vm403_vm3, %v16946_v40 }
 0x12d   : > { %13534 = vmatmul.mubr.msk.f32.gmra.mrb[6].mxu0 %vm403_vm3, %v16963_v41  ;;  %14262 = vmatmul.mubr.msk.f32.gmra.mrb[6].mxu1 %vm403_vm3, %v16966_v42 }
 0x12e   : > { %13536 = vmatprep.mubr.msk.f32.mxu0 %vm403_vm3, %v16969_v43  ;;  %14264 = vmatprep.mubr.msk.f32.mxu1 %vm403_vm3, %v16972_v44 }
 0x131   : > { %13537 = vmatmul.mubr.msk.f32.gmra.mrb[8].mxu0 %vm403_vm3, %v16983_v45  ;;  %14265 = vmatmul.mubr.msk.f32.gmra.mrb[8].mxu1 %vm403_vm3, %v16986_v46 }
 0x132   : > { %13539 = vmatprep.mubr.msk.f32.mxu0 %vm403_vm3, %v16989_v47  ;;  %14267 = vmatprep.mubr.msk.f32.mxu1 %vm403_vm3, %v16992_v48 }
 0x135   : > { %13540 = vmatmul.mubr.msk.f32.gmra.mrb[10].mxu0 %vm403_vm3, %v17003_v49  ;;  %14268 = vmatmul.mubr.msk.f32.gmra.mrb[10].mxu1 %vm403_vm3, %v17006_v50 }
 0x136   : > { %13542 = vmatprep.mubr.msk.f32.mxu0 %vm403_vm3, %v17009_v51  ;;  %14270 = vmatprep.mubr.msk.f32.mxu1 %vm403_vm3, %v17012_v52 }
 0x139   : > { %13543 = vmatmul.mubr.msk.f32.gmra.mrb[12].mxu0 %vm403_vm3, %v17023_v53  ;;  %14271 = vmatmul.mubr.msk.f32.gmra.mrb[12].mxu1 %vm403_vm3, %v17026_v54 }
 0x13a   : > { %13545 = vmatprep.mubr.msk.f32.mxu0 %vm403_vm3, %v17029_v55  ;;  %14273 = vmatprep.mubr.msk.f32.mxu1 %vm403_vm3, %v17032_v56 }
 0x13d   : > { %13546 = vmatmul.mubr.msk.f32.gmra.mrb[14].mxu0 %vm403_vm3, %v17043_v57  ;;  %14274 = vmatmul.mubr.msk.f32.gmra.mrb[14].mxu1 %vm403_vm3, %v17046_v58 }
 0x13e   : > { %13548 = vmatprep.mubr.msk.f32.mxu0 %vm403_vm3, %v17049_v61  ;;  %14276 = vmatprep.mubr.msk.f32.mxu1 %vm403_vm3, %v17052_v62 }
 0x141   : > { %13549 = vmatmul.mubr.msk.f32.gmra.mrb[16].mxu0 %vm403_vm3, %v17063_v63  ;;  %14277 = vmatmul.mubr.msk.f32.gmra.mrb[16].mxu1 %vm403_vm3, %v17066_v0 }
 0x142   : > { %13551 = vmatprep.mubr.msk.f32.mxu0 %vm403_vm3, %v17069_v1  ;;  %14279 = vmatprep.mubr.msk.f32.mxu1 %vm403_vm3, %v17072_v2 }
 0x145   : > { %13552 = vmatmul.mubr.msk.f32.gmra.mrb[18].mxu0 %vm403_vm3, %v17083_v3  ;;  %14280 = vmatmul.mubr.msk.f32.gmra.mrb[18].mxu1 %vm403_vm3, %v17086_v4 }
 0x146   : > { %13554 = vmatprep.mubr.msk.f32.mxu0 %vm403_vm3, %v17089_v7  ;;  %14282 = vmatprep.mubr.msk.f32.mxu1 %vm403_vm3, %v17092_v8 }
 0x149   : > { %13555 = vmatmul.mubr.msk.f32.gmra.mrb[20].mxu0 %vm403_vm3, %v17103_v13  ;;  %14283 = vmatmul.mubr.msk.f32.gmra.mrb[20].mxu1 %vm403_vm3, %v17106_v18 }
 0x14a   : > { %13557 = vmatprep.mubr.msk.f32.mxu0 %vm403_vm3, %v17109_v59  ;;  %14285 = vmatprep.mubr.msk.f32.mxu1 %vm403_vm3, %v17112_v60 }
 0x14d   : > { %13558 = vmatmul.mubr.msk.f32.gmra.mrb[22].mxu0 %vm403_vm3, %v17123_v9  ;;  %14286 = vmatmul.mubr.msk.f32.gmra.mrb[22].mxu1 %vm403_vm3, %v17126_v10 }
 0x14e   : > { %13560 = vmatprep.mubr.msk.f32.mxu0 %vm403_vm3, %v17129_v11  ;;  %14288 = vmatprep.mubr.msk.f32.mxu1 %vm403_vm3, %v17132_v12 }
 0x151   : > { %13561 = vmatmul.mubr.msk.f32.gmra.mrb[24].mxu0 %vm403_vm3, %v17143_v14  ;;  %14289 = vmatmul.mubr.msk.f32.gmra.mrb[24].mxu1 %vm403_vm3, %v17146_v15 }
 0x152   : > { %13563 = vmatprep.mubr.msk.f32.mxu0 %vm403_vm3, %v17149_v16  ;;  %14291 = vmatprep.mubr.msk.f32.mxu1 %vm403_vm3, %v17152_v17 }
 0x155   : > { %13564 = vmatmul.mubr.msk.f32.gmra.mrb[26].mxu0 %vm403_vm3, %v17163_v19  ;;  %14292 = vmatmul.mubr.msk.f32.gmra.mrb[26].mxu1 %vm403_vm3, %v17166_v20 }
 0x156   : > { %13566 = vmatprep.mubr.msk.f32.mxu0 %vm403_vm3, %v17169_v21  ;;  %14294 = vmatprep.mubr.msk.f32.mxu1 %vm403_vm3, %v17172_v22 }
 0x159   : > { %13567 = vmatmul.mubr.msk.f32.gmra.mrb[28].mxu0 %vm403_vm3, %v17183_v23  ;;  %14295 = vmatmul.mubr.msk.f32.gmra.mrb[28].mxu1 %vm403_vm3, %v17186_v24  ;;  %v17229_v24 = vld [vmem:[%s15933_s8 + $0x130] sm:$0xff] }
 0x15a   : > { %13569 = vmatprep.mubr.msk.f32.mxu0 %vm403_vm3, %v17189_v25  ;;  %14297 = vmatprep.mubr.msk.f32.mxu1 %vm403_vm3, %v17192_v26  ;;  %v17223_v26 = vld [vmem:[%s15933_s8 + $0x128] sm:$0xff]  ;;  %19839 = vst [vmem:[#allocation15_spill] sm:$0xff] %v17229_v24  ;;  %v17232_v23 = vld [vmem:[%s15938_s11 + $0x130] sm:$0xff] }
 0x15b   : > { %19837 = vst [vmem:[#allocation13_spill] sm:$0xff] %v17223_v26  ;;  %v17226_v25 = vld [vmem:[%s15938_s11 + $0x128] sm:$0xff]  ;;  %19840 = vst [vmem:[#allocation16_spill] sm:$0xff] %v17232_v23 }
 0x15c   : > { %19838 = vst [vmem:[#allocation14_spill] sm:$0xff] %v17226_v25 }
 0x15d   : > { %13570 = vmatmul.mubr.msk.f32.gmra.mrb[30].mxu0 %vm403_vm3, %v17203_v27  ;;  %14298 = vmatmul.mubr.msk.f32.gmra.mrb[30].mxu1 %vm403_vm3, %v17206_v30  ;;  %v17249_v30 = vld [vmem:[%s15933_s8 + $0x140] sm:$0xff] }
 0x15e   : > { %13572 = vmatprep.mubr.msk.f32.mxu0 %vm403_vm3, %v17209_v31  ;;  %14300 = vmatprep.mubr.msk.f32.mxu1 %vm403_vm3, %v17212_v32  ;;  %v17243_v32 = vld [vmem:[%s15933_s8 + $0x138] sm:$0xff]  ;;  %19843 = vst [vmem:[#allocation19_spill] sm:$0xff] %v17249_v30  ;;  %v17252_v27 = vld [vmem:[%s15938_s11 + $0x140] sm:$0xff] }
 0x15f   : > { %19841 = vst [vmem:[#allocation17_spill] sm:$0xff] %v17243_v32  ;;  %v17246_v31 = vld [vmem:[%s15938_s11 + $0x138] sm:$0xff]  ;;  %19844 = vst [vmem:[#allocation20_spill] sm:$0xff] %v17252_v27 }
 0x160   : > { %19842 = vst [vmem:[#allocation18_spill] sm:$0xff] %v17246_v31 }
 0x161   : > { %13573 = vmatmul.mubr.msk.f32.gmra.mrb[32].mxu0 %vm403_vm3, %v17223_v26  ;;  %14301 = vmatmul.mubr.msk.f32.gmra.mrb[32].mxu1 %vm403_vm3, %v17226_v25  ;;  %v17269_v25 = vld [vmem:[%s15933_s8 + $0x150] sm:$0xff] }
 0x162   : > { %13575 = vmatprep.mubr.msk.f32.mxu0 %vm403_vm3, %v17229_v24  ;;  %14303 = vmatprep.mubr.msk.f32.mxu1 %vm403_vm3, %v17232_v23  ;;  %v17263_v23 = vld [vmem:[%s15933_s8 + $0x148] sm:$0xff]  ;;  %19847 = vst [vmem:[#allocation23_spill] sm:$0xff] %v17269_v25  ;;  %v17272_v26 = vld [vmem:[%s15938_s11 + $0x150] sm:$0xff] }
 0x163   : > { %19845 = vst [vmem:[#allocation21_spill] sm:$0xff] %v17263_v23  ;;  %v17266_v24 = vld [vmem:[%s15938_s11 + $0x148] sm:$0xff]  ;;  %19848 = vst [vmem:[#allocation24_spill] sm:$0xff] %v17272_v26 }
 0x164   : > { %19846 = vst [vmem:[#allocation22_spill] sm:$0xff] %v17266_v24 }
 0x165   : > { %13576 = vmatmul.mubr.msk.f32.gmra.mrb[34].mxu0 %vm403_vm3, %v17243_v32  ;;  %14304 = vmatmul.mubr.msk.f32.gmra.mrb[34].mxu1 %vm403_vm3, %v17246_v31  ;;  %v17289_v31 = vld [vmem:[%s15933_s8 + $0x160] sm:$0xff] }
 0x166   : > { %13578 = vmatprep.mubr.msk.f32.mxu0 %vm403_vm3, %v17249_v30  ;;  %14306 = vmatprep.mubr.msk.f32.mxu1 %vm403_vm3, %v17252_v27  ;;  %v17283_v27 = vld [vmem:[%s15933_s8 + $0x158] sm:$0xff]  ;;  %19851 = vst [vmem:[#allocation27_spill] sm:$0xff] %v17289_v31  ;;  %v17292_v32 = vld [vmem:[%s15938_s11 + $0x160] sm:$0xff] }
 0x167   : > { %19849 = vst [vmem:[#allocation25_spill] sm:$0xff] %v17283_v27  ;;  %v17286_v30 = vld [vmem:[%s15938_s11 + $0x158] sm:$0xff]  ;;  %19852 = vst [vmem:[#allocation28_spill] sm:$0xff] %v17292_v32 }
 0x168   : > { %19850 = vst [vmem:[#allocation26_spill] sm:$0xff] %v17286_v30 }
 0x169   : > { %13579 = vmatmul.mubr.msk.f32.gmra.mrb[36].mxu0 %vm403_vm3, %v17263_v23  ;;  %14307 = vmatmul.mubr.msk.f32.gmra.mrb[36].mxu1 %vm403_vm3, %v17266_v24  ;;  %v17309_v24 = vld [vmem:[%s15933_s8 + $0x170] sm:$0xff] }
 0x16a   : > { %13581 = vmatprep.mubr.msk.f32.mxu0 %vm403_vm3, %v17269_v25  ;;  %14309 = vmatprep.mubr.msk.f32.mxu1 %vm403_vm3, %v17272_v26  ;;  %v17303_v26 = vld [vmem:[%s15933_s8 + $0x168] sm:$0xff]  ;;  %19855 = vst [vmem:[#allocation31_spill] sm:$0xff] %v17309_v24  ;;  %v17312_v23 = vld [vmem:[%s15938_s11 + $0x170] sm:$0xff] }
 0x16b   : > { %19853 = vst [vmem:[#allocation29_spill] sm:$0xff] %v17303_v26  ;;  %v17306_v25 = vld [vmem:[%s15938_s11 + $0x168] sm:$0xff]  ;;  %19856 = vst [vmem:[#allocation32_spill] sm:$0xff] %v17312_v23 }
 0x16c   : > { %19854 = vst [vmem:[#allocation30_spill] sm:$0xff] %v17306_v25 }
 0x16d   : > { %13582 = vmatmul.mubr.msk.f32.gmra.mrb[38].mxu0 %vm403_vm3, %v17283_v27  ;;  %14310 = vmatmul.mubr.msk.f32.gmra.mrb[38].mxu1 %vm403_vm3, %v17286_v30  ;;  %v17329_v30 = vld [vmem:[%s15933_s8 + $0x180] sm:$0xff] }
 0x16e   : > { %13584 = vmatprep.mubr.msk.f32.mxu0 %vm403_vm3, %v17289_v31  ;;  %14312 = vmatprep.mubr.msk.f32.mxu1 %vm403_vm3, %v17292_v32  ;;  %v17323_v32 = vld [vmem:[%s15933_s8 + $0x178] sm:$0xff]  ;;  %19859 = vst [vmem:[#allocation35_spill] sm:$0xff] %v17329_v30  ;;  %v17332_v27 = vld [vmem:[%s15938_s11 + $0x180] sm:$0xff] }
 0x16f   : > { %19857 = vst [vmem:[#allocation33_spill] sm:$0xff] %v17323_v32  ;;  %v17326_v31 = vld [vmem:[%s15938_s11 + $0x178] sm:$0xff]  ;;  %19860 = vst [vmem:[#allocation36_spill] sm:$0xff] %v17332_v27 }
 0x170   : > { %19858 = vst [vmem:[#allocation34_spill] sm:$0xff] %v17326_v31 }
 0x171   : > { %13585 = vmatmul.mubr.msk.f32.gmra.mrb[40].mxu0 %vm403_vm3, %v17303_v26  ;;  %14313 = vmatmul.mubr.msk.f32.gmra.mrb[40].mxu1 %vm403_vm3, %v17306_v25  ;;  %v17349_v25 = vld [vmem:[%s15933_s8 + $0x190] sm:$0xff] }
 0x172   : > { %13587 = vmatprep.mubr.msk.f32.mxu0 %vm403_vm3, %v17309_v24  ;;  %14315 = vmatprep.mubr.msk.f32.mxu1 %vm403_vm3, %v17312_v23  ;;  %v17343_v23 = vld [vmem:[%s15933_s8 + $0x188] sm:$0xff]  ;;  %19863 = vst [vmem:[#allocation39_spill] sm:$0xff] %v17349_v25  ;;  %v17352_v26 = vld [vmem:[%s15938_s11 + $0x190] sm:$0xff] }
 0x173   : > { %19861 = vst [vmem:[#allocation37_spill] sm:$0xff] %v17343_v23  ;;  %v17346_v24 = vld [vmem:[%s15938_s11 + $0x188] sm:$0xff]  ;;  %19864 = vst [vmem:[#allocation40_spill] sm:$0xff] %v17352_v26 }
 0x174   : > { %19862 = vst [vmem:[#allocation38_spill] sm:$0xff] %v17346_v24 }
 0x175   : > { %13588 = vmatmul.mubr.msk.f32.gmra.mrb[42].mxu0 %vm403_vm3, %v17323_v32  ;;  %14316 = vmatmul.mubr.msk.f32.gmra.mrb[42].mxu1 %vm403_vm3, %v17326_v31  ;;  %v17369_v31 = vld [vmem:[%s15933_s8 + $0x1a0] sm:$0xff] }
 0x176   : > { %13590 = vmatprep.mubr.msk.f32.mxu0 %vm403_vm3, %v17329_v30  ;;  %14318 = vmatprep.mubr.msk.f32.mxu1 %vm403_vm3, %v17332_v27  ;;  %v17363_v27 = vld [vmem:[%s15933_s8 + $0x198] sm:$0xff]  ;;  %19867 = vst [vmem:[#allocation43_spill] sm:$0xff] %v17369_v31  ;;  %v17372_v32 = vld [vmem:[%s15938_s11 + $0x1a0] sm:$0xff] }
 0x177   : > { %19865 = vst [vmem:[#allocation41_spill] sm:$0xff] %v17363_v27  ;;  %v17366_v30 = vld [vmem:[%s15938_s11 + $0x198] sm:$0xff]  ;;  %19868 = vst [vmem:[#allocation44_spill] sm:$0xff] %v17372_v32 }
 0x178   : > { %19866 = vst [vmem:[#allocation42_spill] sm:$0xff] %v17366_v30 }
 0x179   : > { %13591 = vmatmul.mubr.msk.f32.gmra.mrb[44].mxu0 %vm403_vm3, %v17343_v23  ;;  %14319 = vmatmul.mubr.msk.f32.gmra.mrb[44].mxu1 %vm403_vm3, %v17346_v24  ;;  %v17389_v24 = vld [vmem:[%s15933_s8 + $0x1b0] sm:$0xff] }
 0x17a   : > { %13593 = vmatprep.mubr.msk.f32.mxu0 %vm403_vm3, %v17349_v25  ;;  %14321 = vmatprep.mubr.msk.f32.mxu1 %vm403_vm3, %v17352_v26  ;;  %v17383_v26 = vld [vmem:[%s15933_s8 + $0x1a8] sm:$0xff]  ;;  %19871 = vst [vmem:[#allocation47_spill] sm:$0xff] %v17389_v24  ;;  %v17392_v23 = vld [vmem:[%s15938_s11 + $0x1b0] sm:$0xff] }
 0x17b   : > { %19869 = vst [vmem:[#allocation45_spill] sm:$0xff] %v17383_v26  ;;  %v17386_v25 = vld [vmem:[%s15938_s11 + $0x1a8] sm:$0xff]  ;;  %19872 = vst [vmem:[#allocation48_spill] sm:$0xff] %v17392_v23 }
 0x17c   : > { %19870 = vst [vmem:[#allocation46_spill] sm:$0xff] %v17386_v25 }
 0x17d   : > { %13594 = vmatmul.mubr.msk.f32.gmra.mrb[46].mxu0 %vm403_vm3, %v17363_v27  ;;  %14322 = vmatmul.mubr.msk.f32.gmra.mrb[46].mxu1 %vm403_vm3, %v17366_v30  ;;  %v17409_v30 = vld [vmem:[%s15933_s8 + $0x1c0] sm:$0xff] }
 0x17e   : > { %13596 = vmatprep.mubr.msk.f32.mxu0 %vm403_vm3, %v17369_v31  ;;  %14324 = vmatprep.mubr.msk.f32.mxu1 %vm403_vm3, %v17372_v32  ;;  %v17403_v32 = vld [vmem:[%s15933_s8 + $0x1b8] sm:$0xff]  ;;  %19875 = vst [vmem:[#allocation51_spill] sm:$0xff] %v17409_v30  ;;  %v17412_v27 = vld [vmem:[%s15938_s11 + $0x1c0] sm:$0xff] }
 0x17f   : > { %19873 = vst [vmem:[#allocation49_spill] sm:$0xff] %v17403_v32  ;;  %v17406_v31 = vld [vmem:[%s15938_s11 + $0x1b8] sm:$0xff]  ;;  %19876 = vst [vmem:[#allocation52_spill] sm:$0xff] %v17412_v27 }
 0x180   : > { %19874 = vst [vmem:[#allocation50_spill] sm:$0xff] %v17406_v31 }
 0x181   : > { %13597 = vmatmul.mubr.msk.f32.gmra.mrb[48].mxu0 %vm403_vm3, %v17383_v26  ;;  %14325 = vmatmul.mubr.msk.f32.gmra.mrb[48].mxu1 %vm403_vm3, %v17386_v25  ;;  %v17429_v25 = vld [vmem:[%s15933_s8 + $0x1d0] sm:$0xff] }
 0x182   : > { %13599 = vmatprep.mubr.msk.f32.mxu0 %vm403_vm3, %v17389_v24  ;;  %14327 = vmatprep.mubr.msk.f32.mxu1 %vm403_vm3, %v17392_v23  ;;  %v17423_v23 = vld [vmem:[%s15933_s8 + $0x1c8] sm:$0xff]  ;;  %19879 = vst [vmem:[#allocation55_spill] sm:$0xff] %v17429_v25  ;;  %v17432_v26 = vld [vmem:[%s15938_s11 + $0x1d0] sm:$0xff] }
 0x183   : > { %19877 = vst [vmem:[#allocation53_spill] sm:$0xff] %v17423_v23  ;;  %v17426_v24 = vld [vmem:[%s15938_s11 + $0x1c8] sm:$0xff]  ;;  %19880 = vst [vmem:[#allocation56_spill] sm:$0xff] %v17432_v26 }
 0x184   : > { %19878 = vst [vmem:[#allocation54_spill] sm:$0xff] %v17426_v24 }
 0x185   : > { %13600 = vmatmul.mubr.msk.f32.gmra.mrb[50].mxu0 %vm403_vm3, %v17403_v32  ;;  %14328 = vmatmul.mubr.msk.f32.gmra.mrb[50].mxu1 %vm403_vm3, %v17406_v31  ;;  %v17449_v31 = vld [vmem:[%s15933_s8 + $0x1e0] sm:$0xff] }
 0x186   : > { %13602 = vmatprep.mubr.msk.f32.mxu0 %vm403_vm3, %v17409_v30  ;;  %14330 = vmatprep.mubr.msk.f32.mxu1 %vm403_vm3, %v17412_v27  ;;  %v17443_v27 = vld [vmem:[%s15933_s8 + $0x1d8] sm:$0xff]  ;;  %19883 = vst [vmem:[#allocation59_spill] sm:$0xff] %v17449_v31  ;;  %v17452_v32 = vld [vmem:[%s15938_s11 + $0x1e0] sm:$0xff] }
 0x187   : > { %19881 = vst [vmem:[#allocation57_spill] sm:$0xff] %v17443_v27  ;;  %v17446_v30 = vld [vmem:[%s15938_s11 + $0x1d8] sm:$0xff]  ;;  %19884 = vst [vmem:[#allocation60_spill] sm:$0xff] %v17452_v32 }
 0x188   : > { %19882 = vst [vmem:[#allocation58_spill] sm:$0xff] %v17446_v30 }
 0x189   : > { %13603 = vmatmul.mubr.msk.f32.gmra.mrb[52].mxu0 %vm403_vm3, %v17423_v23  ;;  %14331 = vmatmul.mubr.msk.f32.gmra.mrb[52].mxu1 %vm403_vm3, %v17426_v24  ;;  %v17469_v24 = vld [vmem:[%s15933_s8 + $0x1f0] sm:$0xff] }
 0x18a   : > { %13605 = vmatprep.mubr.msk.f32.mxu0 %vm403_vm3, %v17429_v25  ;;  %14333 = vmatprep.mubr.msk.f32.mxu1 %vm403_vm3, %v17432_v26  ;;  %v17463_v26 = vld [vmem:[%s15933_s8 + $0x1e8] sm:$0xff]  ;;  %19887 = vst [vmem:[#allocation63_spill] sm:$0xff] %v17469_v24  ;;  %v17472_v23 = vld [vmem:[%s15938_s11 + $0x1f0] sm:$0xff] }
 0x18b   : > { %19885 = vst [vmem:[#allocation61_spill] sm:$0xff] %v17463_v26  ;;  %v17466_v25 = vld [vmem:[%s15938_s11 + $0x1e8] sm:$0xff]  ;;  %19888 = vst [vmem:[#allocation64_spill] sm:$0xff] %v17472_v23 }
 0x18c   : > { %19886 = vst [vmem:[#allocation62_spill] sm:$0xff] %v17466_v25 }
 0x18d   : > { %13606 = vmatmul.mubr.msk.f32.gmra.mrb[54].mxu0 %vm403_vm3, %v17443_v27  ;;  %14334 = vmatmul.mubr.msk.f32.gmra.mrb[54].mxu1 %vm403_vm3, %v17446_v30  ;;  %v17489_v30 = vld [vmem:[%s15933_s8 + $0x200] sm:$0xff] }
 0x18e   : > { %13608 = vmatprep.mubr.msk.f32.mxu0 %vm403_vm3, %v17449_v31  ;;  %14336 = vmatprep.mubr.msk.f32.mxu1 %vm403_vm3, %v17452_v32  ;;  %v17483_v32 = vld [vmem:[%s15933_s8 + $0x1f8] sm:$0xff]  ;;  %19889 = vst [vmem:[#allocation65_spill] sm:$0xff] %v17489_v30  ;;  %v17492_v27 = vld [vmem:[%s15938_s11 + $0x200] sm:$0xff] }
 0x18f   : > { %v17486_v31 = vld [vmem:[%s15938_s11 + $0x1f8] sm:$0xff]  ;;  %19890 = vst [vmem:[#allocation66_spill] sm:$0xff] %v17492_v27 }
 0x191   : > { %13609 = vmatmul.mubr.msk.f32.gmra.mrb[56].mxu0 %vm403_vm3, %v17463_v26  ;;  %14337 = vmatmul.mubr.msk.f32.gmra.mrb[56].mxu1 %vm403_vm3, %v17466_v25  ;;  %v17509_v25 = vld [vmem:[%s15933_s8 + $0x210] sm:$0xff] }
 0x192   : > { %13611 = vmatprep.mubr.msk.f32.mxu0 %vm403_vm3, %v17469_v24  ;;  %14339 = vmatprep.mubr.msk.f32.mxu1 %vm403_vm3, %v17472_v23  ;;  %v17503_v23 = vld [vmem:[%s15933_s8 + $0x208] sm:$0xff]  ;;  %19892 = vst [vmem:[#allocation68_spill] sm:$0xff] %v17509_v25  ;;  %v17512_v26 = vld [vmem:[%s15938_s11 + $0x210] sm:$0xff] }
 0x193   : > { %v17506_v24 = vld [vmem:[%s15938_s11 + $0x208] sm:$0xff]  ;;  %19893 = vst [vmem:[#allocation69_spill] sm:$0xff] %v17512_v26 }
 0x194   : > { %19891 = vst [vmem:[#allocation67_spill] sm:$0xff] %v17506_v24 }
 0x195   : > { %13612 = vmatmul.mubr.msk.f32.gmra.mrb[58].mxu0 %vm403_vm3, %v17483_v32  ;;  %14340 = vmatmul.mubr.msk.f32.gmra.mrb[58].mxu1 %vm403_vm3, %v17486_v31 }
 0x196   : > { %13614 = vmatprep.mubr.msk.f32.mxu0 %vm403_vm3, %v17489_v30  ;;  %14342 = vmatprep.mubr.msk.f32.mxu1 %vm403_vm3, %v17492_v27  ;;  %v17523_v27 = vld [vmem:[%s15933_s8 + $0x218] sm:$0xff] }
 0x197   : > { %19894 = vst [vmem:[#allocation70_spill] sm:$0xff] %v17523_v27  ;;  %v17526_v30 = vld [vmem:[%s15938_s11 + $0x218] sm:$0xff] }
 0x198   : > { %19895 = vst [vmem:[#allocation71_spill] sm:$0xff] %v17526_v30 }
 0x199   : > { %13615 = vmatmul.mubr.msk.f32.gmra.mrb[60].mxu0 %vm403_vm3, %v17503_v23  ;;  %14343 = vmatmul.mubr.msk.f32.gmra.mrb[60].mxu1 %vm403_vm3, %v17506_v24  ;;  %v11176_v24 = vld [vmem:[%s19424_s2 + $0x90] sm:$0xff] }
 0x19a   : > { %13617 = vmatprep.mubr.msk.f32.mxu0 %vm403_vm3, %v17509_v25  ;;  %14345 = vmatprep.mubr.msk.f32.mxu1 %vm403_vm3, %v17512_v26  ;;  %v11177_v25 = vld [vmem:[%s19424_s2 + $0x98] sm:$0xf] }
 0x19b   : > { %v14808_v26 = vpack.c.bf16 %v11177_v25, %v11176_v24  ;;  %v19950_v24 = vld [vmem:[#allocation59_spill] sm:$0xff]  ;;  %v19951_v25 = vld [vmem:[#allocation60_spill] sm:$0xff] }
 0x19d   : > { %13618 = vmatmul.mubr.msk.f32.gmra.mrb[62].mxu0 %vm403_vm3, %v17523_v27  ;;  %14346 = vmatmul.mubr.msk.f32.gmra.mrb[62].mxu1 %vm403_vm3, %v17526_v30  ;;  %v11307_v30 = vld [vmem:[%s19424_s2 + $0xa0] sm:$0xff]  ;;  %v11308_v27 = vld [vmem:[%s19424_s2 + $0xa8] sm:$0xff] }
 0x19e   : > { %13628 = vmatprep.mubr.msk.f32.mxu0 %vm403_vm3, %v16891_v28  ;;  %14356 = vmatprep.mubr.msk.f32.mxu1 %vm403_vm3, %v16894_v29  ;;  %v17562_v28 = vpack.c.bf16 %v11308_v27, %v11307_v30  ;;  %v19896_v29 = vld [vmem:[#allocation5_spill] sm:$0xff]  ;;  %v19953_v27 = vld [vmem:[#allocation62_spill] sm:$0xff]  ;;  %v19954_v30 = vld [vmem:[#allocation63_spill] sm:$0xff] }
 0x1a1   : > { %13629 = vmatmul.mubr.msk.f32.vlgmr.msra.gmra.mrb[0].mxu0 %vm403_vm3, %v16907_v33  ;;  %14357 = vmatmul.mubr.msk.f32.vlgmr.msra.gmra.mrb[0].mxu1 %vm403_vm3, %v16910_v34  ;;  %v19897_v33 = vld [vmem:[#allocation6_spill] sm:$0xff]  ;;  %v19898_v34 = vld [vmem:[#allocation7_spill] sm:$0xff] }
 0x1a2   : > { %14807 = vmatpush3.bf16.msra.mxu0 %v16926_v5  ;;  %14877 = vmatpush3.bf16.msra.mxu1 %v16926_v5  ;;  %v19901_v5 = vld [vmem:[#allocation10_spill] sm:$0xff] }
 0x1a3   : > { %13631 = vmatprep.mubr.msk.f32.mxu0 %vm403_vm3, %v16917_v35  ;;  %14359 = vmatprep.mubr.msk.f32.mxu1 %vm403_vm3, %v16920_v36  ;;  %v19899_v35 = vld [vmem:[#allocation8_spill] sm:$0xff]  ;;  %v19900_v36 = vld [vmem:[#allocation9_spill] sm:$0xff] }
 0x1a4   : > { %14810 = vmatprep.subr.msk.bf16.mxu0 %vm15915_vm2, %v14808_v26  ;;  %14880 = vmatprep.subr.msk.bf16.mxu1 %vm15915_vm2, %v14808_v26 }
 0x1a5   : > { %13632 = vmatmul.mubr.msk.f32.gmra.mrb[2].mxu0 %vm403_vm3, %v16937_v37  ;;  %14360 = vmatmul.mubr.msk.f32.gmra.mrb[2].mxu1 %vm403_vm3, %v16940_v38  ;;  %v19902_v37 = vld [vmem:[#allocation11_spill] sm:$0xff]  ;;  %v19903_v38 = vld [vmem:[#allocation12_spill] sm:$0xff] }
 0x1a6   : > { %13634 = vmatprep.mubr.msk.f32.mxu0 %vm403_vm3, %v16943_v39  ;;  %14362 = vmatprep.mubr.msk.f32.mxu1 %vm403_vm3, %v16946_v40  ;;  %v19904_v39 = vld [vmem:[#allocation13_spill] sm:$0xff]  ;;  %v19905_v40 = vld [vmem:[#allocation14_spill] sm:$0xff] }
 0x1a7   : > { %14813 = vmatpush3.bf16.msk.msra.mxu0 %vm15915_vm2, %v14808_v26  ;;  %14883 = vmatpush3.bf16.msk.msra.mxu1 %vm15915_vm2, %v14808_v26  ;;  %v19952_v26 = vld [vmem:[#allocation61_spill] sm:$0xff] }
 0x1a8   : > { %14815 = vmatprep.subr.bf16.mxu0 %v17562_v28  ;;  %14885 = vmatprep.subr.bf16.mxu1 %v17562_v28 }
 0x1a9   : > { %13635 = vmatmul.mubr.msk.f32.gmra.mrb[4].mxu0 %vm403_vm3, %v16963_v41  ;;  %14363 = vmatmul.mubr.msk.f32.gmra.mrb[4].mxu1 %vm403_vm3, %v16966_v42  ;;  %v19906_v41 = vld [vmem:[#allocation15_spill] sm:$0xff]  ;;  %v19907_v42 = vld [vmem:[#allocation16_spill] sm:$0xff] }
 0x1aa   : > { %13637 = vmatprep.mubr.msk.f32.mxu0 %vm403_vm3, %v16969_v43  ;;  %14365 = vmatprep.mubr.msk.f32.mxu1 %vm403_vm3, %v16972_v44  ;;  %v19908_v43 = vld [vmem:[#allocation17_spill] sm:$0xff]  ;;  %v19909_v44 = vld [vmem:[#allocation18_spill] sm:$0xff] }
 0x1ad   : > { %13638 = vmatmul.mubr.msk.f32.gmra.mrb[6].mxu0 %vm403_vm3, %v16983_v45  ;;  %14366 = vmatmul.mubr.msk.f32.gmra.mrb[6].mxu1 %vm403_vm3, %v16986_v46  ;;  %v19910_v45 = vld [vmem:[#allocation19_spill] sm:$0xff]  ;;  %v19911_v46 = vld [vmem:[#allocation20_spill] sm:$0xff] }
 0x1ae   : > { %13640 = vmatprep.mubr.msk.f32.mxu0 %vm403_vm3, %v16989_v47  ;;  %14368 = vmatprep.mubr.msk.f32.mxu1 %vm403_vm3, %v16992_v48  ;;  %v19912_v47 = vld [vmem:[#allocation21_spill] sm:$0xff]  ;;  %v19913_v48 = vld [vmem:[#allocation22_spill] sm:$0xff] }
 0x1b1   : > { %13641 = vmatmul.mubr.msk.f32.gmra.mrb[8].mxu0 %vm403_vm3, %v17003_v49  ;;  %14369 = vmatmul.mubr.msk.f32.gmra.mrb[8].mxu1 %vm403_vm3, %v17006_v50  ;;  %v19914_v49 = vld [vmem:[#allocation23_spill] sm:$0xff]  ;;  %v19915_v50 = vld [vmem:[#allocation24_spill] sm:$0xff] }
 0x1b2   : > { %13643 = vmatprep.mubr.msk.f32.mxu0 %vm403_vm3, %v17009_v51  ;;  %14371 = vmatprep.mubr.msk.f32.mxu1 %vm403_vm3, %v17012_v52  ;;  %v19916_v51 = vld [vmem:[#allocation25_spill] sm:$0xff]  ;;  %v19917_v52 = vld [vmem:[#allocation26_spill] sm:$0xff] }
 0x1b5   : > { %13644 = vmatmul.mubr.msk.f32.gmra.mrb[10].mxu0 %vm403_vm3, %v17023_v53  ;;  %14372 = vmatmul.mubr.msk.f32.gmra.mrb[10].mxu1 %vm403_vm3, %v17026_v54  ;;  %v19918_v53 = vld [vmem:[#allocation27_spill] sm:$0xff]  ;;  %v19919_v54 = vld [vmem:[#allocation28_spill] sm:$0xff] }
 0x1b6   : > { %13646 = vmatprep.mubr.msk.f32.mxu0 %vm403_vm3, %v17029_v55  ;;  %14374 = vmatprep.mubr.msk.f32.mxu1 %vm403_vm3, %v17032_v56  ;;  %v19920_v55 = vld [vmem:[#allocation29_spill] sm:$0xff]  ;;  %v19921_v56 = vld [vmem:[#allocation30_spill] sm:$0xff] }
 0x1b9   : > { %13647 = vmatmul.mubr.msk.f32.gmra.mrb[12].mxu0 %vm403_vm3, %v17043_v57  ;;  %14375 = vmatmul.mubr.msk.f32.gmra.mrb[12].mxu1 %vm403_vm3, %v17046_v58  ;;  %v19922_v57 = vld [vmem:[#allocation31_spill] sm:$0xff]  ;;  %v19923_v58 = vld [vmem:[#allocation32_spill] sm:$0xff] }
 0x1ba   : > { %13649 = vmatprep.mubr.msk.f32.mxu0 %vm403_vm3, %v17049_v61  ;;  %14377 = vmatprep.mubr.msk.f32.mxu1 %vm403_vm3, %v17052_v62  ;;  %v19924_v61 = vld [vmem:[#allocation33_spill] sm:$0xff]  ;;  %v19925_v62 = vld [vmem:[#allocation34_spill] sm:$0xff] }
 0x1bd   : > { %13650 = vmatmul.mubr.msk.f32.gmra.mrb[14].mxu0 %vm403_vm3, %v17063_v63  ;;  %14378 = vmatmul.mubr.msk.f32.gmra.mrb[14].mxu1 %vm403_vm3, %v17066_v0  ;;  %v19926_v63 = vld [vmem:[#allocation35_spill] sm:$0xff]  ;;  %v19927_v0 = vld [vmem:[#allocation36_spill] sm:$0xff] }
 0x1be   : > { %13652 = vmatprep.mubr.msk.f32.mxu0 %vm403_vm3, %v17069_v1  ;;  %14380 = vmatprep.mubr.msk.f32.mxu1 %vm403_vm3, %v17072_v2  ;;  %v19928_v1 = vld [vmem:[#allocation37_spill] sm:$0xff]  ;;  %v19929_v2 = vld [vmem:[#allocation38_spill] sm:$0xff] }
 0x1c1   : > { %13653 = vmatmul.mubr.msk.f32.gmra.mrb[16].mxu0 %vm403_vm3, %v17083_v3  ;;  %14381 = vmatmul.mubr.msk.f32.gmra.mrb[16].mxu1 %vm403_vm3, %v17086_v4  ;;  %v19930_v3 = vld [vmem:[#allocation39_spill] sm:$0xff]  ;;  %v19931_v4 = vld [vmem:[#allocation40_spill] sm:$0xff] }
 0x1c2   : > { %13655 = vmatprep.mubr.msk.f32.mxu0 %vm403_vm3, %v17089_v7  ;;  %14383 = vmatprep.mubr.msk.f32.mxu1 %vm403_vm3, %v17092_v8  ;;  %v19932_v7 = vld [vmem:[#allocation41_spill] sm:$0xff]  ;;  %v19933_v8 = vld [vmem:[#allocation42_spill] sm:$0xff] }
 0x1c5   : > { %13656 = vmatmul.mubr.msk.f32.gmra.mrb[18].mxu0 %vm403_vm3, %v17103_v13  ;;  %14384 = vmatmul.mubr.msk.f32.gmra.mrb[18].mxu1 %vm403_vm3, %v17106_v18  ;;  %v19934_v13 = vld [vmem:[#allocation43_spill] sm:$0xff]  ;;  %v19935_v18 = vld [vmem:[#allocation44_spill] sm:$0xff] }
 0x1c6   : > { %13658 = vmatprep.mubr.msk.f32.mxu0 %vm403_vm3, %v17109_v59  ;;  %14386 = vmatprep.mubr.msk.f32.mxu1 %vm403_vm3, %v17112_v60  ;;  %v19936_v59 = vld [vmem:[#allocation45_spill] sm:$0xff]  ;;  %v19937_v60 = vld [vmem:[#allocation46_spill] sm:$0xff] }
 0x1c9   : > { %13659 = vmatmul.mubr.msk.f32.gmra.mrb[20].mxu0 %vm403_vm3, %v17123_v9  ;;  %14387 = vmatmul.mubr.msk.f32.gmra.mrb[20].mxu1 %vm403_vm3, %v17126_v10  ;;  %v19938_v9 = vld [vmem:[#allocation47_spill] sm:$0xff]  ;;  %v19939_v10 = vld [vmem:[#allocation48_spill] sm:$0xff] }
 0x1ca   : > { %13661 = vmatprep.mubr.msk.f32.mxu0 %vm403_vm3, %v17129_v11  ;;  %14389 = vmatprep.mubr.msk.f32.mxu1 %vm403_vm3, %v17132_v12  ;;  %v19940_v11 = vld [vmem:[#allocation49_spill] sm:$0xff]  ;;  %v19941_v12 = vld [vmem:[#allocation50_spill] sm:$0xff] }
 0x1cd   : > { %13662 = vmatmul.mubr.msk.f32.gmra.mrb[22].mxu0 %vm403_vm3, %v17143_v14  ;;  %14390 = vmatmul.mubr.msk.f32.gmra.mrb[22].mxu1 %vm403_vm3, %v17146_v15  ;;  %v19942_v14 = vld [vmem:[#allocation51_spill] sm:$0xff]  ;;  %v19943_v15 = vld [vmem:[#allocation52_spill] sm:$0xff] }
 0x1ce   : > { %13664 = vmatprep.mubr.msk.f32.mxu0 %vm403_vm3, %v17149_v16  ;;  %14392 = vmatprep.mubr.msk.f32.mxu1 %vm403_vm3, %v17152_v17  ;;  %v19944_v16 = vld [vmem:[#allocation53_spill] sm:$0xff]  ;;  %v19945_v17 = vld [vmem:[#allocation54_spill] sm:$0xff] }
 0x1d1   : > { %13665 = vmatmul.mubr.msk.f32.gmra.mrb[24].mxu0 %vm403_vm3, %v17163_v19  ;;  %14393 = vmatmul.mubr.msk.f32.gmra.mrb[24].mxu1 %vm403_vm3, %v17166_v20  ;;  %v19946_v19 = vld [vmem:[#allocation55_spill] sm:$0xff]  ;;  %v19947_v20 = vld [vmem:[#allocation56_spill] sm:$0xff] }
 0x1d2   : > { %13667 = vmatprep.mubr.msk.f32.mxu0 %vm403_vm3, %v17169_v21  ;;  %14395 = vmatprep.mubr.msk.f32.mxu1 %vm403_vm3, %v17172_v22  ;;  %v19948_v21 = vld [vmem:[#allocation57_spill] sm:$0xff]  ;;  %v19949_v22 = vld [vmem:[#allocation58_spill] sm:$0xff] }
 0x1d5   : > { %13668 = vmatmul.mubr.msk.f32.gmra.mrb[26].mxu0 %vm403_vm3, %v19896_v29  ;;  %14396 = vmatmul.mubr.msk.f32.gmra.mrb[26].mxu1 %vm403_vm3, %v19897_v33  ;;  %v19955_v29 = vld [vmem:[#allocation64_spill] sm:$0xff]  ;;  %v19956_v33 = vld [vmem:[#allocation65_spill] sm:$0xff] }
 0x1d6   : > { %13670 = vmatprep.mubr.msk.f32.mxu0 %vm403_vm3, %v19898_v34  ;;  %14398 = vmatprep.mubr.msk.f32.mxu1 %vm403_vm3, %v19899_v35  ;;  %v19957_v34 = vld [vmem:[#allocation66_spill] sm:$0xff]  ;;  %v19958_v35 = vld [vmem:[#allocation67_spill] sm:$0xff] }
 0x1d9   : > { %13671 = vmatmul.mubr.msk.f32.gmra.mrb[28].mxu0 %vm403_vm3, %v19900_v36  ;;  %14399 = vmatmul.mubr.msk.f32.gmra.mrb[28].mxu1 %vm403_vm3, %v19901_v5  ;;  %v19959_v36 = vld [vmem:[#allocation68_spill] sm:$0xff]  ;;  %v17806_v5 = vld [vmem:[%s15938_s11 + $0x220] sm:$0xff] }
 0x1da   : > { %13673 = vmatprep.mubr.msk.f32.mxu0 %vm403_vm3, %v19902_v37  ;;  %14401 = vmatprep.mubr.msk.f32.mxu1 %vm403_vm3, %v19903_v38  ;;  %v19961_v37 = vld [vmem:[#allocation70_spill] sm:$0xff]  ;;  %v19962_v38 = vld [vmem:[#allocation71_spill] sm:$0xff] }
 0x1dd   : > { %13674 = vmatmul.mubr.msk.f32.gmra.mrb[30].mxu0 %vm403_vm3, %v19904_v39  ;;  %14402 = vmatmul.mubr.msk.f32.gmra.mrb[30].mxu1 %vm403_vm3, %v19905_v40  ;;  %v17820_v39 = vld [vmem:[%s15938_s11 + $0x228] sm:$0xff]  ;;  %v11110_v40 = vld [vmem:[%s15933_s8 + $0x40] sm:$0xff] }
 0x1de   : > { %13676 = vmatprep.mubr.msk.f32.mxu0 %vm403_vm3, %v19906_v41  ;;  %14404 = vmatprep.mubr.msk.f32.mxu1 %vm403_vm3, %v19907_v42  ;;  %v11963_v41 = vld [vmem:[%s15938_s11 + $0x40] sm:$0xff]  ;;  %v11309_v42 = vld [vmem:[%s19424_s2 + $0xb0] sm:$0xff] }
 0x1e1   : > { %13677 = vmatmul.mubr.msk.f32.gmra.mrb[32].mxu0 %vm403_vm3, %v19908_v43  ;;  %14405 = vmatmul.mubr.msk.f32.gmra.mrb[32].mxu1 %vm403_vm3, %v19909_v44  ;;  %v11310_v43 = vld [vmem:[%s19424_s2 + $0xb8] sm:$0xf]  ;;  %v11111_v44 = vld [vmem:[%s15933_s8 + $0x48] sm:$0xff] }
 0x1e2   : > { %13679 = vmatprep.mubr.msk.f32.mxu0 %vm403_vm3, %v19910_v45  ;;  %14407 = vmatprep.mubr.msk.f32.mxu1 %vm403_vm3, %v19911_v46  ;;  %v11964_v45 = vld [vmem:[%s15938_s11 + $0x48] sm:$0xff]  ;;  %v17839_v46 = vld [vmem:[%s15933_s8 + $0x50] sm:$0xff] }
 0x1e5   : > { %13680 = vmatmul.mubr.msk.f32.gmra.mrb[34].mxu0 %vm403_vm3, %v19912_v47  ;;  %14408 = vmatmul.mubr.msk.f32.gmra.mrb[34].mxu1 %vm403_vm3, %v19913_v48  ;;  %v17842_v47 = vld [vmem:[%s15938_s11 + $0x50] sm:$0xff]  ;;  %v14818_v48 = vpack.c.bf16 %v11310_v43, %v11309_v42  ;;  %v18114_v42 = vld [vmem:[%s15938_s11 + $0x118] sm:$0xff]  ;;  %v18117_v43 = vld [vmem:[%s15933_s8 + $0x120] sm:$0xff] }
 0x1e6   : > { %13682 = vmatprep.mubr.msk.f32.mxu0 %vm403_vm3, %v19914_v49  ;;  %14410 = vmatprep.mubr.msk.f32.mxu1 %vm403_vm3, %v19915_v50  ;;  %v11440_v49 = vld [vmem:[%s19424_s2 + $0xc0] sm:$0xff]  ;;  %v11441_v50 = vld [vmem:[%s19424_s2 + $0xc8] sm:$0xff]  ;;  %19964 = vst [vmem:[#allocation73_spill] sm:$0xff] %v18114_v42  ;;  %19965 = vst [vmem:[#allocation74_spill] sm:$0xff] %v18117_v43 }
 0x1e9   : > { %13683 = vmatmul.mubr.msk.f32.gmra.mrb[36].mxu0 %vm403_vm3, %v19916_v51  ;;  %14411 = vmatmul.mubr.msk.f32.gmra.mrb[36].mxu1 %vm403_vm3, %v19917_v52  ;;  %v17855_v51 = vld [vmem:[%s15933_s8 + $0x58] sm:$0xff] }
 0x1ea   : > { %13685 = vmatprep.mubr.msk.f32.mxu0 %vm403_vm3, %v19918_v53  ;;  %14413 = vmatprep.mubr.msk.f32.mxu1 %vm403_vm3, %v19919_v54  ;;  %v17858_v52 = vld [vmem:[%s15938_s11 + $0x58] sm:$0xff]  ;;  %v17865_v53 = vld [vmem:[%s15933_s8 + $0x60] sm:$0xff] }
 0x1eb   : > { %v17868_v54 = vld [vmem:[%s15938_s11 + $0x60] sm:$0xff] }
 0x1ed   : > { %13686 = vmatmul.mubr.msk.f32.gmra.mrb[38].mxu0 %vm403_vm3, %v19920_v55  ;;  %14414 = vmatmul.mubr.msk.f32.gmra.mrb[38].mxu1 %vm403_vm3, %v19921_v56  ;;  %v17885_v55 = vld [vmem:[%s15933_s8 + $0x68] sm:$0xff] }
 0x1ee   : > { %13688 = vmatprep.mubr.msk.f32.mxu0 %vm403_vm3, %v19922_v57  ;;  %14416 = vmatprep.mubr.msk.f32.mxu1 %vm403_vm3, %v19923_v58  ;;  %v17888_v56 = vld [vmem:[%s15938_s11 + $0x68] sm:$0xff]  ;;  %v17891_v57 = vld [vmem:[%s15933_s8 + $0x70] sm:$0xff] }
 0x1ef   : > { %v17894_v58 = vld [vmem:[%s15938_s11 + $0x70] sm:$0xff] }
 0x1f1   : > { %13689 = vmatmul.mubr.msk.f32.gmra.mrb[40].mxu0 %vm403_vm3, %v19924_v61  ;;  %14417 = vmatmul.mubr.msk.f32.gmra.mrb[40].mxu1 %vm403_vm3, %v19925_v62  ;;  %v17911_v61 = vld [vmem:[%s15933_s8 + $0x78] sm:$0xff] }
 0x1f2   : > { %13691 = vmatprep.mubr.msk.f32.mxu0 %vm403_vm3, %v19926_v63  ;;  %14419 = vmatprep.mubr.msk.f32.mxu1 %vm403_vm3, %v19927_v0  ;;  %v17914_v62 = vld [vmem:[%s15938_s11 + $0x78] sm:$0xff]  ;;  %v17917_v63 = vld [vmem:[%s15933_s8 + $0x80] sm:$0xff] }
 0x1f3   : > { %v17920_v0 = vld [vmem:[%s15938_s11 + $0x80] sm:$0xff] }
 0x1f5   : > { %13692 = vmatmul.mubr.msk.f32.gmra.mrb[42].mxu0 %vm403_vm3, %v19928_v1  ;;  %14420 = vmatmul.mubr.msk.f32.gmra.mrb[42].mxu1 %vm403_vm3, %v19929_v2  ;;  %v17931_v1 = vld [vmem:[%s15933_s8 + $0x88] sm:$0xff] }
 0x1f6   : > { %13694 = vmatprep.mubr.msk.f32.mxu0 %vm403_vm3, %v19930_v3  ;;  %14422 = vmatprep.mubr.msk.f32.mxu1 %vm403_vm3, %v19931_v4  ;;  %v17934_v2 = vld [vmem:[%s15938_s11 + $0x88] sm:$0xff]  ;;  %v17937_v3 = vld [vmem:[%s15933_s8 + $0x90] sm:$0xff] }
 0x1f7   : > { %v17940_v4 = vld [vmem:[%s15938_s11 + $0x90] sm:$0xff] }
 0x1f9   : > { %13695 = vmatmul.mubr.msk.f32.gmra.mrb[44].mxu0 %vm403_vm3, %v19932_v7  ;;  %14423 = vmatmul.mubr.msk.f32.gmra.mrb[44].mxu1 %vm403_vm3, %v19933_v8  ;;  %v17951_v7 = vld [vmem:[%s15933_s8 + $0x98] sm:$0xff] }
 0x1fa   : > { %13697 = vmatprep.mubr.msk.f32.mxu0 %vm403_vm3, %v19934_v13  ;;  %14425 = vmatprep.mubr.msk.f32.mxu1 %vm403_vm3, %v19935_v18  ;;  %v17954_v8 = vld [vmem:[%s15938_s11 + $0x98] sm:$0xff]  ;;  %v17957_v13 = vld [vmem:[%s15933_s8 + $0xa0] sm:$0xff] }
 0x1fb   : > { %v17960_v18 = vld [vmem:[%s15938_s11 + $0xa0] sm:$0xff] }
 0x1fd   : > { %13698 = vmatmul.mubr.msk.f32.gmra.mrb[46].mxu0 %vm403_vm3, %v19936_v59  ;;  %14426 = vmatmul.mubr.msk.f32.gmra.mrb[46].mxu1 %vm403_vm3, %v19937_v60  ;;  %v17971_v59 = vld [vmem:[%s15933_s8 + $0xa8] sm:$0xff] }
 0x1fe   : > { %13700 = vmatprep.mubr.msk.f32.mxu0 %vm403_vm3, %v19938_v9  ;;  %14428 = vmatprep.mubr.msk.f32.mxu1 %vm403_vm3, %v19939_v10  ;;  %v17974_v60 = vld [vmem:[%s15938_s11 + $0xa8] sm:$0xff]  ;;  %v17977_v9 = vld [vmem:[%s15933_s8 + $0xb0] sm:$0xff] }
 0x1ff   : > { %v17980_v10 = vld [vmem:[%s15938_s11 + $0xb0] sm:$0xff] }
 0x201   : > { %13701 = vmatmul.mubr.msk.f32.gmra.mrb[48].mxu0 %vm403_vm3, %v19940_v11  ;;  %14429 = vmatmul.mubr.msk.f32.gmra.mrb[48].mxu1 %vm403_vm3, %v19941_v12  ;;  %v17991_v11 = vld [vmem:[%s15933_s8 + $0xb8] sm:$0xff] }
 0x202   : > { %13703 = vmatprep.mubr.msk.f32.mxu0 %vm403_vm3, %v19942_v14  ;;  %14431 = vmatprep.mubr.msk.f32.mxu1 %vm403_vm3, %v19943_v15  ;;  %v17994_v12 = vld [vmem:[%s15938_s11 + $0xb8] sm:$0xff]  ;;  %v17997_v14 = vld [vmem:[%s15933_s8 + $0xc0] sm:$0xff] }
 0x203   : > { %v18000_v15 = vld [vmem:[%s15938_s11 + $0xc0] sm:$0xff] }
 0x205   : > { %13704 = vmatmul.mubr.msk.f32.gmra.mrb[50].mxu0 %vm403_vm3, %v19944_v16  ;;  %14432 = vmatmul.mubr.msk.f32.gmra.mrb[50].mxu1 %vm403_vm3, %v19945_v17  ;;  %v18011_v16 = vld [vmem:[%s15933_s8 + $0xc8] sm:$0xff] }
 0x206   : > { %13706 = vmatprep.mubr.msk.f32.mxu0 %vm403_vm3, %v19946_v19  ;;  %14434 = vmatprep.mubr.msk.f32.mxu1 %vm403_vm3, %v19947_v20  ;;  %v18014_v17 = vld [vmem:[%s15938_s11 + $0xc8] sm:$0xff]  ;;  %v18017_v19 = vld [vmem:[%s15933_s8 + $0xd0] sm:$0xff] }
 0x207   : > { %v18020_v20 = vld [vmem:[%s15938_s11 + $0xd0] sm:$0xff] }
 0x209   : > { %13707 = vmatmul.mubr.msk.f32.gmra.mrb[52].mxu0 %vm403_vm3, %v19948_v21  ;;  %14435 = vmatmul.mubr.msk.f32.gmra.mrb[52].mxu1 %vm403_vm3, %v19949_v22  ;;  %v18031_v21 = vld [vmem:[%s15933_s8 + $0xd8] sm:$0xff] }
 0x20a   : > { %13709 = vmatprep.mubr.msk.f32.mxu0 %vm403_vm3, %v19950_v24  ;;  %14437 = vmatprep.mubr.msk.f32.mxu1 %vm403_vm3, %v19951_v25  ;;  %v18034_v22 = vld [vmem:[%s15938_s11 + $0xd8] sm:$0xff]  ;;  %v18037_v24 = vld [vmem:[%s15933_s8 + $0xe0] sm:$0xff] }
 0x20b   : > { %v18040_v25 = vld [vmem:[%s15938_s11 + $0xe0] sm:$0xff] }
 0x20d   : > { %13710 = vmatmul.mubr.msk.f32.gmra.mrb[54].mxu0 %vm403_vm3, %v19952_v26  ;;  %14438 = vmatmul.mubr.msk.f32.gmra.mrb[54].mxu1 %vm403_vm3, %v19953_v27  ;;  %v18051_v26 = vld [vmem:[%s15933_s8 + $0xe8] sm:$0xff] }
 0x20e   : > { %13712 = vmatprep.mubr.msk.f32.mxu0 %vm403_vm3, %v19954_v30  ;;  %14440 = vmatprep.mubr.msk.f32.mxu1 %vm403_vm3, %v19955_v29  ;;  %v18054_v27 = vld [vmem:[%s15938_s11 + $0xe8] sm:$0xff]  ;;  %v18057_v30 = vld [vmem:[%s15933_s8 + $0xf0] sm:$0xff] }
 0x20f   : > { %v18060_v29 = vld [vmem:[%s15938_s11 + $0xf0] sm:$0xff] }
 0x211   : > { %13713 = vmatmul.mubr.msk.f32.gmra.mrb[56].mxu0 %vm403_vm3, %v17483_v32  ;;  %14441 = vmatmul.mubr.msk.f32.gmra.mrb[56].mxu1 %vm403_vm3, %v17486_v31  ;;  %v19960_v32 = vld [vmem:[#allocation69_spill] sm:$0xff] }
 0x212   : > { %13715 = vmatprep.mubr.msk.f32.mxu0 %vm403_vm3, %v19956_v33  ;;  %14443 = vmatprep.mubr.msk.f32.mxu1 %vm403_vm3, %v19957_v34  ;;  %v17803_v31 = vld [vmem:[%s15933_s8 + $0x220] sm:$0xff]  ;;  %v18071_v33 = vld [vmem:[%s15933_s8 + $0xf8] sm:$0xff] }
 0x213   : > { %v18074_v34 = vld [vmem:[%s15938_s11 + $0xf8] sm:$0xff] }
 0x215   : > { %13716 = vmatmul.mubr.msk.f32.gmra.mrb[58].mxu0 %vm403_vm3, %v17503_v23  ;;  %14444 = vmatmul.mubr.msk.f32.gmra.mrb[58].mxu1 %vm403_vm3, %v19958_v35  ;;  %v17817_v23 = vld [vmem:[%s15933_s8 + $0x228] sm:$0xff]  ;;  %v18077_v35 = vld [vmem:[%s15933_s8 + $0x100] sm:$0xff] }
 0x216   : > { %13718 = vmatprep.mubr.msk.f32.mxu0 %vm403_vm3, %v19959_v36  ;;  %14446 = vmatprep.mubr.msk.f32.mxu1 %vm403_vm3, %v19960_v32  ;;  %v18080_v36 = vld [vmem:[%s15938_s11 + $0x100] sm:$0xff]  ;;  %v18091_v32 = vld [vmem:[%s15933_s8 + $0x108] sm:$0xff] }
 0x219   : > { %13719 = vmatmul.mubr.msk.f32.gmra.mrb[60].mxu0 %vm403_vm3, %v19961_v37  ;;  %14447 = vmatmul.mubr.msk.f32.gmra.mrb[60].mxu1 %vm403_vm3, %v19962_v38  ;;  %v18094_v37 = vld [vmem:[%s15938_s11 + $0x108] sm:$0xff]  ;;  %v18097_v38 = vld [vmem:[%s15933_s8 + $0x110] sm:$0xff] }
 0x21a   : > { %13721 = vmatprep.mubr.msk.f32.mxu0 %vm403_vm3, %v17803_v31  ;;  %14449 = vmatprep.mubr.msk.f32.mxu1 %vm403_vm3, %v17806_v5 }
 0x21d   : > { %13722 = vmatmul.mubr.msk.f32.gmra.mrb[62].mxu0 %vm403_vm3, %v17817_v23  ;;  %14450 = vmatmul.mubr.msk.f32.gmra.mrb[62].mxu1 %vm403_vm3, %v17820_v39 }
 0x21e   : > { %13732 = vmatprep.mubr.msk.f32.mxu0 %vm403_vm3, %v11110_v40  ;;  %14460 = vmatprep.mubr.msk.f32.mxu1 %vm403_vm3, %v11963_v41  ;;  %v18100_v40 = vld [vmem:[%s15938_s11 + $0x110] sm:$0xff]  ;;  %v18111_v41 = vld [vmem:[%s15933_s8 + $0x118] sm:$0xff] }
 0x21f   : > { %19963 = vst [vmem:[#allocation72_spill] sm:$0xff] %v18111_v41 }
 0x221   : > { %13733 = vmatmul.mubr.msk.f32.vlgmr.msra.gmra.mrb[0].mxu0 %vm403_vm3, %v11111_v44  ;;  %14461 = vmatmul.mubr.msk.f32.vlgmr.msra.gmra.mrb[0].mxu1 %vm403_vm3, %v11964_v45  ;;  %v18120_v44 = vld [vmem:[%s15938_s11 + $0x120] sm:$0xff]  ;;  %v18131_v45 = vld [vmem:[%s15933_s8 + $0x128] sm:$0xff] }
 0x222   : > { %14817 = vmatpush3.bf16.msra.mxu0 %v17562_v28  ;;  %14887 = vmatpush3.bf16.msra.mxu1 %v17562_v28  ;;  %v17874_v28 = vpack.c.bf16 %v11441_v50, %v11440_v49  ;;  %19966 = vst [vmem:[#allocation75_spill] sm:$0xff] %v18120_v44  ;;  %19967 = vst [vmem:[#allocation5_spill] sm:$0xff] %v18131_v45  ;;  %v18137_v49 = vld [vmem:[%s15933_s8 + $0x130] sm:$0xff] }
 0x223   : > { %13735 = vmatprep.mubr.msk.f32.mxu0 %vm403_vm3, %v17839_v46  ;;  %14463 = vmatprep.mubr.msk.f32.mxu1 %vm403_vm3, %v17842_v47  ;;  %19969 = vst [vmem:[#allocation7_spill] sm:$0xff] %v18137_v49  ;;  %v18140_v50 = vld [vmem:[%s15938_s11 + $0x130] sm:$0xff] }
 0x224   : > { %14820 = vmatprep.subr.msk.bf16.mxu0 %vm15915_vm2, %v14818_v48  ;;  %14890 = vmatprep.subr.msk.bf16.mxu1 %vm15915_vm2, %v14818_v48  ;;  %19970 = vst [vmem:[#allocation8_spill] sm:$0xff] %v18140_v50 }
 0x225   : > { %13736 = vmatmul.mubr.msk.f32.gmra.mrb[2].mxu0 %vm403_vm3, %v17855_v51  ;;  %14464 = vmatmul.mubr.msk.f32.gmra.mrb[2].mxu1 %vm403_vm3, %v17858_v52 }
 0x226   : > { %13738 = vmatprep.mubr.msk.f32.mxu0 %vm403_vm3, %v17865_v53  ;;  %14466 = vmatprep.mubr.msk.f32.mxu1 %vm403_vm3, %v17868_v54  ;;  %v20028_v6 = vld [vmem:[#allocation72_spill] sm:$0xff] }
 0x227   : > { %14823 = vmatpush3.bf16.msk.msra.mxu0 %vm15915_vm2, %v14818_v48  ;;  %14893 = vmatpush3.bf16.msk.msra.mxu1 %vm15915_vm2, %v14818_v48  ;;  %v18134_v48 = vld [vmem:[%s15938_s11 + $0x128] sm:$0xff] }
 0x228   : > { %14825 = vmatprep.subr.bf16.mxu0 %v17874_v28  ;;  %14895 = vmatprep.subr.bf16.mxu1 %v17874_v28  ;;  %19968 = vst [vmem:[#allocation6_spill] sm:$0xff] %v18134_v48 }
 0x229   : > { %13739 = vmatmul.mubr.msk.f32.gmra.mrb[4].mxu0 %vm403_vm3, %v17885_v55  ;;  %14467 = vmatmul.mubr.msk.f32.gmra.mrb[4].mxu1 %vm403_vm3, %v17888_v56 }
 0x22a   : > { %13741 = vmatprep.mubr.msk.f32.mxu0 %vm403_vm3, %v17891_v57  ;;  %14469 = vmatprep.mubr.msk.f32.mxu1 %vm403_vm3, %v17894_v58 }
 0x22d   : > { %13742 = vmatmul.mubr.msk.f32.gmra.mrb[6].mxu0 %vm403_vm3, %v17911_v61  ;;  %14470 = vmatmul.mubr.msk.f32.gmra.mrb[6].mxu1 %vm403_vm3, %v17914_v62 }
 0x22e   : > { %13744 = vmatprep.mubr.msk.f32.mxu0 %vm403_vm3, %v17917_v63  ;;  %14472 = vmatprep.mubr.msk.f32.mxu1 %vm403_vm3, %v17920_v0 }
 0x231   : > { %13745 = vmatmul.mubr.msk.f32.gmra.mrb[8].mxu0 %vm403_vm3, %v17931_v1  ;;  %14473 = vmatmul.mubr.msk.f32.gmra.mrb[8].mxu1 %vm403_vm3, %v17934_v2 }
 0x232   : > { %13747 = vmatprep.mubr.msk.f32.mxu0 %vm403_vm3, %v17937_v3  ;;  %14475 = vmatprep.mubr.msk.f32.mxu1 %vm403_vm3, %v17940_v4 }
 0x235   : > { %13748 = vmatmul.mubr.msk.f32.gmra.mrb[10].mxu0 %vm403_vm3, %v17951_v7  ;;  %14476 = vmatmul.mubr.msk.f32.gmra.mrb[10].mxu1 %vm403_vm3, %v17954_v8 }
 0x236   : > { %13750 = vmatprep.mubr.msk.f32.mxu0 %vm403_vm3, %v17957_v13  ;;  %14478 = vmatprep.mubr.msk.f32.mxu1 %vm403_vm3, %v17960_v18 }
 0x239   : > { %13751 = vmatmul.mubr.msk.f32.gmra.mrb[12].mxu0 %vm403_vm3, %v17971_v59  ;;  %14479 = vmatmul.mubr.msk.f32.gmra.mrb[12].mxu1 %vm403_vm3, %v17974_v60 }
 0x23a   : > { %13753 = vmatprep.mubr.msk.f32.mxu0 %vm403_vm3, %v17977_v9  ;;  %14481 = vmatprep.mubr.msk.f32.mxu1 %vm403_vm3, %v17980_v10 }
 0x23d   : > { %13754 = vmatmul.mubr.msk.f32.gmra.mrb[14].mxu0 %vm403_vm3, %v17991_v11  ;;  %14482 = vmatmul.mubr.msk.f32.gmra.mrb[14].mxu1 %vm403_vm3, %v17994_v12 }
 0x23e   : > { %13756 = vmatprep.mubr.msk.f32.mxu0 %vm403_vm3, %v17997_v14  ;;  %14484 = vmatprep.mubr.msk.f32.mxu1 %vm403_vm3, %v18000_v15 }
 0x241   : > { %13757 = vmatmul.mubr.msk.f32.gmra.mrb[16].mxu0 %vm403_vm3, %v18011_v16  ;;  %14485 = vmatmul.mubr.msk.f32.gmra.mrb[16].mxu1 %vm403_vm3, %v18014_v17 }
 0x242   : > { %13759 = vmatprep.mubr.msk.f32.mxu0 %vm403_vm3, %v18017_v19  ;;  %14487 = vmatprep.mubr.msk.f32.mxu1 %vm403_vm3, %v18020_v20 }
 0x245   : > { %13760 = vmatmul.mubr.msk.f32.gmra.mrb[18].mxu0 %vm403_vm3, %v18031_v21  ;;  %14488 = vmatmul.mubr.msk.f32.gmra.mrb[18].mxu1 %vm403_vm3, %v18034_v22 }
 0x246   : > { %13762 = vmatprep.mubr.msk.f32.mxu0 %vm403_vm3, %v18037_v24  ;;  %14490 = vmatprep.mubr.msk.f32.mxu1 %vm403_vm3, %v18040_v25 }
 0x249   : > { %13763 = vmatmul.mubr.msk.f32.gmra.mrb[20].mxu0 %vm403_vm3, %v18051_v26  ;;  %14491 = vmatmul.mubr.msk.f32.gmra.mrb[20].mxu1 %vm403_vm3, %v18054_v27 }
 0x24a   : > { %13765 = vmatprep.mubr.msk.f32.mxu0 %vm403_vm3, %v18057_v30  ;;  %14493 = vmatprep.mubr.msk.f32.mxu1 %vm403_vm3, %v18060_v29 }
 0x24d   : > { %13766 = vmatmul.mubr.msk.f32.gmra.mrb[22].mxu0 %vm403_vm3, %v18071_v33  ;;  %14494 = vmatmul.mubr.msk.f32.gmra.mrb[22].mxu1 %vm403_vm3, %v18074_v34 }
 0x24e   : > { %13768 = vmatprep.mubr.msk.f32.mxu0 %vm403_vm3, %v18077_v35  ;;  %14496 = vmatprep.mubr.msk.f32.mxu1 %vm403_vm3, %v18080_v36 }
 0x251   : > { %13769 = vmatmul.mubr.msk.f32.gmra.mrb[24].mxu0 %vm403_vm3, %v18091_v32  ;;  %14497 = vmatmul.mubr.msk.f32.gmra.mrb[24].mxu1 %vm403_vm3, %v18094_v37 }
 0x252   : > { %13771 = vmatprep.mubr.msk.f32.mxu0 %vm403_vm3, %v18097_v38  ;;  %14499 = vmatprep.mubr.msk.f32.mxu1 %vm403_vm3, %v18100_v40 }
 0x255   : > { %13772 = vmatmul.mubr.msk.f32.gmra.mrb[26].mxu0 %vm403_vm3, %v18111_v41  ;;  %14500 = vmatmul.mubr.msk.f32.gmra.mrb[26].mxu1 %vm403_vm3, %v18114_v42  ;;  %v18157_v42 = vld [vmem:[%s15933_s8 + $0x140] sm:$0xff] }
 0x256   : > { %13774 = vmatprep.mubr.msk.f32.mxu0 %vm403_vm3, %v18117_v43  ;;  %14502 = vmatprep.mubr.msk.f32.mxu1 %vm403_vm3, %v18120_v44  ;;  %v18151_v44 = vld [vmem:[%s15933_s8 + $0x138] sm:$0xff]  ;;  %19973 = vst [vmem:[#allocation11_spill] sm:$0xff] %v18157_v42  ;;  %v18160_v41 = vld [vmem:[%s15938_s11 + $0x140] sm:$0xff] }
 0x257   : > { %19971 = vst [vmem:[#allocation9_spill] sm:$0xff] %v18151_v44  ;;  %v18154_v43 = vld [vmem:[%s15938_s11 + $0x138] sm:$0xff]  ;;  %19974 = vst [vmem:[#allocation12_spill] sm:$0xff] %v18160_v41 }
 0x258   : > { %19972 = vst [vmem:[#allocation10_spill] sm:$0xff] %v18154_v43 }
 0x259   : > { %13775 = vmatmul.mubr.msk.f32.gmra.mrb[28].mxu0 %vm403_vm3, %v18131_v45  ;;  %14503 = vmatmul.mubr.msk.f32.gmra.mrb[28].mxu1 %vm403_vm3, %v18134_v48  ;;  %v18177_v48 = vld [vmem:[%s15933_s8 + $0x150] sm:$0xff] }
 0x25a   : > { %13777 = vmatprep.mubr.msk.f32.mxu0 %vm403_vm3, %v18137_v49  ;;  %14505 = vmatprep.mubr.msk.f32.mxu1 %vm403_vm3, %v18140_v50  ;;  %v18171_v50 = vld [vmem:[%s15933_s8 + $0x148] sm:$0xff]  ;;  %19977 = vst [vmem:[#allocation15_spill] sm:$0xff] %v18177_v48  ;;  %v18180_v45 = vld [vmem:[%s15938_s11 + $0x150] sm:$0xff] }
 0x25b   : > { %19975 = vst [vmem:[#allocation13_spill] sm:$0xff] %v18171_v50  ;;  %v18174_v49 = vld [vmem:[%s15938_s11 + $0x148] sm:$0xff]  ;;  %19978 = vst [vmem:[#allocation16_spill] sm:$0xff] %v18180_v45 }
 0x25c   : > { %19976 = vst [vmem:[#allocation14_spill] sm:$0xff] %v18174_v49 }
 0x25d   : > { %13778 = vmatmul.mubr.msk.f32.gmra.mrb[30].mxu0 %vm403_vm3, %v18151_v44  ;;  %14506 = vmatmul.mubr.msk.f32.gmra.mrb[30].mxu1 %vm403_vm3, %v18154_v43  ;;  %v18197_v43 = vld [vmem:[%s15933_s8 + $0x160] sm:$0xff] }
 0x25e   : > { %13780 = vmatprep.mubr.msk.f32.mxu0 %vm403_vm3, %v18157_v42  ;;  %14508 = vmatprep.mubr.msk.f32.mxu1 %vm403_vm3, %v18160_v41  ;;  %v18191_v41 = vld [vmem:[%s15933_s8 + $0x158] sm:$0xff]  ;;  %19981 = vst [vmem:[#allocation19_spill] sm:$0xff] %v18197_v43  ;;  %v18200_v44 = vld [vmem:[%s15938_s11 + $0x160] sm:$0xff] }
 0x25f   : > { %19979 = vst [vmem:[#allocation17_spill] sm:$0xff] %v18191_v41  ;;  %v18194_v42 = vld [vmem:[%s15938_s11 + $0x158] sm:$0xff]  ;;  %19982 = vst [vmem:[#allocation20_spill] sm:$0xff] %v18200_v44 }
 0x260   : > { %19980 = vst [vmem:[#allocation18_spill] sm:$0xff] %v18194_v42 }
 0x261   : > { %13781 = vmatmul.mubr.msk.f32.gmra.mrb[32].mxu0 %vm403_vm3, %v18171_v50  ;;  %14509 = vmatmul.mubr.msk.f32.gmra.mrb[32].mxu1 %vm403_vm3, %v18174_v49  ;;  %v18217_v49 = vld [vmem:[%s15933_s8 + $0x170] sm:$0xff] }
 0x262   : > { %13783 = vmatprep.mubr.msk.f32.mxu0 %vm403_vm3, %v18177_v48  ;;  %14511 = vmatprep.mubr.msk.f32.mxu1 %vm403_vm3, %v18180_v45  ;;  %v18211_v45 = vld [vmem:[%s15933_s8 + $0x168] sm:$0xff]  ;;  %19985 = vst [vmem:[#allocation23_spill] sm:$0xff] %v18217_v49  ;;  %v18220_v50 = vld [vmem:[%s15938_s11 + $0x170] sm:$0xff] }
 0x263   : > { %19983 = vst [vmem:[#allocation21_spill] sm:$0xff] %v18211_v45  ;;  %v18214_v48 = vld [vmem:[%s15938_s11 + $0x168] sm:$0xff]  ;;  %19986 = vst [vmem:[#allocation24_spill] sm:$0xff] %v18220_v50 }
 0x264   : > { %19984 = vst [vmem:[#allocation22_spill] sm:$0xff] %v18214_v48 }
 0x265   : > { %13784 = vmatmul.mubr.msk.f32.gmra.mrb[34].mxu0 %vm403_vm3, %v18191_v41  ;;  %14512 = vmatmul.mubr.msk.f32.gmra.mrb[34].mxu1 %vm403_vm3, %v18194_v42  ;;  %v18237_v42 = vld [vmem:[%s15933_s8 + $0x180] sm:$0xff] }
 0x266   : > { %13786 = vmatprep.mubr.msk.f32.mxu0 %vm403_vm3, %v18197_v43  ;;  %14514 = vmatprep.mubr.msk.f32.mxu1 %vm403_vm3, %v18200_v44  ;;  %v18231_v44 = vld [vmem:[%s15933_s8 + $0x178] sm:$0xff]  ;;  %19989 = vst [vmem:[#allocation27_spill] sm:$0xff] %v18237_v42  ;;  %v18240_v41 = vld [vmem:[%s15938_s11 + $0x180] sm:$0xff] }
 0x267   : > { %19987 = vst [vmem:[#allocation25_spill] sm:$0xff] %v18231_v44  ;;  %v18234_v43 = vld [vmem:[%s15938_s11 + $0x178] sm:$0xff]  ;;  %19990 = vst [vmem:[#allocation28_spill] sm:$0xff] %v18240_v41 }
 0x268   : > { %19988 = vst [vmem:[#allocation26_spill] sm:$0xff] %v18234_v43 }
 0x269   : > { %13787 = vmatmul.mubr.msk.f32.gmra.mrb[36].mxu0 %vm403_vm3, %v18211_v45  ;;  %14515 = vmatmul.mubr.msk.f32.gmra.mrb[36].mxu1 %vm403_vm3, %v18214_v48  ;;  %v18257_v48 = vld [vmem:[%s15933_s8 + $0x190] sm:$0xff] }
 0x26a   : > { %13789 = vmatprep.mubr.msk.f32.mxu0 %vm403_vm3, %v18217_v49  ;;  %14517 = vmatprep.mubr.msk.f32.mxu1 %vm403_vm3, %v18220_v50  ;;  %v18251_v50 = vld [vmem:[%s15933_s8 + $0x188] sm:$0xff]  ;;  %19993 = vst [vmem:[#allocation31_spill] sm:$0xff] %v18257_v48  ;;  %v18260_v45 = vld [vmem:[%s15938_s11 + $0x190] sm:$0xff] }
 0x26b   : > { %19991 = vst [vmem:[#allocation29_spill] sm:$0xff] %v18251_v50  ;;  %v18254_v49 = vld [vmem:[%s15938_s11 + $0x188] sm:$0xff]  ;;  %19994 = vst [vmem:[#allocation32_spill] sm:$0xff] %v18260_v45 }
 0x26c   : > { %19992 = vst [vmem:[#allocation30_spill] sm:$0xff] %v18254_v49 }
 0x26d   : > { %13790 = vmatmul.mubr.msk.f32.gmra.mrb[38].mxu0 %vm403_vm3, %v18231_v44  ;;  %14518 = vmatmul.mubr.msk.f32.gmra.mrb[38].mxu1 %vm403_vm3, %v18234_v43  ;;  %v18277_v43 = vld [vmem:[%s15933_s8 + $0x1a0] sm:$0xff] }
 0x26e   : > { %13792 = vmatprep.mubr.msk.f32.mxu0 %vm403_vm3, %v18237_v42  ;;  %14520 = vmatprep.mubr.msk.f32.mxu1 %vm403_vm3, %v18240_v41  ;;  %v18271_v41 = vld [vmem:[%s15933_s8 + $0x198] sm:$0xff]  ;;  %19997 = vst [vmem:[#allocation35_spill] sm:$0xff] %v18277_v43  ;;  %v18280_v44 = vld [vmem:[%s15938_s11 + $0x1a0] sm:$0xff] }
 0x26f   : > { %19995 = vst [vmem:[#allocation33_spill] sm:$0xff] %v18271_v41  ;;  %v18274_v42 = vld [vmem:[%s15938_s11 + $0x198] sm:$0xff]  ;;  %19998 = vst [vmem:[#allocation36_spill] sm:$0xff] %v18280_v44 }
 0x270   : > { %19996 = vst [vmem:[#allocation34_spill] sm:$0xff] %v18274_v42 }
 0x271   : > { %13793 = vmatmul.mubr.msk.f32.gmra.mrb[40].mxu0 %vm403_vm3, %v18251_v50  ;;  %14521 = vmatmul.mubr.msk.f32.gmra.mrb[40].mxu1 %vm403_vm3, %v18254_v49  ;;  %v18297_v49 = vld [vmem:[%s15933_s8 + $0x1b0] sm:$0xff] }
 0x272   : > { %13795 = vmatprep.mubr.msk.f32.mxu0 %vm403_vm3, %v18257_v48  ;;  %14523 = vmatprep.mubr.msk.f32.mxu1 %vm403_vm3, %v18260_v45  ;;  %v18291_v45 = vld [vmem:[%s15933_s8 + $0x1a8] sm:$0xff]  ;;  %20001 = vst [vmem:[#allocation39_spill] sm:$0xff] %v18297_v49  ;;  %v18300_v50 = vld [vmem:[%s15938_s11 + $0x1b0] sm:$0xff] }
 0x273   : > { %19999 = vst [vmem:[#allocation37_spill] sm:$0xff] %v18291_v45  ;;  %v18294_v48 = vld [vmem:[%s15938_s11 + $0x1a8] sm:$0xff]  ;;  %20002 = vst [vmem:[#allocation40_spill] sm:$0xff] %v18300_v50 }
 0x274   : > { %20000 = vst [vmem:[#allocation38_spill] sm:$0xff] %v18294_v48 }
 0x275   : > { %13796 = vmatmul.mubr.msk.f32.gmra.mrb[42].mxu0 %vm403_vm3, %v18271_v41  ;;  %14524 = vmatmul.mubr.msk.f32.gmra.mrb[42].mxu1 %vm403_vm3, %v18274_v42  ;;  %v18317_v42 = vld [vmem:[%s15933_s8 + $0x1c0] sm:$0xff] }
 0x276   : > { %13798 = vmatprep.mubr.msk.f32.mxu0 %vm403_vm3, %v18277_v43  ;;  %14526 = vmatprep.mubr.msk.f32.mxu1 %vm403_vm3, %v18280_v44  ;;  %v18311_v44 = vld [vmem:[%s15933_s8 + $0x1b8] sm:$0xff]  ;;  %20005 = vst [vmem:[#allocation43_spill] sm:$0xff] %v18317_v42  ;;  %v18320_v41 = vld [vmem:[%s15938_s11 + $0x1c0] sm:$0xff] }
 0x277   : > { %20003 = vst [vmem:[#allocation41_spill] sm:$0xff] %v18311_v44  ;;  %v18314_v43 = vld [vmem:[%s15938_s11 + $0x1b8] sm:$0xff]  ;;  %20006 = vst [vmem:[#allocation44_spill] sm:$0xff] %v18320_v41 }
 0x278   : > { %20004 = vst [vmem:[#allocation42_spill] sm:$0xff] %v18314_v43 }
 0x279   : > { %13799 = vmatmul.mubr.msk.f32.gmra.mrb[44].mxu0 %vm403_vm3, %v18291_v45  ;;  %14527 = vmatmul.mubr.msk.f32.gmra.mrb[44].mxu1 %vm403_vm3, %v18294_v48  ;;  %v18337_v48 = vld [vmem:[%s15933_s8 + $0x1d0] sm:$0xff] }
 0x27a   : > { %13801 = vmatprep.mubr.msk.f32.mxu0 %vm403_vm3, %v18297_v49  ;;  %14529 = vmatprep.mubr.msk.f32.mxu1 %vm403_vm3, %v18300_v50  ;;  %v18331_v50 = vld [vmem:[%s15933_s8 + $0x1c8] sm:$0xff]  ;;  %20009 = vst [vmem:[#allocation47_spill] sm:$0xff] %v18337_v48  ;;  %v18340_v45 = vld [vmem:[%s15938_s11 + $0x1d0] sm:$0xff] }
 0x27b   : > { %20007 = vst [vmem:[#allocation45_spill] sm:$0xff] %v18331_v50  ;;  %v18334_v49 = vld [vmem:[%s15938_s11 + $0x1c8] sm:$0xff]  ;;  %20010 = vst [vmem:[#allocation48_spill] sm:$0xff] %v18340_v45 }
 0x27c   : > { %20008 = vst [vmem:[#allocation46_spill] sm:$0xff] %v18334_v49 }
 0x27d   : > { %13802 = vmatmul.mubr.msk.f32.gmra.mrb[46].mxu0 %vm403_vm3, %v18311_v44  ;;  %14530 = vmatmul.mubr.msk.f32.gmra.mrb[46].mxu1 %vm403_vm3, %v18314_v43  ;;  %v18357_v43 = vld [vmem:[%s15933_s8 + $0x1e0] sm:$0xff] }
 0x27e   : > { %13804 = vmatprep.mubr.msk.f32.mxu0 %vm403_vm3, %v18317_v42  ;;  %14532 = vmatprep.mubr.msk.f32.mxu1 %vm403_vm3, %v18320_v41  ;;  %v18351_v41 = vld [vmem:[%s15933_s8 + $0x1d8] sm:$0xff]  ;;  %20013 = vst [vmem:[#allocation51_spill] sm:$0xff] %v18357_v43  ;;  %v18360_v44 = vld [vmem:[%s15938_s11 + $0x1e0] sm:$0xff] }
 0x27f   : > { %20011 = vst [vmem:[#allocation49_spill] sm:$0xff] %v18351_v41  ;;  %v18354_v42 = vld [vmem:[%s15938_s11 + $0x1d8] sm:$0xff]  ;;  %20014 = vst [vmem:[#allocation52_spill] sm:$0xff] %v18360_v44 }
 0x280   : > { %20012 = vst [vmem:[#allocation50_spill] sm:$0xff] %v18354_v42 }
 0x281   : > { %13805 = vmatmul.mubr.msk.f32.gmra.mrb[48].mxu0 %vm403_vm3, %v18331_v50  ;;  %14533 = vmatmul.mubr.msk.f32.gmra.mrb[48].mxu1 %vm403_vm3, %v18334_v49  ;;  %v18377_v49 = vld [vmem:[%s15933_s8 + $0x1f0] sm:$0xff] }
 0x282   : > { %13807 = vmatprep.mubr.msk.f32.mxu0 %vm403_vm3, %v18337_v48  ;;  %14535 = vmatprep.mubr.msk.f32.mxu1 %vm403_vm3, %v18340_v45  ;;  %v18371_v45 = vld [vmem:[%s15933_s8 + $0x1e8] sm:$0xff]  ;;  %20017 = vst [vmem:[#allocation55_spill] sm:$0xff] %v18377_v49  ;;  %v18380_v50 = vld [vmem:[%s15938_s11 + $0x1f0] sm:$0xff] }
 0x283   : > { %20015 = vst [vmem:[#allocation53_spill] sm:$0xff] %v18371_v45  ;;  %v18374_v48 = vld [vmem:[%s15938_s11 + $0x1e8] sm:$0xff]  ;;  %20018 = vst [vmem:[#allocation56_spill] sm:$0xff] %v18380_v50 }
 0x284   : > { %20016 = vst [vmem:[#allocation54_spill] sm:$0xff] %v18374_v48 }
 0x285   : > { %13808 = vmatmul.mubr.msk.f32.gmra.mrb[50].mxu0 %vm403_vm3, %v18351_v41  ;;  %14536 = vmatmul.mubr.msk.f32.gmra.mrb[50].mxu1 %vm403_vm3, %v18354_v42  ;;  %v18397_v42 = vld [vmem:[%s15933_s8 + $0x200] sm:$0xff] }
 0x286   : > { %13810 = vmatprep.mubr.msk.f32.mxu0 %vm403_vm3, %v18357_v43  ;;  %14538 = vmatprep.mubr.msk.f32.mxu1 %vm403_vm3, %v18360_v44  ;;  %v18391_v44 = vld [vmem:[%s15933_s8 + $0x1f8] sm:$0xff]  ;;  %20019 = vst [vmem:[#allocation57_spill] sm:$0xff] %v18397_v42  ;;  %v18400_v41 = vld [vmem:[%s15938_s11 + $0x200] sm:$0xff] }
 0x287   : > { %v18394_v43 = vld [vmem:[%s15938_s11 + $0x1f8] sm:$0xff]  ;;  %20020 = vst [vmem:[#allocation58_spill] sm:$0xff] %v18400_v41 }
 0x289   : > { %13811 = vmatmul.mubr.msk.f32.gmra.mrb[52].mxu0 %vm403_vm3, %v18371_v45  ;;  %14539 = vmatmul.mubr.msk.f32.gmra.mrb[52].mxu1 %vm403_vm3, %v18374_v48  ;;  %v18417_v48 = vld [vmem:[%s15933_s8 + $0x210] sm:$0xff] }
 0x28a   : > { %13813 = vmatprep.mubr.msk.f32.mxu0 %vm403_vm3, %v18377_v49  ;;  %14541 = vmatprep.mubr.msk.f32.mxu1 %vm403_vm3, %v18380_v50  ;;  %v18411_v50 = vld [vmem:[%s15933_s8 + $0x208] sm:$0xff]  ;;  %20022 = vst [vmem:[#allocation60_spill] sm:$0xff] %v18417_v48  ;;  %v18420_v45 = vld [vmem:[%s15938_s11 + $0x210] sm:$0xff] }
 0x28b   : > { %v18414_v49 = vld [vmem:[%s15938_s11 + $0x208] sm:$0xff] }
 0x28c   : > { %20021 = vst [vmem:[#allocation59_spill] sm:$0xff] %v18414_v49 }
 0x28d   : > { %13814 = vmatmul.mubr.msk.f32.gmra.mrb[54].mxu0 %vm403_vm3, %v18391_v44  ;;  %14542 = vmatmul.mubr.msk.f32.gmra.mrb[54].mxu1 %vm403_vm3, %v18394_v43 }
 0x28e   : > { %13816 = vmatprep.mubr.msk.f32.mxu0 %vm403_vm3, %v18397_v42  ;;  %14544 = vmatprep.mubr.msk.f32.mxu1 %vm403_vm3, %v18400_v41  ;;  %v18431_v41 = vld [vmem:[%s15933_s8 + $0x218] sm:$0xff] }
 0x28f   : > { %v18434_v42 = vld [vmem:[%s15938_s11 + $0x218] sm:$0xff] }
 0x290   : > { %20023 = vst [vmem:[#allocation61_spill] sm:$0xff] %v18434_v42 }
 0x291   : > { %13817 = vmatmul.mubr.msk.f32.gmra.mrb[56].mxu0 %vm403_vm3, %v18411_v50  ;;  %14545 = vmatmul.mubr.msk.f32.gmra.mrb[56].mxu1 %vm403_vm3, %v18414_v49  ;;  %v18448_v49 = vld [vmem:[%s15938_s11 + $0x230] sm:$0xff] }
 0x292   : > { %13819 = vmatprep.mubr.msk.f32.mxu0 %vm403_vm3, %v18417_v48  ;;  %14547 = vmatprep.mubr.msk.f32.mxu1 %vm403_vm3, %v18420_v45  ;;  %v18445_v48 = vld [vmem:[%s15933_s8 + $0x230] sm:$0xff]  ;;  %20025 = vst [vmem:[#allocation63_spill] sm:$0xff] %v18448_v49 }
 0x293   : > { %20024 = vst [vmem:[#allocation62_spill] sm:$0xff] %v18445_v48 }
 0x295   : > { %13820 = vmatmul.mubr.msk.f32.gmra.mrb[58].mxu0 %vm403_vm3, %v18431_v41  ;;  %14548 = vmatmul.mubr.msk.f32.gmra.mrb[58].mxu1 %vm403_vm3, %v18434_v42  ;;  %v18462_v42 = vld [vmem:[%s15938_s11 + $0x238] sm:$0xff] }
 0x296   : > { %13822 = vmatprep.mubr.msk.f32.mxu0 %vm403_vm3, %v17803_v31  ;;  %14550 = vmatprep.mubr.msk.f32.mxu1 %vm403_vm3, %v17806_v5  ;;  %v18459_v31 = vld [vmem:[%s15933_s8 + $0x238] sm:$0xff]  ;;  %20027 = vst [vmem:[#allocation65_spill] sm:$0xff] %v18462_v42  ;;  %v11442_v5 = vld [vmem:[%s19424_s2 + $0xd0] sm:$0xff] }
 0x297   : > { %20026 = vst [vmem:[#allocation64_spill] sm:$0xff] %v18459_v31 }
 0x299   : > { %13823 = vmatmul.mubr.msk.f32.gmra.mrb[60].mxu0 %vm403_vm3, %v17817_v23  ;;  %14551 = vmatmul.mubr.msk.f32.gmra.mrb[60].mxu1 %vm403_vm3, %v17820_v39  ;;  %v11443_v23 = vld [vmem:[%s19424_s2 + $0xd8] sm:$0xf] }
 0x29a   : > { %13825 = vmatprep.mubr.msk.f32.mxu0 %vm403_vm3, %v18445_v48  ;;  %14553 = vmatprep.mubr.msk.f32.mxu1 %vm403_vm3, %v18448_v49  ;;  %v14828_v39 = vpack.c.bf16 %v11443_v23, %v11442_v5  ;;  %v20080_v5 = vld [vmem:[#allocation53_spill] sm:$0xff]  ;;  %v20081_v23 = vld [vmem:[#allocation54_spill] sm:$0xff] }
 0x29d   : > { %13826 = vmatmul.mubr.msk.f32.gmra.mrb[62].mxu0 %vm403_vm3, %v18459_v31  ;;  %14554 = vmatmul.mubr.msk.f32.gmra.mrb[62].mxu1 %vm403_vm3, %v18462_v42 }
 0x29e   : > { %13836 = vmatprep.mubr.msk.f32.mxu0 %vm403_vm3, %v17839_v46  ;;  %14564 = vmatprep.mubr.msk.f32.mxu1 %vm403_vm3, %v17842_v47  ;;  %v20029_v46 = vld [vmem:[#allocation73_spill] sm:$0xff]  ;;  %v20030_v47 = vld [vmem:[#allocation74_spill] sm:$0xff] }
 0x2a1   : > { %13837 = vmatmul.mubr.msk.f32.vlgmr.msra.gmra.mrb[0].mxu0 %vm403_vm3, %v17855_v51  ;;  %14565 = vmatmul.mubr.msk.f32.vlgmr.msra.gmra.mrb[0].mxu1 %vm403_vm3, %v17858_v52  ;;  %v20031_v51 = vld [vmem:[#allocation75_spill] sm:$0xff]  ;;  %v20032_v52 = vld [vmem:[#allocation5_spill] sm:$0xff] }
 0x2a2   : > { %14827 = vmatpush3.bf16.msra.mxu0 %v17874_v28  ;;  %14897 = vmatpush3.bf16.msra.mxu1 %v17874_v28  ;;  %v20035_v28 = vld [vmem:[#allocation8_spill] sm:$0xff] }
 0x2a3   : > { %13839 = vmatprep.mubr.msk.f32.mxu0 %vm403_vm3, %v17865_v53  ;;  %14567 = vmatprep.mubr.msk.f32.mxu1 %vm403_vm3, %v17868_v54  ;;  %v20033_v53 = vld [vmem:[#allocation6_spill] sm:$0xff]  ;;  %v20034_v54 = vld [vmem:[#allocation7_spill] sm:$0xff] }
 0x2a4   : > { %14830 = vmatprep.subr.msk.bf16.mxu0 %vm15915_vm2, %v14828_v39  ;;  %14900 = vmatprep.subr.msk.bf16.mxu1 %vm15915_vm2, %v14828_v39 }
 0x2a5   : > { %13840 = vmatmul.mubr.msk.f32.gmra.mrb[2].mxu0 %vm403_vm3, %v17885_v55  ;;  %14568 = vmatmul.mubr.msk.f32.gmra.mrb[2].mxu1 %vm403_vm3, %v17888_v56  ;;  %v20036_v55 = vld [vmem:[#allocation9_spill] sm:$0xff]  ;;  %v20037_v56 = vld [vmem:[#allocation10_spill] sm:$0xff] }
 0x2a6   : > { %13842 = vmatprep.mubr.msk.f32.mxu0 %vm403_vm3, %v17891_v57  ;;  %14570 = vmatprep.mubr.msk.f32.mxu1 %vm403_vm3, %v17894_v58  ;;  %v20038_v57 = vld [vmem:[#allocation11_spill] sm:$0xff]  ;;  %v20039_v58 = vld [vmem:[#allocation12_spill] sm:$0xff] }
 0x2a7   : > { %14833 = vmatpush3.bf16.msk.msra.mxu0 %vm15915_vm2, %v14828_v39  ;;  %14903 = vmatpush3.bf16.msk.msra.mxu1 %vm15915_vm2, %v14828_v39  ;;  %v20082_v39 = vld [vmem:[#allocation55_spill] sm:$0xff] }
 0x2a9   : > { %13843 = vmatmul.mubr.msk.f32.gmra.mrb[4].mxu0 %vm403_vm3, %v17911_v61  ;;  %14571 = vmatmul.mubr.msk.f32.gmra.mrb[4].mxu1 %vm403_vm3, %v17914_v62  ;;  %v20040_v61 = vld [vmem:[#allocation13_spill] sm:$0xff]  ;;  %v20041_v62 = vld [vmem:[#allocation14_spill] sm:$0xff] }
 0x2aa   : > { %13845 = vmatprep.mubr.msk.f32.mxu0 %vm403_vm3, %v17917_v63  ;;  %14573 = vmatprep.mubr.msk.f32.mxu1 %vm403_vm3, %v17920_v0  ;;  %v20042_v63 = vld [vmem:[#allocation15_spill] sm:$0xff]  ;;  %v20043_v0 = vld [vmem:[#allocation16_spill] sm:$0xff] }
 0x2ad   : > { %13846 = vmatmul.mubr.msk.f32.gmra.mrb[6].mxu0 %vm403_vm3, %v17931_v1  ;;  %14574 = vmatmul.mubr.msk.f32.gmra.mrb[6].mxu1 %vm403_vm3, %v17934_v2  ;;  %v20044_v1 = vld [vmem:[#allocation17_spill] sm:$0xff]  ;;  %v20045_v2 = vld [vmem:[#allocation18_spill] sm:$0xff] }
 0x2ae   : > { %13848 = vmatprep.mubr.msk.f32.mxu0 %vm403_vm3, %v17937_v3  ;;  %14576 = vmatprep.mubr.msk.f32.mxu1 %vm403_vm3, %v17940_v4  ;;  %v20046_v3 = vld [vmem:[#allocation19_spill] sm:$0xff]  ;;  %v20047_v4 = vld [vmem:[#allocation20_spill] sm:$0xff] }
 0x2b1   : > { %13849 = vmatmul.mubr.msk.f32.gmra.mrb[8].mxu0 %vm403_vm3, %v17951_v7  ;;  %14577 = vmatmul.mubr.msk.f32.gmra.mrb[8].mxu1 %vm403_vm3, %v17954_v8  ;;  %v20048_v7 = vld [vmem:[#allocation21_spill] sm:$0xff]  ;;  %v20049_v8 = vld [vmem:[#allocation22_spill] sm:$0xff] }
 0x2b2   : > { %13851 = vmatprep.mubr.msk.f32.mxu0 %vm403_vm3, %v17957_v13  ;;  %14579 = vmatprep.mubr.msk.f32.mxu1 %vm403_vm3, %v17960_v18  ;;  %v20050_v13 = vld [vmem:[#allocation23_spill] sm:$0xff]  ;;  %v20051_v18 = vld [vmem:[#allocation24_spill] sm:$0xff] }
 0x2b5   : > { %13852 = vmatmul.mubr.msk.f32.gmra.mrb[10].mxu0 %vm403_vm3, %v17971_v59  ;;  %14580 = vmatmul.mubr.msk.f32.gmra.mrb[10].mxu1 %vm403_vm3, %v17974_v60  ;;  %v20052_v59 = vld [vmem:[#allocation25_spill] sm:$0xff]  ;;  %v20053_v60 = vld [vmem:[#allocation26_spill] sm:$0xff] }
 0x2b6   : > { %13854 = vmatprep.mubr.msk.f32.mxu0 %vm403_vm3, %v17977_v9  ;;  %14582 = vmatprep.mubr.msk.f32.mxu1 %vm403_vm3, %v17980_v10  ;;  %v20054_v9 = vld [vmem:[#allocation27_spill] sm:$0xff]  ;;  %v20055_v10 = vld [vmem:[#allocation28_spill] sm:$0xff] }
 0x2b9   : > { %13855 = vmatmul.mubr.msk.f32.gmra.mrb[12].mxu0 %vm403_vm3, %v17991_v11  ;;  %14583 = vmatmul.mubr.msk.f32.gmra.mrb[12].mxu1 %vm403_vm3, %v17994_v12  ;;  %v20056_v11 = vld [vmem:[#allocation29_spill] sm:$0xff]  ;;  %v20057_v12 = vld [vmem:[#allocation30_spill] sm:$0xff] }
 0x2ba   : > { %13857 = vmatprep.mubr.msk.f32.mxu0 %vm403_vm3, %v17997_v14  ;;  %14585 = vmatprep.mubr.msk.f32.mxu1 %vm403_vm3, %v18000_v15  ;;  %v20058_v14 = vld [vmem:[#allocation31_spill] sm:$0xff]  ;;  %v20059_v15 = vld [vmem:[#allocation32_spill] sm:$0xff] }
 0x2bd   : > { %13858 = vmatmul.mubr.msk.f32.gmra.mrb[14].mxu0 %vm403_vm3, %v18011_v16  ;;  %14586 = vmatmul.mubr.msk.f32.gmra.mrb[14].mxu1 %vm403_vm3, %v18014_v17  ;;  %v20060_v16 = vld [vmem:[#allocation33_spill] sm:$0xff]  ;;  %v20061_v17 = vld [vmem:[#allocation34_spill] sm:$0xff] }
 0x2be   : > { %13860 = vmatprep.mubr.msk.f32.mxu0 %vm403_vm3, %v18017_v19  ;;  %14588 = vmatprep.mubr.msk.f32.mxu1 %vm403_vm3, %v18020_v20  ;;  %v20062_v19 = vld [vmem:[#allocation35_spill] sm:$0xff]  ;;  %v20063_v20 = vld [vmem:[#allocation36_spill] sm:$0xff] }
 0x2c1   : > { %13861 = vmatmul.mubr.msk.f32.gmra.mrb[16].mxu0 %vm403_vm3, %v18031_v21  ;;  %14589 = vmatmul.mubr.msk.f32.gmra.mrb[16].mxu1 %vm403_vm3, %v18034_v22  ;;  %v20064_v21 = vld [vmem:[#allocation37_spill] sm:$0xff]  ;;  %v20065_v22 = vld [vmem:[#allocation38_spill] sm:$0xff] }
 0x2c2   : > { %13863 = vmatprep.mubr.msk.f32.mxu0 %vm403_vm3, %v18037_v24  ;;  %14591 = vmatprep.mubr.msk.f32.mxu1 %vm403_vm3, %v18040_v25  ;;  %v20066_v24 = vld [vmem:[#allocation39_spill] sm:$0xff]  ;;  %v20067_v25 = vld [vmem:[#allocation40_spill] sm:$0xff] }
 0x2c5   : > { %13864 = vmatmul.mubr.msk.f32.gmra.mrb[18].mxu0 %vm403_vm3, %v18051_v26  ;;  %14592 = vmatmul.mubr.msk.f32.gmra.mrb[18].mxu1 %vm403_vm3, %v18054_v27  ;;  %v20068_v26 = vld [vmem:[#allocation41_spill] sm:$0xff]  ;;  %v20069_v27 = vld [vmem:[#allocation42_spill] sm:$0xff] }
 0x2c6   : > { %13866 = vmatprep.mubr.msk.f32.mxu0 %vm403_vm3, %v18057_v30  ;;  %14594 = vmatprep.mubr.msk.f32.mxu1 %vm403_vm3, %v18060_v29  ;;  %v20070_v30 = vld [vmem:[#allocation43_spill] sm:$0xff]  ;;  %v20071_v29 = vld [vmem:[#allocation44_spill] sm:$0xff] }
 0x2c9   : > { %13867 = vmatmul.mubr.msk.f32.gmra.mrb[20].mxu0 %vm403_vm3, %v18071_v33  ;;  %14595 = vmatmul.mubr.msk.f32.gmra.mrb[20].mxu1 %vm403_vm3, %v18074_v34  ;;  %v20072_v33 = vld [vmem:[#allocation45_spill] sm:$0xff]  ;;  %v20073_v34 = vld [vmem:[#allocation46_spill] sm:$0xff] }
 0x2ca   : > { %13869 = vmatprep.mubr.msk.f32.mxu0 %vm403_vm3, %v18077_v35  ;;  %14597 = vmatprep.mubr.msk.f32.mxu1 %vm403_vm3, %v18080_v36  ;;  %v20074_v35 = vld [vmem:[#allocation47_spill] sm:$0xff]  ;;  %v20075_v36 = vld [vmem:[#allocation48_spill] sm:$0xff] }
 0x2cd   : > { %13870 = vmatmul.mubr.msk.f32.gmra.mrb[22].mxu0 %vm403_vm3, %v18091_v32  ;;  %14598 = vmatmul.mubr.msk.f32.gmra.mrb[22].mxu1 %vm403_vm3, %v18094_v37  ;;  %v20076_v32 = vld [vmem:[#allocation49_spill] sm:$0xff]  ;;  %v20077_v37 = vld [vmem:[#allocation50_spill] sm:$0xff] }
 0x2ce   : > { %13872 = vmatprep.mubr.msk.f32.mxu0 %vm403_vm3, %v18097_v38  ;;  %14600 = vmatprep.mubr.msk.f32.mxu1 %vm403_vm3, %v18100_v40  ;;  %v20078_v38 = vld [vmem:[#allocation51_spill] sm:$0xff]  ;;  %v20079_v40 = vld [vmem:[#allocation52_spill] sm:$0xff] }
 0x2d1   : > { %13873 = vmatmul.mubr.msk.f32.gmra.mrb[24].mxu0 %vm403_vm3, %v20028_v6  ;;  %14601 = vmatmul.mubr.msk.f32.gmra.mrb[24].mxu1 %vm403_vm3, %v20029_v46  ;;  %v20083_v6 = vld [vmem:[#allocation56_spill] sm:$0xff]  ;;  %v20084_v46 = vld [vmem:[#allocation57_spill] sm:$0xff] }
 0x2d2   : > { %13875 = vmatprep.mubr.msk.f32.mxu0 %vm403_vm3, %v20030_v47  ;;  %14603 = vmatprep.mubr.msk.f32.mxu1 %vm403_vm3, %v20031_v51  ;;  %v20085_v47 = vld [vmem:[#allocation58_spill] sm:$0xff]  ;;  %v20086_v51 = vld [vmem:[#allocation59_spill] sm:$0xff] }
 0x2d5   : > { %13876 = vmatmul.mubr.msk.f32.gmra.mrb[26].mxu0 %vm403_vm3, %v20032_v52  ;;  %14604 = vmatmul.mubr.msk.f32.gmra.mrb[26].mxu1 %vm403_vm3, %v20033_v53  ;;  %v20087_v52 = vld [vmem:[#allocation60_spill] sm:$0xff]  ;;  %v18713_v53 = vld [vmem:[%s15933_s8 + $0x220] sm:$0xff] }
 0x2d6   : > { %13878 = vmatprep.mubr.msk.f32.mxu0 %vm403_vm3, %v20034_v54  ;;  %14606 = vmatprep.mubr.msk.f32.mxu1 %vm403_vm3, %v20035_v28  ;;  %v18716_v54 = vld [vmem:[%s15938_s11 + $0x220] sm:$0xff] }
 0x2d7   : > { %v20088_v28 = vld [vmem:[#allocation61_spill] sm:$0xff] }
 0x2d9   : > { %13879 = vmatmul.mubr.msk.f32.gmra.mrb[28].mxu0 %vm403_vm3, %v20036_v55  ;;  %14607 = vmatmul.mubr.msk.f32.gmra.mrb[28].mxu1 %vm403_vm3, %v20037_v56  ;;  %v18727_v55 = vld [vmem:[%s15933_s8 + $0x228] sm:$0xff] }
 0x2da   : > { %13881 = vmatprep.mubr.msk.f32.mxu0 %vm403_vm3, %v20038_v57  ;;  %14609 = vmatprep.mubr.msk.f32.mxu1 %vm403_vm3, %v20039_v58  ;;  %v18730_v56 = vld [vmem:[%s15938_s11 + $0x228] sm:$0xff]  ;;  %v18741_v57 = vld [vmem:[%s15933_s8 + $0x240] sm:$0xff] }
 0x2db   : > { %20089 = vst [vmem:[#allocation66_spill] sm:$0xff] %v18730_v56  ;;  %20090 = vst [vmem:[#allocation67_spill] sm:$0xff] %v18741_v57  ;;  %v18744_v58 = vld [vmem:[%s15938_s11 + $0x240] sm:$0xff] }
 0x2dc   : > { %20091 = vst [vmem:[#allocation68_spill] sm:$0xff] %v18744_v58 }
 0x2dd   : > { %13882 = vmatmul.mubr.msk.f32.gmra.mrb[30].mxu0 %vm403_vm3, %v20040_v61  ;;  %14610 = vmatmul.mubr.msk.f32.gmra.mrb[30].mxu1 %vm403_vm3, %v20041_v62  ;;  %v18755_v61 = vld [vmem:[%s15933_s8 + $0x248] sm:$0xff] }
 0x2de   : > { %13884 = vmatprep.mubr.msk.f32.mxu0 %vm403_vm3, %v20042_v63  ;;  %14612 = vmatprep.mubr.msk.f32.mxu1 %vm403_vm3, %v20043_v0  ;;  %20092 = vst [vmem:[#allocation69_spill] sm:$0xff] %v18755_v61  ;;  %v18758_v62 = vld [vmem:[%s15938_s11 + $0x248] sm:$0xff] }
 0x2df   : > { %20093 = vst [vmem:[#allocation70_spill] sm:$0xff] %v18758_v62 }
 0x2e1   : > { %13885 = vmatmul.mubr.msk.f32.gmra.mrb[32].mxu0 %vm403_vm3, %v20044_v1  ;;  %14613 = vmatmul.mubr.msk.f32.gmra.mrb[32].mxu1 %vm403_vm3, %v20045_v2 }
 0x2e2   : > { %13887 = vmatprep.mubr.msk.f32.mxu0 %vm403_vm3, %v20046_v3  ;;  %14615 = vmatprep.mubr.msk.f32.mxu1 %vm403_vm3, %v20047_v4 }
 0x2e5   : > { %13888 = vmatmul.mubr.msk.f32.gmra.mrb[34].mxu0 %vm403_vm3, %v20048_v7  ;;  %14616 = vmatmul.mubr.msk.f32.gmra.mrb[34].mxu1 %vm403_vm3, %v20049_v8 }
 0x2e6   : > { %13890 = vmatprep.mubr.msk.f32.mxu0 %vm403_vm3, %v20050_v13  ;;  %14618 = vmatprep.mubr.msk.f32.mxu1 %vm403_vm3, %v20051_v18 }
 0x2e9   : > { %13891 = vmatmul.mubr.msk.f32.gmra.mrb[36].mxu0 %vm403_vm3, %v20052_v59  ;;  %14619 = vmatmul.mubr.msk.f32.gmra.mrb[36].mxu1 %vm403_vm3, %v20053_v60 }
 0x2ea   : > { %13893 = vmatprep.mubr.msk.f32.mxu0 %vm403_vm3, %v20054_v9  ;;  %14621 = vmatprep.mubr.msk.f32.mxu1 %vm403_vm3, %v20055_v10 }
 0x2ed   : > { %13894 = vmatmul.mubr.msk.f32.gmra.mrb[38].mxu0 %vm403_vm3, %v20056_v11  ;;  %14622 = vmatmul.mubr.msk.f32.gmra.mrb[38].mxu1 %vm403_vm3, %v20057_v12 }
 0x2ee   : > { %13896 = vmatprep.mubr.msk.f32.mxu0 %vm403_vm3, %v20058_v14  ;;  %14624 = vmatprep.mubr.msk.f32.mxu1 %vm403_vm3, %v20059_v15 }
 0x2f1   : > { %13897 = vmatmul.mubr.msk.f32.gmra.mrb[40].mxu0 %vm403_vm3, %v20060_v16  ;;  %14625 = vmatmul.mubr.msk.f32.gmra.mrb[40].mxu1 %vm403_vm3, %v20061_v17 }
 0x2f2   : > { %13899 = vmatprep.mubr.msk.f32.mxu0 %vm403_vm3, %v20062_v19  ;;  %14627 = vmatprep.mubr.msk.f32.mxu1 %vm403_vm3, %v20063_v20 }
 0x2f5   : > { %13900 = vmatmul.mubr.msk.f32.gmra.mrb[42].mxu0 %vm403_vm3, %v20064_v21  ;;  %14628 = vmatmul.mubr.msk.f32.gmra.mrb[42].mxu1 %vm403_vm3, %v20065_v22 }
 0x2f6   : > { %13902 = vmatprep.mubr.msk.f32.mxu0 %vm403_vm3, %v20066_v24  ;;  %14630 = vmatprep.mubr.msk.f32.mxu1 %vm403_vm3, %v20067_v25 }
 0x2f9   : > { %13903 = vmatmul.mubr.msk.f32.gmra.mrb[44].mxu0 %vm403_vm3, %v20068_v26  ;;  %14631 = vmatmul.mubr.msk.f32.gmra.mrb[44].mxu1 %vm403_vm3, %v20069_v27 }
 0x2fa   : > { %13905 = vmatprep.mubr.msk.f32.mxu0 %vm403_vm3, %v20070_v30  ;;  %14633 = vmatprep.mubr.msk.f32.mxu1 %vm403_vm3, %v20071_v29 }
 0x2fd   : > { %13906 = vmatmul.mubr.msk.f32.gmra.mrb[46].mxu0 %vm403_vm3, %v20072_v33  ;;  %14634 = vmatmul.mubr.msk.f32.gmra.mrb[46].mxu1 %vm403_vm3, %v20073_v34 }
 0x2fe   : > { %13908 = vmatprep.mubr.msk.f32.mxu0 %vm403_vm3, %v20074_v35  ;;  %14636 = vmatprep.mubr.msk.f32.mxu1 %vm403_vm3, %v20075_v36 }
 0x301   : > { %13909 = vmatmul.mubr.msk.f32.gmra.mrb[48].mxu0 %vm403_vm3, %v20076_v32  ;;  %14637 = vmatmul.mubr.msk.f32.gmra.mrb[48].mxu1 %vm403_vm3, %v20077_v37 }
 0x302   : > { %13911 = vmatprep.mubr.msk.f32.mxu0 %vm403_vm3, %v20078_v38  ;;  %14639 = vmatprep.mubr.msk.f32.mxu1 %vm403_vm3, %v20079_v40 }
 0x305   : > { %13912 = vmatmul.mubr.msk.f32.gmra.mrb[50].mxu0 %vm403_vm3, %v20080_v5  ;;  %14640 = vmatmul.mubr.msk.f32.gmra.mrb[50].mxu1 %vm403_vm3, %v20081_v23 }
 0x306   : > { %13914 = vmatprep.mubr.msk.f32.mxu0 %vm403_vm3, %v20082_v39  ;;  %14642 = vmatprep.mubr.msk.f32.mxu1 %vm403_vm3, %v20083_v6 }
 0x309   : > { %13915 = vmatmul.mubr.msk.f32.gmra.mrb[52].mxu0 %vm403_vm3, %v18391_v44  ;;  %14643 = vmatmul.mubr.msk.f32.gmra.mrb[52].mxu1 %vm403_vm3, %v18394_v43 }
 0x30a   : > { %13917 = vmatprep.mubr.msk.f32.mxu0 %vm403_vm3, %v20084_v46  ;;  %14645 = vmatprep.mubr.msk.f32.mxu1 %vm403_vm3, %v20085_v47 }
 0x30d   : > { %13918 = vmatmul.mubr.msk.f32.gmra.mrb[54].mxu0 %vm403_vm3, %v18411_v50  ;;  %14646 = vmatmul.mubr.msk.f32.gmra.mrb[54].mxu1 %vm403_vm3, %v20086_v51 }
 0x30e   : > { %13920 = vmatprep.mubr.msk.f32.mxu0 %vm403_vm3, %v20087_v52  ;;  %14648 = vmatprep.mubr.msk.f32.mxu1 %vm403_vm3, %v18420_v45 }
 0x311   : > { %13921 = vmatmul.mubr.msk.f32.gmra.mrb[56].mxu0 %vm403_vm3, %v18431_v41  ;;  %14649 = vmatmul.mubr.msk.f32.gmra.mrb[56].mxu1 %vm403_vm3, %v20088_v28 }
 0x312   : > { %13923 = vmatprep.mubr.msk.f32.mxu0 %vm403_vm3, %v18713_v53  ;;  %14651 = vmatprep.mubr.msk.f32.mxu1 %vm403_vm3, %v18716_v54 }
 0x315   : > { %13924 = vmatmul.mubr.msk.f32.gmra.mrb[58].mxu0 %vm403_vm3, %v18727_v55  ;;  %14652 = vmatmul.mubr.msk.f32.gmra.mrb[58].mxu1 %vm403_vm3, %v18730_v56  ;;  %v11404_v56 = vld [vmem:[%s15933_s8 + $0x140] sm:$0xff] }
 0x316   : > { %13926 = vmatprep.mubr.msk.f32.mxu0 %vm403_vm3, %v18445_v48  ;;  %14654 = vmatprep.mubr.msk.f32.mxu1 %vm403_vm3, %v18448_v49  ;;  %v11376_v49 = vld [vmem:[%s15933_s8 + $0x60] sm:$0xff] }
 0x317   : > { %v12221_v48 = vld [vmem:[%s15938_s11 + $0x60] sm:$0xff] }
 0x319   : > { %13927 = vmatmul.mubr.msk.f32.gmra.mrb[60].mxu0 %vm403_vm3, %v18459_v31  ;;  %14655 = vmatmul.mubr.msk.f32.gmra.mrb[60].mxu1 %vm403_vm3, %v18462_v42  ;;  %v11378_v42 = vld [vmem:[%s15933_s8 + $0x70] sm:$0xff] }
 0x31a   : > { %13929 = vmatprep.mubr.msk.f32.mxu0 %vm403_vm3, %v18741_v57  ;;  %14657 = vmatprep.mubr.msk.f32.mxu1 %vm403_vm3, %v18744_v58  ;;  %v11377_v58 = vld [vmem:[%s15933_s8 + $0x68] sm:$0xff]  ;;  %v12223_v31 = vld [vmem:[%s15938_s11 + $0x70] sm:$0xff] }
 0x31b   : > { %v12222_v57 = vld [vmem:[%s15938_s11 + $0x68] sm:$0xff] }
 0x31d   : > { %13930 = vmatmul.mubr.msk.f32.gmra.mrb[62].mxu0 %vm403_vm3, %v18755_v61  ;;  %14658 = vmatmul.mubr.msk.f32.gmra.mrb[62].mxu1 %vm403_vm3, %v18758_v62  ;;  %v11379_v62 = vld [vmem:[%s15933_s8 + $0x78] sm:$0xff]  ;;  %v12225_v61 = vld [vmem:[%s15938_s11 + $0x80] sm:$0xff] }
 0x31e   : > { %13940 = vmatprep.mubr.msk.f32.mxu0 %vm403_vm3, %v11376_v49  ;;  %14668 = vmatprep.mubr.msk.f32.mxu1 %vm403_vm3, %v12221_v48  ;;  %v12224_v49 = vld [vmem:[%s15938_s11 + $0x78] sm:$0xff]  ;;  %v11380_v48 = vld [vmem:[%s15933_s8 + $0x80] sm:$0xff] }
 0x321   : > { %13941 = vmatmul.mubr.msk.f32.vlgmr.msra.gmra.mrb[0].mxu0 %vm403_vm3, %v11377_v58  ;;  %14669 = vmatmul.mubr.msk.f32.vlgmr.msra.gmra.mrb[0].mxu1 %vm403_vm3, %v12222_v57  ;;  %v11381_v57 = vld [vmem:[%s15933_s8 + $0x88] sm:$0xff]  ;;  %v12227_v58 = vld [vmem:[%s15938_s11 + $0x90] sm:$0xff] }
 0x322   : > { %13943 = vmatprep.mubr.msk.f32.mxu0 %vm403_vm3, %v11378_v42  ;;  %14671 = vmatprep.mubr.msk.f32.mxu1 %vm403_vm3, %v12223_v31  ;;  %v12226_v42 = vld [vmem:[%s15938_s11 + $0x88] sm:$0xff]  ;;  %v11382_v31 = vld [vmem:[%s15933_s8 + $0x90] sm:$0xff] }
 0x325   : > { %13944 = vmatmul.mubr.msk.f32.gmra.mrb[2].mxu0 %vm403_vm3, %v11379_v62  ;;  %14672 = vmatmul.mubr.msk.f32.gmra.mrb[2].mxu1 %vm403_vm3, %v12224_v49  ;;  %v11383_v62 = vld [vmem:[%s15933_s8 + $0x98] sm:$0xff] }
 0x326   : > { %13946 = vmatprep.mubr.msk.f32.mxu0 %vm403_vm3, %v11380_v48  ;;  %14674 = vmatprep.mubr.msk.f32.mxu1 %vm403_vm3, %v12225_v61  ;;  %v12228_v49 = vld [vmem:[%s15938_s11 + $0x98] sm:$0xff]  ;;  %v11384_v61 = vld [vmem:[%s15933_s8 + $0xa0] sm:$0xff] }
 0x327   : > { %v12229_v48 = vld [vmem:[%s15938_s11 + $0xa0] sm:$0xff] }
 0x329   : > { %13947 = vmatmul.mubr.msk.f32.gmra.mrb[4].mxu0 %vm403_vm3, %v11381_v57  ;;  %14675 = vmatmul.mubr.msk.f32.gmra.mrb[4].mxu1 %vm403_vm3, %v12226_v42  ;;  %v11385_v57 = vld [vmem:[%s15933_s8 + $0xa8] sm:$0xff] }
 0x32a   : > { %13949 = vmatprep.mubr.msk.f32.mxu0 %vm403_vm3, %v11382_v31  ;;  %14677 = vmatprep.mubr.msk.f32.mxu1 %vm403_vm3, %v12227_v58  ;;  %v12230_v42 = vld [vmem:[%s15938_s11 + $0xa8] sm:$0xff]  ;;  %v11386_v31 = vld [vmem:[%s15933_s8 + $0xb0] sm:$0xff] }
 0x32b   : > { %v12231_v58 = vld [vmem:[%s15938_s11 + $0xb0] sm:$0xff] }
 0x32d   : > { %13950 = vmatmul.mubr.msk.f32.gmra.mrb[6].mxu0 %vm403_vm3, %v11383_v62  ;;  %14678 = vmatmul.mubr.msk.f32.gmra.mrb[6].mxu1 %vm403_vm3, %v12228_v49  ;;  %v11387_v62 = vld [vmem:[%s15933_s8 + $0xb8] sm:$0xff] }
 0x32e   : > { %13952 = vmatprep.mubr.msk.f32.mxu0 %vm403_vm3, %v11384_v61  ;;  %14680 = vmatprep.mubr.msk.f32.mxu1 %vm403_vm3, %v12229_v48  ;;  %v12232_v49 = vld [vmem:[%s15938_s11 + $0xb8] sm:$0xff]  ;;  %v11388_v61 = vld [vmem:[%s15933_s8 + $0xc0] sm:$0xff] }
 0x32f   : > { %v12233_v48 = vld [vmem:[%s15938_s11 + $0xc0] sm:$0xff] }
 0x331   : > { %13953 = vmatmul.mubr.msk.f32.gmra.mrb[8].mxu0 %vm403_vm3, %v11385_v57  ;;  %14681 = vmatmul.mubr.msk.f32.gmra.mrb[8].mxu1 %vm403_vm3, %v12230_v42  ;;  %v11389_v57 = vld [vmem:[%s15933_s8 + $0xc8] sm:$0xff] }
 0x332   : > { %13955 = vmatprep.mubr.msk.f32.mxu0 %vm403_vm3, %v11386_v31  ;;  %14683 = vmatprep.mubr.msk.f32.mxu1 %vm403_vm3, %v12231_v58  ;;  %v12234_v42 = vld [vmem:[%s15938_s11 + $0xc8] sm:$0xff]  ;;  %v11390_v31 = vld [vmem:[%s15933_s8 + $0xd0] sm:$0xff] }
 0x333   : > { %v12235_v58 = vld [vmem:[%s15938_s11 + $0xd0] sm:$0xff] }
 0x335   : > { %13956 = vmatmul.mubr.msk.f32.gmra.mrb[10].mxu0 %vm403_vm3, %v11387_v62  ;;  %14684 = vmatmul.mubr.msk.f32.gmra.mrb[10].mxu1 %vm403_vm3, %v12232_v49  ;;  %v11391_v62 = vld [vmem:[%s15933_s8 + $0xd8] sm:$0xff] }
 0x336   : > { %13958 = vmatprep.mubr.msk.f32.mxu0 %vm403_vm3, %v11388_v61  ;;  %14686 = vmatprep.mubr.msk.f32.mxu1 %vm403_vm3, %v12233_v48  ;;  %v12236_v49 = vld [vmem:[%s15938_s11 + $0xd8] sm:$0xff]  ;;  %v11392_v61 = vld [vmem:[%s15933_s8 + $0xe0] sm:$0xff] }
 0x337   : > { %v12237_v48 = vld [vmem:[%s15938_s11 + $0xe0] sm:$0xff] }
 0x339   : > { %13959 = vmatmul.mubr.msk.f32.gmra.mrb[12].mxu0 %vm403_vm3, %v11389_v57  ;;  %14687 = vmatmul.mubr.msk.f32.gmra.mrb[12].mxu1 %vm403_vm3, %v12234_v42  ;;  %v11393_v57 = vld [vmem:[%s15933_s8 + $0xe8] sm:$0xff] }
 0x33a   : > { %13961 = vmatprep.mubr.msk.f32.mxu0 %vm403_vm3, %v11390_v31  ;;  %14689 = vmatprep.mubr.msk.f32.mxu1 %vm403_vm3, %v12235_v58  ;;  %v12238_v42 = vld [vmem:[%s15938_s11 + $0xe8] sm:$0xff]  ;;  %v11394_v31 = vld [vmem:[%s15933_s8 + $0xf0] sm:$0xff] }
 0x33b   : > { %v12239_v58 = vld [vmem:[%s15938_s11 + $0xf0] sm:$0xff] }
 0x33d   : > { %13962 = vmatmul.mubr.msk.f32.gmra.mrb[14].mxu0 %vm403_vm3, %v11391_v62  ;;  %14690 = vmatmul.mubr.msk.f32.gmra.mrb[14].mxu1 %vm403_vm3, %v12236_v49  ;;  %v11395_v62 = vld [vmem:[%s15933_s8 + $0xf8] sm:$0xff] }
 0x33e   : > { %13964 = vmatprep.mubr.msk.f32.mxu0 %vm403_vm3, %v11392_v61  ;;  %14692 = vmatprep.mubr.msk.f32.mxu1 %vm403_vm3, %v12237_v48  ;;  %v12240_v49 = vld [vmem:[%s15938_s11 + $0xf8] sm:$0xff]  ;;  %v11396_v61 = vld [vmem:[%s15933_s8 + $0x100] sm:$0xff] }
 0x33f   : > { %v12241_v48 = vld [vmem:[%s15938_s11 + $0x100] sm:$0xff] }
 0x341   : > { %13965 = vmatmul.mubr.msk.f32.gmra.mrb[16].mxu0 %vm403_vm3, %v11393_v57  ;;  %14693 = vmatmul.mubr.msk.f32.gmra.mrb[16].mxu1 %vm403_vm3, %v12238_v42  ;;  %v11397_v57 = vld [vmem:[%s15933_s8 + $0x108] sm:$0xff] }
 0x342   : > { %13967 = vmatprep.mubr.msk.f32.mxu0 %vm403_vm3, %v11394_v31  ;;  %14695 = vmatprep.mubr.msk.f32.mxu1 %vm403_vm3, %v12239_v58  ;;  %v12242_v42 = vld [vmem:[%s15938_s11 + $0x108] sm:$0xff]  ;;  %v11398_v31 = vld [vmem:[%s15933_s8 + $0x110] sm:$0xff] }
 0x343   : > { %v12243_v58 = vld [vmem:[%s15938_s11 + $0x110] sm:$0xff] }
 0x345   : > { %13968 = vmatmul.mubr.msk.f32.gmra.mrb[18].mxu0 %vm403_vm3, %v11395_v62  ;;  %14696 = vmatmul.mubr.msk.f32.gmra.mrb[18].mxu1 %vm403_vm3, %v12240_v49  ;;  %v11399_v62 = vld [vmem:[%s15933_s8 + $0x118] sm:$0xff] }
 0x346   : > { %13970 = vmatprep.mubr.msk.f32.mxu0 %vm403_vm3, %v11396_v61  ;;  %14698 = vmatprep.mubr.msk.f32.mxu1 %vm403_vm3, %v12241_v48  ;;  %v12244_v49 = vld [vmem:[%s15938_s11 + $0x118] sm:$0xff]  ;;  %v11400_v61 = vld [vmem:[%s15933_s8 + $0x120] sm:$0xff] }
 0x347   : > { %v12245_v48 = vld [vmem:[%s15938_s11 + $0x120] sm:$0xff] }
 0x349   : > { %13971 = vmatmul.mubr.msk.f32.gmra.mrb[20].mxu0 %vm403_vm3, %v11397_v57  ;;  %14699 = vmatmul.mubr.msk.f32.gmra.mrb[20].mxu1 %vm403_vm3, %v12242_v42  ;;  %v11401_v57 = vld [vmem:[%s15933_s8 + $0x128] sm:$0xff] }
 0x34a   : > { %13973 = vmatprep.mubr.msk.f32.mxu0 %vm403_vm3, %v11398_v31  ;;  %14701 = vmatprep.mubr.msk.f32.mxu1 %vm403_vm3, %v12243_v58  ;;  %v12246_v42 = vld [vmem:[%s15938_s11 + $0x128] sm:$0xff]  ;;  %v11402_v31 = vld [vmem:[%s15933_s8 + $0x130] sm:$0xff] }
 0x34b   : > { %v12247_v58 = vld [vmem:[%s15938_s11 + $0x130] sm:$0xff] }
 0x34d   : > { %13974 = vmatmul.mubr.msk.f32.gmra.mrb[22].mxu0 %vm403_vm3, %v11399_v62  ;;  %14702 = vmatmul.mubr.msk.f32.gmra.mrb[22].mxu1 %vm403_vm3, %v12244_v49  ;;  %v11403_v62 = vld [vmem:[%s15933_s8 + $0x138] sm:$0xff] }
 0x34e   : > { %13976 = vmatprep.mubr.msk.f32.mxu0 %vm403_vm3, %v11400_v61  ;;  %14704 = vmatprep.mubr.msk.f32.mxu1 %vm403_vm3, %v12245_v48  ;;  %v12248_v49 = vld [vmem:[%s15938_s11 + $0x138] sm:$0xff]  ;;  %v12249_v61 = vld [vmem:[%s15938_s11 + $0x140] sm:$0xff]  ;;  %v11405_v48 = vld [vmem:[%s15933_s8 + $0x148] sm:$0xff] }
 0x351   : > { %13977 = vmatmul.mubr.msk.f32.gmra.mrb[24].mxu0 %vm403_vm3, %v11401_v57  ;;  %14705 = vmatmul.mubr.msk.f32.gmra.mrb[24].mxu1 %vm403_vm3, %v12246_v42  ;;  %v12250_v57 = vld [vmem:[%s15938_s11 + $0x148] sm:$0xff] }
 0x352   : > { %13979 = vmatprep.mubr.msk.f32.mxu0 %vm403_vm3, %v11402_v31  ;;  %14707 = vmatprep.mubr.msk.f32.mxu1 %vm403_vm3, %v12247_v58 }
 0x355   : > { %13980 = vmatmul.mubr.msk.f32.gmra.mrb[26].mxu0 %vm403_vm3, %v11403_v62  ;;  %14708 = vmatmul.mubr.msk.f32.gmra.mrb[26].mxu1 %vm403_vm3, %v12248_v49 }
 0x356   : > { %13982 = vmatprep.mubr.msk.f32.mxu0 %vm403_vm3, %v11404_v56  ;;  %14710 = vmatprep.mubr.msk.f32.mxu1 %vm403_vm3, %v12249_v61 }
 0x359   : > { %13983 = vmatmul.mubr.msk.f32.gmra.mrb[28].mxu0 %vm403_vm3, %v11405_v48  ;;  %14711 = vmatmul.mubr.msk.f32.gmra.mrb[28].mxu1 %vm403_vm3, %v12250_v57 }
 0x35a   : > { %13985 = vmatprep.mubr.msk.f32.mxu0 %vm403_vm3, %v20042_v63  ;;  %14713 = vmatprep.mubr.msk.f32.mxu1 %vm403_vm3, %v20043_v0  ;;  %v20099_v63 = vld [vmem:[#allocation67_spill] sm:$0xff]  ;;  %v20100_v0 = vld [vmem:[#allocation68_spill] sm:$0xff] }
 0x35d   : > { %13986 = vmatmul.mubr.msk.f32.gmra.mrb[30].mxu0 %vm403_vm3, %v20044_v1  ;;  %14714 = vmatmul.mubr.msk.f32.gmra.mrb[30].mxu1 %vm403_vm3, %v20045_v2  ;;  %v11438_v1 = vld [vmem:[%s15933_s8 + $0x250] sm:$0xff] }
 0x35e   : > { %13988 = vmatprep.mubr.msk.f32.mxu0 %vm403_vm3, %v20046_v3  ;;  %14716 = vmatprep.mubr.msk.f32.mxu1 %vm403_vm3, %v20047_v4  ;;  %v12283_v2 = vld [vmem:[%s15938_s11 + $0x250] sm:$0xff]  ;;  %v20101_v3 = vld [vmem:[#allocation69_spill] sm:$0xff]  ;;  %v20102_v4 = vld [vmem:[#allocation70_spill] sm:$0xff] }
 0x361   : > { %13989 = vmatmul.mubr.msk.f32.gmra.mrb[32].mxu0 %vm403_vm3, %v20048_v7  ;;  %14717 = vmatmul.mubr.msk.f32.gmra.mrb[32].mxu1 %vm403_vm3, %v20049_v8  ;;  %v11439_v7 = vld [vmem:[%s15933_s8 + $0x258] sm:$0xff]  ;;  %s244_s8 = sand.u32 1, %s15795_s19  }
 0x362   : > { %13991 = vmatprep.mubr.msk.f32.mxu0 %vm403_vm3, %v20050_v13  ;;  %14719 = vmatprep.mubr.msk.f32.mxu1 %vm403_vm3, %v20051_v18  ;;  %v12284_v8 = vld [vmem:[%s15938_s11 + $0x258] sm:$0xff]  ;;  %v19023_v13 = vld [vmem:[%s19425_s3] ss:$0 sm:$0xff]  ;;  %s10643_s11 = sshll.u32 %s244_s8, 8  ;;  %s19376_s21 = scalar_lea.sflag [#allocation3], %s244_s8 }
 0x363   : > { %v19028_v18 = vld [vmem:[%s19426_s4] ss:$0 sm:$0xff]  ;;  %s19058_s29 = scalar_lea.vmem [#allocation2], %s10643_s11  ;;  %s15739_s11 = scalar_lea.vmem %s15738_s27, 8192 }
 0x364   : > { %s10501_s14 = sshll.u32 %s19058_s29, 4  ;;  %s19368_s14 = int_to_ptr.vmem [resolvable:$true] %s10501_s14 }
 0x365   : > { %13992 = vmatmul.mubr.msk.f32.gmra.mrb[34].mxu0 %vm403_vm3, %v20052_v59  ;;  %14720 = vmatmul.mubr.msk.f32.gmra.mrb[34].mxu1 %vm403_vm3, %v20053_v60  ;;  %s15733_s24 = scalar_lea.vmem %s19368_s14, 4096  ;;  %p15740_p1 = scmp.lt.s32.totalorder %s19368_s14, %s15738_s27 }
 0x366   : > { %13994 = vmatprep.mubr.msk.f32.mxu0 %vm403_vm3, %v20054_v9  ;;  %14722 = vmatprep.mubr.msk.f32.mxu1 %vm403_vm3, %v20055_v10  ;;  %p15734_p12 = scmp.ne.s32.totalorder %s19368_s14, %s15733_s24  ;;  %p15741_p2 = scmp.lt.s32.totalorder %s15739_s11, %s15733_s24 }
 0x368   : > { %p15735_p13 = pnand %p15734_p12, %p15887_p4  ;;  %p15742_p3 = por %p15741_p2, %p15740_p1 }
 0x369   : > { %13995 = vmatmul.mubr.msk.f32.gmra.mrb[36].mxu0 %vm403_vm3, %v20056_v11  ;;  %14723 = vmatmul.mubr.msk.f32.gmra.mrb[36].mxu1 %vm403_vm3, %v20057_v12 }
 0x36a   : > { %13997 = vmatprep.mubr.msk.f32.mxu0 %vm403_vm3, %v20058_v14  ;;  %14725 = vmatprep.mubr.msk.f32.mxu1 %vm403_vm3, %v20059_v15  ;;  %p15736_p0 = pneg %p15735_p13 }
 0x36c   : > { %p15743_p5 = pnand %p15742_p3, %p15736_p0 }
 0x36d   : > { %13998 = vmatmul.mubr.msk.f32.gmra.mrb[38].mxu0 %vm403_vm3, %v20060_v16  ;;  %14726 = vmatmul.mubr.msk.f32.gmra.mrb[38].mxu1 %vm403_vm3, %v20061_v17 }
 0x36e   : > { %14000 = vmatprep.mubr.msk.f32.mxu0 %vm403_vm3, %v20062_v19  ;;  %14728 = vmatprep.mubr.msk.f32.mxu1 %vm403_vm3, %v20063_v20 }
 0x371   : > { %14001 = vmatmul.mubr.msk.f32.gmra.mrb[40].mxu0 %vm403_vm3, %v20064_v21  ;;  %14729 = vmatmul.mubr.msk.f32.gmra.mrb[40].mxu1 %vm403_vm3, %v20065_v22 }
 0x372   : > { %14003 = vmatprep.mubr.msk.f32.mxu0 %vm403_vm3, %v20066_v24  ;;  %14731 = vmatprep.mubr.msk.f32.mxu1 %vm403_vm3, %v20067_v25 }
 0x375   : > { %14004 = vmatmul.mubr.msk.f32.gmra.mrb[42].mxu0 %vm403_vm3, %v20068_v26  ;;  %14732 = vmatmul.mubr.msk.f32.gmra.mrb[42].mxu1 %vm403_vm3, %v20069_v27 }
 0x376   : > { %14006 = vmatprep.mubr.msk.f32.mxu0 %vm403_vm3, %v20070_v30  ;;  %14734 = vmatprep.mubr.msk.f32.mxu1 %vm403_vm3, %v20071_v29 }
 0x379   : > { %14007 = vmatmul.mubr.msk.f32.gmra.mrb[44].mxu0 %vm403_vm3, %v20072_v33  ;;  %14735 = vmatmul.mubr.msk.f32.gmra.mrb[44].mxu1 %vm403_vm3, %v20073_v34 }
 0x37a   : > { %14009 = vmatprep.mubr.msk.f32.mxu0 %vm403_vm3, %v20074_v35  ;;  %14737 = vmatprep.mubr.msk.f32.mxu1 %vm403_vm3, %v20075_v36 }
 0x37d   : > { %14010 = vmatmul.mubr.msk.f32.gmra.mrb[46].mxu0 %vm403_vm3, %v20076_v32  ;;  %14738 = vmatmul.mubr.msk.f32.gmra.mrb[46].mxu1 %vm403_vm3, %v20077_v37 }
 0x37e   : > { %14012 = vmatprep.mubr.msk.f32.mxu0 %vm403_vm3, %v20078_v38  ;;  %14740 = vmatprep.mubr.msk.f32.mxu1 %vm403_vm3, %v20079_v40 }
 0x381   : > { %14013 = vmatmul.mubr.msk.f32.gmra.mrb[48].mxu0 %vm403_vm3, %v20080_v5  ;;  %14741 = vmatmul.mubr.msk.f32.gmra.mrb[48].mxu1 %vm403_vm3, %v20081_v23 }
 0x382   : > { %14015 = vmatprep.mubr.msk.f32.mxu0 %vm403_vm3, %v20082_v39  ;;  %14743 = vmatprep.mubr.msk.f32.mxu1 %vm403_vm3, %v20083_v6 }
 0x385   : > { %14016 = vmatmul.mubr.msk.f32.gmra.mrb[50].mxu0 %vm403_vm3, %v18391_v44  ;;  %14744 = vmatmul.mubr.msk.f32.gmra.mrb[50].mxu1 %vm403_vm3, %v18394_v43  ;;  %v20094_v43 = vld [vmem:[#allocation66_spill] sm:$0xff] }
 0x386   : > { %14018 = vmatprep.mubr.msk.f32.mxu0 %vm403_vm3, %v20084_v46  ;;  %14746 = vmatprep.mubr.msk.f32.mxu1 %vm403_vm3, %v20085_v47  ;;  %v20095_v44 = vld [vmem:[#allocation62_spill] sm:$0xff] }
 0x389   : > { %14019 = vmatmul.mubr.msk.f32.gmra.mrb[52].mxu0 %vm403_vm3, %v18411_v50  ;;  %14747 = vmatmul.mubr.msk.f32.gmra.mrb[52].mxu1 %vm403_vm3, %v20086_v51  ;;  %v20098_v50 = vld [vmem:[#allocation65_spill] sm:$0xff] }
 0x38a   : > { %14021 = vmatprep.mubr.msk.f32.mxu0 %vm403_vm3, %v20087_v52  ;;  %14749 = vmatprep.mubr.msk.f32.mxu1 %vm403_vm3, %v18420_v45  ;;  %v20097_v45 = vld [vmem:[#allocation64_spill] sm:$0xff] }
 0x38d   : > { %14022 = vmatmul.mubr.msk.f32.gmra.mrb[54].mxu0 %vm403_vm3, %v18431_v41  ;;  %14750 = vmatmul.mubr.msk.f32.gmra.mrb[54].mxu1 %vm403_vm3, %v20088_v28  ;;  %v20096_v41 = vld [vmem:[#allocation63_spill] sm:$0xff] }
 0x38e   : > { %14024 = vmatprep.mubr.msk.f32.mxu0 %vm403_vm3, %v18713_v53  ;;  %14752 = vmatprep.mubr.msk.f32.mxu1 %vm403_vm3, %v18716_v54 }
 0x391   : > { %14025 = vmatmul.mubr.msk.f32.gmra.mrb[56].mxu0 %vm403_vm3, %v18727_v55  ;;  %14753 = vmatmul.mubr.msk.f32.gmra.mrb[56].mxu1 %vm403_vm3, %v20094_v43 }
 0x392   : > { %14027 = vmatprep.mubr.msk.f32.mxu0 %vm403_vm3, %v20095_v44  ;;  %14755 = vmatprep.mubr.msk.f32.mxu1 %vm403_vm3, %v20096_v41 }
 0x395   : > { %14028 = vmatmul.mubr.msk.f32.gmra.mrb[58].mxu0 %vm403_vm3, %v20097_v45  ;;  %14756 = vmatmul.mubr.msk.f32.gmra.mrb[58].mxu1 %vm403_vm3, %v20098_v50 }
 0x396   : > { %14030 = vmatprep.mubr.msk.f32.mxu0 %vm403_vm3, %v20099_v63  ;;  %14758 = vmatprep.mubr.msk.f32.mxu1 %vm403_vm3, %v20100_v0 }
 0x399   : > { %14031 = vmatmul.mubr.msk.f32.gmra.mrb[60].mxu0 %vm403_vm3, %v20101_v3  ;;  %14759 = vmatmul.mubr.msk.f32.gmra.mrb[60].mxu1 %vm403_vm3, %v20102_v4 }
 0x39a   : > { %14033 = vmatprep.mubr.msk.f32.mxu0 %vm403_vm3, %v11438_v1  ;;  %14761 = vmatprep.mubr.msk.f32.mxu1 %vm403_vm3, %v12283_v2 }
 0x39d   : > { %14034 = vmatmul.mubr.msk.f32.gmra.mrb[62].mxu0 %vm403_vm3, %v11439_v7  ;;  %14762 = vmatmul.mubr.msk.f32.gmra.mrb[62].mxu1 %vm403_vm3, %v12284_v8 }
 0x3f4   : > { %v13942_v59 = vpop.f32.mrb[0].mxu0  ;;  %v14670_v60 = vpop.f32.mrb[0].mxu1 }
 0x3f5   : > { %v5152_v9 = vmul.f32 %v13942_v59, %v19023_v13  ;;  %v10196_v10 = vmul.f32 %v14670_v60, %v19023_v13  ;;  %v4762_v11 = vpop.f32.mrb[1].mxu0  ;;  %v9812_v12 = vpop.f32.mrb[1].mxu1 }
 0x3f6   : > { %v5151_v14 = vmul.f32 %v19023_v13, %v4762_v11  ;;  %v10195_v15 = vmul.f32 %v19023_v13, %v9812_v12 }
 0x3f7   : > { %v5222_v16 = vadd.f32 %v19028_v18, %v5152_v9  ;;  %v10260_v17 = vadd.f32 %v19028_v18, %v10196_v10 }
 0x3f8   : > { %v5221_v19 = vadd.f32 %v19028_v18, %v5151_v14  ;;  %v13945_v20 = vpop.f32.mrb[2].mxu0  ;;  %v14673_v21 = vpop.f32.mrb[2].mxu1  ;;  %v10259_v27 = vadd.f32 %v19028_v18, %v10195_v15 }
 0x3f9   : > { %v5154_v22 = vmul.f32 %v13945_v20, %v19023_v13  ;;  %v10198_v24 = vmul.f32 %v14673_v21, %v19023_v13  ;;  %v4772_v25 = vpop.f32.mrb[3].mxu0  ;;  %v9822_v26 = vpop.f32.mrb[3].mxu1  ;;  %v5286_v33 = vmax.f32 %v5222_v16, 0.0  ;;  %v10324_v36 = vmax.f32 %v10260_v17, 0.0 }
 0x3fa   : > { %v5153_v30 = vmul.f32 %v19023_v13, %v4772_v25  ;;  %v10197_v29 = vmul.f32 %v19023_v13, %v9822_v26  ;;  %v5285_v32 = vmax.f32 %v5221_v19, 0.0  ;;  %v10323_v52 = vmax.f32 %v10259_v27, 0.0 }
 0x3fb   : > { %v5224_v34 = vadd.f32 %v19028_v18, %v5154_v22  ;;  %v10262_v35 = vadd.f32 %v19028_v18, %v10198_v24 }
 0x3fc   : > { %v5223_v37 = vadd.f32 %v19028_v18, %v5153_v30  ;;  %v10261_v38 = vadd.f32 %v19028_v18, %v10197_v29  ;;  %v13948_v40 = vpop.f32.mrb[4].mxu0  ;;  %v14676_v5 = vpop.f32.mrb[4].mxu1 }
 0x3fd   : > { %v5288_v23 = vmax.f32 %v5224_v34, 0.0  ;;  %v10326_v39 = vmax.f32 %v10262_v35, 0.0  ;;  %v5156_v6 = vmul.f32 %v13948_v40, %v19023_v13  ;;  %v10200_v46 = vmul.f32 %v14676_v5, %v19023_v13  ;;  %v4782_v47 = vpop.f32.mrb[5].mxu0  ;;  %v9832_v51 = vpop.f32.mrb[5].mxu1 }
 0x3fe   : > { %v5287_v53 = vmax.f32 %v5223_v37, 0.0  ;;  %v10325_v54 = vmax.f32 %v10261_v38, 0.0  ;;  %v5155_v28 = vmul.f32 %v19023_v13, %v4782_v47  ;;  %v10199_v42 = vmul.f32 %v19023_v13, %v9832_v51 }
 0x3ff   : > { %v5350_v55 = vmax.f32 %v5286_v33, %v5288_v23  ;;  %v10388_v56 = vmax.f32 %v10324_v36, %v10326_v39  ;;  %v5226_v62 = vadd.f32 %v19028_v18, %v5156_v6  ;;  %v10264_v49 = vadd.f32 %v19028_v18, %v10200_v46 }
 0x400   : > { %v5349_v31 = vmax.f32 %v5285_v32, %v5287_v53  ;;  %v10387_v58 = vmax.f32 %v10323_v52, %v10325_v54  ;;  %v13951_v61 = vpop.f32.mrb[6].mxu0  ;;  %v14679_v48 = vpop.f32.mrb[6].mxu1  ;;  %v5225_v50 = vadd.f32 %v19028_v18, %v5155_v28  ;;  %v10263_v0 = vadd.f32 %v19028_v18, %v10199_v42 }
 0x401   : > { %v10420_v57 = vmax.f32 %v5350_v55, %v10388_v56  ;;  %v5158_v43 = vmul.f32 %v13951_v61, %v19023_v13  ;;  %v4792_v44 = vpop.f32.mrb[7].mxu0  ;;  %v9842_v41 = vpop.f32.mrb[7].mxu1  ;;  %v10202_v63 = vmul.f32 %v14679_v48, %v19023_v13  ;;  %v5290_v4 = vmax.f32 %v5226_v62, 0.0 }
 0x402   : > { %v10419_v45 = vmax.f32 %v5349_v31, %v10387_v58  ;;  %v5157_v2 = vmul.f32 %v19023_v13, %v4792_v44  ;;  %v10201_v3 = vmul.f32 %v19023_v13, %v9842_v41  ;;  %v10328_v7 = vmax.f32 %v10264_v49, 0.0 }
 0x403   : > { %10453 = vst.msk [vmem:[%s19058_s29 + $0x8] sm:$0xff] %vm10451_vm4, %v10420_v57  ;;  %v5228_v1 = vadd.f32 %v19028_v18, %v5158_v43  ;;  %v10266_v8 = vadd.f32 %v19028_v18, %v10202_v63  ;;  %v5289_v16 = vmax.f32 %v5225_v50, 0.0  ;;  %v10327_v21 = vmax.f32 %v10263_v0, 0.0 }
 0x404   : > { %10452 = vst.msk [vmem:[%s19058_s29] sm:$0xff] %vm10451_vm4, %v10419_v45  ;;  %v13954_v59 = vpop.f32.mrb[8].mxu0  ;;  %v14682_v60 = vpop.f32.mrb[8].mxu1  ;;  %v5227_v10 = vadd.f32 %v19028_v18, %v5157_v2  ;;  %v10265_v11 = vadd.f32 %v19028_v18, %v10201_v3 }
 0x405   : > { %v5292_v9 = vmax.f32 %v5228_v1, 0.0  ;;  %v5160_v12 = vmul.f32 %v13954_v59, %v19023_v13  ;;  %v4802_v14 = vpop.f32.mrb[9].mxu0  ;;  %v9852_v15 = vpop.f32.mrb[9].mxu1  ;;  %v10330_v17 = vmax.f32 %v10266_v8, 0.0  ;;  %v10204_v19 = vmul.f32 %v14682_v60, %v19023_v13 }
 0x406   : > { %v5159_v20 = vmul.f32 %v19023_v13, %v4802_v14  ;;  %v5291_v24 = vmax.f32 %v5227_v10, 0.0  ;;  %v10329_v25 = vmax.f32 %v10265_v11, 0.0  ;;  %v10203_v30 = vmul.f32 %v19023_v13, %v9852_v15 }
 0x407   : > { %v5352_v22 = vmax.f32 %v5290_v4, %v5292_v9  ;;  %v10390_v26 = vmax.f32 %v10328_v7, %v10330_v17  ;;  %v5230_v27 = vadd.f32 %v19028_v18, %v5160_v12  ;;  %v10268_v40 = vadd.f32 %v19028_v18, %v10204_v19 }
 0x408   : > { %v13957_v29 = vpop.f32.mrb[10].mxu0  ;;  %v14685_v33 = vpop.f32.mrb[10].mxu1  ;;  %v5351_v34 = vmax.f32 %v5289_v16, %v5291_v24  ;;  %v10389_v35 = vmax.f32 %v10327_v21, %v10329_v25  ;;  %v5229_v5 = vadd.f32 %v19028_v18, %v5159_v20  ;;  %v10267_v51 = vadd.f32 %v19028_v18, %v10203_v30 }
 0x409   : > { %v5162_v36 = vmul.f32 %v13957_v29, %v19023_v13  ;;  %v4812_v32 = vpop.f32.mrb[11].mxu0  ;;  %v9862_v37 = vpop.f32.mrb[11].mxu1  ;;  %v10422_v38 = vmax.f32 %v5352_v22, %v10390_v26  ;;  %v10206_v6 = vmul.f32 %v14685_v33, %v19023_v13  ;;  %v5294_v47 = vmax.f32 %v5230_v27, 0.0 }
 0x40a   : > { %v10421_v23 = vmax.f32 %v5351_v34, %v10389_v35  ;;  %v5161_v46 = vmul.f32 %v19023_v13, %v4812_v32  ;;  %v10205_v52 = vmul.f32 %v19023_v13, %v9862_v37  ;;  %v10332_v62 = vmax.f32 %v10268_v40, 0.0 }
 0x40b   : > { %v5232_v39 = vadd.f32 %v19028_v18, %v5162_v36  ;;  %10455 = vst.msk [vmem:[%s19058_s29 + $0x18] sm:$0xff] %vm10451_vm4, %v10422_v38  ;;  %v10270_v55 = vadd.f32 %v19028_v18, %v10206_v6  ;;  %v5293_v57 = vmax.f32 %v5229_v5, 0.0  ;;  %v10331_v45 = vmax.f32 %v10267_v51, 0.0 }
 0x40c   : > { %v13960_v53 = vpop.f32.mrb[12].mxu0  ;;  %v14688_v54 = vpop.f32.mrb[12].mxu1  ;;  %10454 = vst.msk [vmem:[%s19058_s29 + $0x10] sm:$0xff] %vm10451_vm4, %v10421_v23  ;;  %v5231_v56 = vadd.f32 %v19028_v18, %v5161_v46  ;;  %v10269_v49 = vadd.f32 %v19028_v18, %v10205_v52 }
 0x40d   : > { %v5296_v28 = vmax.f32 %v5232_v39, 0.0  ;;  %v5164_v42 = vmul.f32 %v13960_v53, %v19023_v13  ;;  %v4822_v31 = vpop.f32.mrb[13].mxu0  ;;  %v9872_v58 = vpop.f32.mrb[13].mxu1  ;;  %v10208_v61 = vmul.f32 %v14688_v54, %v19023_v13  ;;  %v10334_v44 = vmax.f32 %v10270_v55, 0.0 }
 0x40e   : > { %v5163_v48 = vmul.f32 %v19023_v13, %v4822_v31  ;;  %v5295_v41 = vmax.f32 %v5231_v56, 0.0  ;;  %v10333_v50 = vmax.f32 %v10269_v49, 0.0  ;;  %v10207_v0 = vmul.f32 %v19023_v13, %v9872_v58 }
 0x40f   : > { %v5354_v43 = vmax.f32 %v5294_v47, %v5296_v28  ;;  %v5234_v63 = vadd.f32 %v19028_v18, %v5164_v42  ;;  %v10392_v3 = vmax.f32 %v10332_v62, %v10334_v44  ;;  %v10272_v9 = vadd.f32 %v19028_v18, %v10208_v61 }
 0x410   : > { %v13963_v1 = vpop.f32.mrb[14].mxu0  ;;  %v14691_v2 = vpop.f32.mrb[14].mxu1  ;;  %v5353_v4 = vmax.f32 %v5293_v57, %v5295_v41  ;;  %v10391_v60 = vmax.f32 %v10331_v45, %v10333_v50  ;;  %v5233_v10 = vadd.f32 %v19028_v18, %v5163_v48  ;;  %v10271_v19 = vadd.f32 %v19028_v18, %v10207_v0 }
 0x411   : > { %v5166_v7 = vmul.f32 %v13963_v1, %v19023_v13  ;;  %v4832_v8 = vpop.f32.mrb[15].mxu0  ;;  %v9882_v59 = vpop.f32.mrb[15].mxu1  ;;  %v10424_v11 = vmax.f32 %v5354_v43, %v10392_v3  ;;  %v10210_v14 = vmul.f32 %v14691_v2, %v19023_v13  ;;  %v5298_v17 = vmax.f32 %v5234_v63, 0.0 }
 0x412   : > { %v5165_v15 = vmul.f32 %v19023_v13, %v4832_v8  ;;  %v10423_v16 = vmax.f32 %v5353_v4, %v10391_v60  ;;  %v10209_v20 = vmul.f32 %v19023_v13, %v9882_v59  ;;  %v10336_v33 = vmax.f32 %v10272_v9, 0.0 }
 0x413   : > { %v5236_v12 = vadd.f32 %v19028_v18, %v5166_v7  ;;  %10457 = vst.msk [vmem:[%s19058_s29 + $0x28] sm:$0xff] %vm10451_vm4, %v10424_v11  ;;  %v10274_v25 = vadd.f32 %v19028_v18, %v10210_v14  ;;  %v5297_v32 = vmax.f32 %v5233_v10, 0.0  ;;  %v10335_v5 = vmax.f32 %v10271_v19, 0.0 }
 0x414   : > { %v13966_v21 = vpop.f32.mrb[16].mxu0  ;;  %v14694_v22 = vpop.f32.mrb[16].mxu1  ;;  %v5235_v26 = vadd.f32 %v19028_v18, %v5165_v15  ;;  %10456 = vst.msk [vmem:[%s19058_s29 + $0x20] sm:$0xff] %vm10451_vm4, %v10423_v16  ;;  %v10273_v34 = vadd.f32 %v19028_v18, %v10209_v20 }
 0x415   : > { %v5300_v24 = vmax.f32 %v5236_v12, 0.0  ;;  %v5168_v27 = vmul.f32 %v13966_v21, %v19023_v13  ;;  %v4842_v30 = vpop.f32.mrb[17].mxu0  ;;  %v9892_v29 = vpop.f32.mrb[17].mxu1  ;;  %v10212_v35 = vmul.f32 %v14694_v22, %v19023_v13  ;;  %v10338_v38 = vmax.f32 %v10274_v25, 0.0 }
 0x416   : > { %v5167_v36 = vmul.f32 %v19023_v13, %v4842_v30  ;;  %v5299_v40 = vmax.f32 %v5235_v26, 0.0  ;;  %v10337_v23 = vmax.f32 %v10273_v34, 0.0  ;;  %v10211_v6 = vmul.f32 %v19023_v13, %v9892_v29 }
 0x417   : > { %v5356_v37 = vmax.f32 %v5298_v17, %v5300_v24  ;;  %v5238_v39 = vadd.f32 %v19028_v18, %v5168_v27  ;;  %v10394_v51 = vmax.f32 %v10336_v33, %v10338_v38  ;;  %v10276_v56 = vadd.f32 %v19028_v18, %v10212_v35 }
 0x418   : > { %v13969_v46 = vpop.f32.mrb[18].mxu0  ;;  %v14697_v47 = vpop.f32.mrb[18].mxu1  ;;  %v5355_v52 = vmax.f32 %v5297_v32, %v5299_v40  ;;  %v10393_v55 = vmax.f32 %v10335_v5, %v10337_v23  ;;  %v5237_v42 = vadd.f32 %v19028_v18, %v5167_v36  ;;  %v10275_v57 = vadd.f32 %v19028_v18, %v10211_v6 }
 0x419   : > { %v5170_v53 = vmul.f32 %v13969_v46, %v19023_v13  ;;  %v4852_v54 = vpop.f32.mrb[19].mxu0  ;;  %v9902_v28 = vpop.f32.mrb[19].mxu1  ;;  %v10426_v31 = vmax.f32 %v5356_v37, %v10394_v51  ;;  %v10214_v62 = vmul.f32 %v14697_v47, %v19023_v13  ;;  %v5302_v48 = vmax.f32 %v5238_v39, 0.0 }
 0x41a   : > { %v5169_v49 = vmul.f32 %v19023_v13, %v4852_v54  ;;  %v10425_v61 = vmax.f32 %v5355_v52, %v10393_v55  ;;  %v10213_v43 = vmul.f32 %v19023_v13, %v9902_v28  ;;  %v10340_v3 = vmax.f32 %v10276_v56, 0.0 }
 0x41b   : > { %v5240_v58 = vadd.f32 %v19028_v18, %v5170_v53  ;;  %10459 = vst.msk [vmem:[%s19058_s29 + $0x38] sm:$0xff] %vm10451_vm4, %v10426_v31  ;;  %v10278_v50 = vadd.f32 %v19028_v18, %v10214_v62  ;;  %v5301_v59 = vmax.f32 %v5237_v42, 0.0  ;;  %v10339_v11 = vmax.f32 %v10275_v57, 0.0 }
 0x41c   : > { %v13972_v44 = vpop.f32.mrb[20].mxu0  ;;  %v14700_v41 = vpop.f32.mrb[20].mxu1  ;;  %v5239_v63 = vadd.f32 %v19028_v18, %v5169_v49  ;;  %10458 = vst.msk [vmem:[%s19058_s29 + $0x30] sm:$0xff] %vm10451_vm4, %v10425_v61  ;;  %v10277_v4 = vadd.f32 %v19028_v18, %v10213_v43 }
 0x41d   : > { %v5304_v45 = vmax.f32 %v5240_v58, 0.0  ;;  %v5172_v0 = vmul.f32 %v13972_v44, %v19023_v13  ;;  %v4862_v1 = vpop.f32.mrb[21].mxu0  ;;  %v9912_v2 = vpop.f32.mrb[21].mxu1  ;;  %v10216_v7 = vmul.f32 %v14700_v41, %v19023_v13  ;;  %v10342_v9 = vmax.f32 %v10278_v50, 0.0 }
 0x41e   : > { %v5171_v8 = vmul.f32 %v19023_v13, %v4862_v1  ;;  %v5303_v10 = vmax.f32 %v5239_v63, 0.0  ;;  %v10341_v12 = vmax.f32 %v10277_v4, 0.0  ;;  %v10215_v15 = vmul.f32 %v19023_v13, %v9912_v2 }
 0x41f   : > { %v5358_v60 = vmax.f32 %v5302_v48, %v5304_v45  ;;  %v5242_v14 = vadd.f32 %v19028_v18, %v5172_v0  ;;  %v10396_v19 = vmax.f32 %v10340_v3, %v10342_v9  ;;  %v10280_v26 = vadd.f32 %v19028_v18, %v10216_v7 }
 0x420   : > { %v13975_v16 = vpop.f32.mrb[22].mxu0  ;;  %v14703_v17 = vpop.f32.mrb[22].mxu1  ;;  %v5357_v20 = vmax.f32 %v5301_v59, %v5303_v10  ;;  %v10395_v25 = vmax.f32 %v10339_v11, %v10341_v12  ;;  %v5241_v27 = vadd.f32 %v19028_v18, %v5171_v8  ;;  %v10279_v32 = vadd.f32 %v19028_v18, %v10215_v15 }
 0x421   : > { %v5174_v21 = vmul.f32 %v13975_v16, %v19023_v13  ;;  %v4872_v22 = vpop.f32.mrb[23].mxu0  ;;  %v9922_v24 = vpop.f32.mrb[23].mxu1  ;;  %v10428_v30 = vmax.f32 %v5358_v60, %v10396_v19  ;;  %v10218_v33 = vmul.f32 %v14703_v17, %v19023_v13  ;;  %v5306_v36 = vmax.f32 %v5242_v14, 0.0 }
 0x422   : > { %v5173_v34 = vmul.f32 %v19023_v13, %v4872_v22  ;;  %v10427_v35 = vmax.f32 %v5357_v20, %v10395_v25  ;;  %v10217_v37 = vmul.f32 %v19023_v13, %v9922_v24  ;;  %v10344_v51 = vmax.f32 %v10280_v26, 0.0 }
 0x423   : > { %v5244_v29 = vadd.f32 %v19028_v18, %v5174_v21  ;;  %10461 = vst.msk [vmem:[%s19058_s29 + $0x48] sm:$0xff] %vm10451_vm4, %v10428_v30  ;;  %v10282_v23 = vadd.f32 %v19028_v18, %v10218_v33  ;;  %v5305_v28 = vmax.f32 %v5241_v27, 0.0  ;;  %v10343_v31 = vmax.f32 %v10279_v32, 0.0 }
 0x424   : > { %v13978_v38 = vpop.f32.mrb[24].mxu0  ;;  %v14706_v40 = vpop.f32.mrb[24].mxu1  ;;  %v5243_v39 = vadd.f32 %v19028_v18, %v5173_v34  ;;  %10460 = vst.msk [vmem:[%s19058_s29 + $0x40] sm:$0xff] %vm10451_vm4, %v10427_v35  ;;  %v10281_v52 = vadd.f32 %v19028_v18, %v10217_v37 }
 0x425   : > { %v5308_v5 = vmax.f32 %v5244_v29, 0.0  ;;  %v5176_v6 = vmul.f32 %v13978_v38, %v19023_v13  ;;  %v4882_v46 = vpop.f32.mrb[25].mxu0  ;;  %v9932_v47 = vpop.f32.mrb[25].mxu1  ;;  %v10220_v53 = vmul.f32 %v14706_v40, %v19023_v13  ;;  %v10346_v56 = vmax.f32 %v10282_v23, 0.0 }
 0x426   : > { %v5175_v54 = vmul.f32 %v19023_v13, %v4882_v46  ;;  %v5307_v42 = vmax.f32 %v5243_v39, 0.0  ;;  %v10345_v58 = vmax.f32 %v10281_v52, 0.0  ;;  %v10219_v49 = vmul.f32 %v19023_v13, %v9932_v47 }
 0x427   : > { %v5360_v55 = vmax.f32 %v5306_v36, %v5308_v5  ;;  %v5246_v62 = vadd.f32 %v19028_v18, %v5176_v6  ;;  %v10398_v57 = vmax.f32 %v10344_v51, %v10346_v56  ;;  %v10284_v63 = vadd.f32 %v19028_v18, %v10220_v53 }
 0x428   : > { %v13981_v61 = vpop.f32.mrb[26].mxu0  ;;  %v14709_v48 = vpop.f32.mrb[26].mxu1  ;;  %v5359_v43 = vmax.f32 %v5305_v28, %v5307_v42  ;;  %v10397_v50 = vmax.f32 %v10343_v31, %v10345_v58  ;;  %v5245_v0 = vadd.f32 %v19028_v18, %v5175_v54  ;;  %v10283_v59 = vadd.f32 %v19028_v18, %v10219_v49 }
 0x429   : > { %v5178_v44 = vmul.f32 %v13981_v61, %v19023_v13  ;;  %v4892_v41 = vpop.f32.mrb[27].mxu0  ;;  %v9942_v45 = vpop.f32.mrb[27].mxu1  ;;  %v10430_v1 = vmax.f32 %v5360_v55, %v10398_v57  ;;  %v10222_v3 = vmul.f32 %v14709_v48, %v19023_v13  ;;  %v5310_v8 = vmax.f32 %v5246_v62, 0.0 }
 0x42a   : > { %v5177_v4 = vmul.f32 %v19023_v13, %v4892_v41  ;;  %v10429_v7 = vmax.f32 %v5359_v43, %v10397_v50  ;;  %v10221_v60 = vmul.f32 %v19023_v13, %v9942_v45  ;;  %v10348_v19 = vmax.f32 %v10284_v63, 0.0 }
 0x42b   : > { %v5248_v2 = vadd.f32 %v19028_v18, %v5178_v44  ;;  %10463 = vst.msk [vmem:[%s19058_s29 + $0x58] sm:$0xff] %vm10451_vm4, %v10430_v1  ;;  %v10286_v12 = vadd.f32 %v19028_v18, %v10222_v3  ;;  %v5309_v24 = vmax.f32 %v5245_v0, 0.0  ;;  %v10347_v30 = vmax.f32 %v10283_v59, 0.0 }
 0x42c   : > { %v13984_v9 = vpop.f32.mrb[28].mxu0  ;;  %v14712_v10 = vpop.f32.mrb[28].mxu1  ;;  %v5247_v14 = vadd.f32 %v19028_v18, %v5177_v4  ;;  %10462 = vst.msk [vmem:[%s19058_s29 + $0x50] sm:$0xff] %vm10451_vm4, %v10429_v7  ;;  %v10285_v20 = vadd.f32 %v19028_v18, %v10221_v60 }
 0x42d   : > { %v5312_v11 = vmax.f32 %v5248_v2, 0.0  ;;  %v5180_v15 = vmul.f32 %v13984_v9, %v19023_v13  ;;  %v4902_v16 = vpop.f32.mrb[29].mxu0  ;;  %v9952_v17 = vpop.f32.mrb[29].mxu1  ;;  %v10224_v21 = vmul.f32 %v14712_v10, %v19023_v13  ;;  %v10350_v26 = vmax.f32 %v10286_v12, 0.0 }
 0x42e   : > { %v5179_v22 = vmul.f32 %v19023_v13, %v4902_v16  ;;  %v5311_v27 = vmax.f32 %v5247_v14, 0.0  ;;  %v10349_v29 = vmax.f32 %v10285_v20, 0.0  ;;  %v10223_v34 = vmul.f32 %v19023_v13, %v9952_v17 }
 0x42f   : > { %v5362_v25 = vmax.f32 %v5310_v8, %v5312_v11  ;;  %v5250_v33 = vadd.f32 %v19028_v18, %v5180_v15  ;;  %v10400_v32 = vmax.f32 %v10348_v19, %v10350_v26  ;;  %v10288_v39 = vadd.f32 %v19028_v18, %v10224_v21 }
 0x430   : > { %v13987_v35 = vpop.f32.mrb[30].mxu0  ;;  %v14715_v36 = vpop.f32.mrb[30].mxu1  ;;  %v5361_v37 = vmax.f32 %v5309_v24, %v5311_v27  ;;  %v10399_v23 = vmax.f32 %v10347_v30, %v10349_v29  ;;  %v5249_v6 = vadd.f32 %v19028_v18, %v5179_v22  ;;  %v10287_v28 = vadd.f32 %v19028_v18, %v10223_v34 }
 0x431   : > { %v5182_v38 = vmul.f32 %v13987_v35, %v19023_v13  ;;  %v4912_v40 = vpop.f32.mrb[31].mxu0  ;;  %v9962_v5 = vpop.f32.mrb[31].mxu1  ;;  %v10432_v46 = vmax.f32 %v5362_v25, %v10400_v32  ;;  %v10226_v51 = vmul.f32 %v14715_v36, %v19023_v13  ;;  %v5314_v54 = vmax.f32 %v5250_v33, 0.0 }
 0x432   : > { %v5181_v52 = vmul.f32 %v19023_v13, %v4912_v40  ;;  %v10431_v53 = vmax.f32 %v5361_v37, %v10399_v23  ;;  %v10225_v55 = vmul.f32 %v19023_v13, %v9962_v5  ;;  %v10352_v57 = vmax.f32 %v10288_v39, 0.0 }
 0x433   : > { %v5252_v47 = vadd.f32 %v19028_v18, %v5182_v38  ;;  %10465 = vst.msk [vmem:[%s19058_s29 + $0x68] sm:$0xff] %vm10451_vm4, %v10432_v46  ;;  %v10290_v58 = vadd.f32 %v19028_v18, %v10226_v51  ;;  %v5313_v45 = vmax.f32 %v5249_v6, 0.0  ;;  %v10351_v1 = vmax.f32 %v10287_v28, 0.0 }
 0x434   : > { %v13990_v56 = vpop.f32.mrb[32].mxu0  ;;  %v14718_v42 = vpop.f32.mrb[32].mxu1  ;;  %v5251_v62 = vadd.f32 %v19028_v18, %v5181_v52  ;;  %10464 = vst.msk [vmem:[%s19058_s29 + $0x60] sm:$0xff] %vm10451_vm4, %v10431_v53  ;;  %v10289_v43 = vadd.f32 %v19028_v18, %v10225_v55 }
 0x435   : > { %v5316_v31 = vmax.f32 %v5252_v47, 0.0  ;;  %v5184_v49 = vmul.f32 %v13990_v56, %v19023_v13  ;;  %v4922_v61 = vpop.f32.mrb[33].mxu0  ;;  %v9972_v48 = vpop.f32.mrb[33].mxu1  ;;  %v10228_v44 = vmul.f32 %v14718_v42, %v19023_v13  ;;  %v10354_v63 = vmax.f32 %v10290_v58, 0.0 }
 0x436   : > { %v5183_v41 = vmul.f32 %v19023_v13, %v4922_v61  ;;  %v5315_v0 = vmax.f32 %v5251_v62, 0.0  ;;  %v10353_v2 = vmax.f32 %v10289_v43, 0.0  ;;  %v10227_v4 = vmul.f32 %v19023_v13, %v9972_v48 }
 0x437   : > { %v5364_v50 = vmax.f32 %v5314_v54, %v5316_v31  ;;  %v5254_v3 = vadd.f32 %v19028_v18, %v5184_v49  ;;  %v10402_v59 = vmax.f32 %v10352_v57, %v10354_v63  ;;  %v10292_v14 = vadd.f32 %v19028_v18, %v10228_v44 }
 0x438   : > { %v13993_v7 = vpop.f32.mrb[34].mxu0  ;;  %v14721_v8 = vpop.f32.mrb[34].mxu1  ;;  %v5363_v60 = vmax.f32 %v5313_v45, %v5315_v0  ;;  %v10401_v12 = vmax.f32 %v10351_v1, %v10353_v2  ;;  %v5253_v15 = vadd.f32 %v19028_v18, %v5183_v41  ;;  %v10291_v24 = vadd.f32 %v19028_v18, %v10227_v4 }
 0x439   : > { %v5186_v9 = vmul.f32 %v13993_v7, %v19023_v13  ;;  %v4932_v10 = vpop.f32.mrb[35].mxu0  ;;  %v9982_v11 = vpop.f32.mrb[35].mxu1  ;;  %v10434_v16 = vmax.f32 %v5364_v50, %v10402_v59  ;;  %v10230_v19 = vmul.f32 %v14721_v8, %v19023_v13  ;;  %v5318_v22 = vmax.f32 %v5254_v3, 0.0 }
 0x43a   : > { %v5185_v20 = vmul.f32 %v19023_v13, %v4932_v10  ;;  %v10433_v21 = vmax.f32 %v5363_v60, %v10401_v12  ;;  %v10229_v25 = vmul.f32 %v19023_v13, %v9982_v11  ;;  %v10356_v32 = vmax.f32 %v10292_v14, 0.0 }
 0x43b   : > { %v5256_v17 = vadd.f32 %v19028_v18, %v5186_v9  ;;  %10467 = vst.msk [vmem:[%s19058_s29 + $0x78] sm:$0xff] %vm10451_vm4, %v10434_v16  ;;  %v10294_v29 = vadd.f32 %v19028_v18, %v10230_v19  ;;  %v5317_v5 = vmax.f32 %v5253_v15, 0.0  ;;  %v10355_v46 = vmax.f32 %v10291_v24, 0.0 }
 0x43c   : > { %v13996_v26 = vpop.f32.mrb[36].mxu0  ;;  %v14724_v27 = vpop.f32.mrb[36].mxu1  ;;  %v5255_v33 = vadd.f32 %v19028_v18, %v5185_v20  ;;  %10466 = vst.msk [vmem:[%s19058_s29 + $0x70] sm:$0xff] %vm10451_vm4, %v10433_v21  ;;  %v10293_v37 = vadd.f32 %v19028_v18, %v10229_v25 }
 0x43d   : > { %v5320_v30 = vmax.f32 %v5256_v17, 0.0  ;;  %v5188_v34 = vmul.f32 %v13996_v26, %v19023_v13  ;;  %v4942_v35 = vpop.f32.mrb[37].mxu0  ;;  %v9992_v36 = vpop.f32.mrb[37].mxu1  ;;  %v10232_v38 = vmul.f32 %v14724_v27, %v19023_v13  ;;  %v10358_v39 = vmax.f32 %v10294_v29, 0.0 }
 0x43e   : > { %v5187_v40 = vmul.f32 %v19023_v13, %v4942_v35  ;;  %v5319_v6 = vmax.f32 %v5255_v33, 0.0  ;;  %v10357_v47 = vmax.f32 %v10293_v37, 0.0  ;;  %v10231_v52 = vmul.f32 %v19023_v13, %v9992_v36 }
 0x43f   : > { %v5366_v23 = vmax.f32 %v5318_v22, %v5320_v30  ;;  %v5258_v51 = vadd.f32 %v19028_v18, %v5188_v34  ;;  %v10404_v28 = vmax.f32 %v10356_v32, %v10358_v39  ;;  %v10296_v62 = vadd.f32 %v19028_v18, %v10232_v38 }
 0x440   : > { %v13999_v53 = vpop.f32.mrb[38].mxu0  ;;  %v14727_v54 = vpop.f32.mrb[38].mxu1  ;;  %v5365_v55 = vmax.f32 %v5317_v5, %v5319_v6  ;;  %v10403_v58 = vmax.f32 %v10355_v46, %v10357_v47  ;;  %v5257_v49 = vadd.f32 %v19028_v18, %v5187_v40  ;;  %v10295_v45 = vadd.f32 %v19028_v18, %v10231_v52 }
 0x441   : > { %v5190_v56 = vmul.f32 %v13999_v53, %v19023_v13  ;;  %v4952_v42 = vpop.f32.mrb[39].mxu0  ;;  %v10002_v31 = vpop.f32.mrb[39].mxu1  ;;  %v10436_v61 = vmax.f32 %v5366_v23, %v10404_v28  ;;  %v10234_v57 = vmul.f32 %v14727_v54, %v19023_v13  ;;  %v5322_v41 = vmax.f32 %v5258_v51, 0.0 }
 0x442   : > { %v5189_v43 = vmul.f32 %v19023_v13, %v4952_v42  ;;  %v10435_v44 = vmax.f32 %v5365_v55, %v10403_v58  ;;  %v10233_v50 = vmul.f32 %v19023_v13, %v10002_v31  ;;  %v10360_v59 = vmax.f32 %v10296_v62, 0.0 }
 0x443   : > { %v5260_v48 = vadd.f32 %v19028_v18, %v5190_v56  ;;  %10469 = vst.msk [vmem:[%s19058_s29 + $0x88] sm:$0xff] %vm10451_vm4, %v10436_v61  ;;  %v10298_v2 = vadd.f32 %v19028_v18, %v10234_v57  ;;  %v5321_v11 = vmax.f32 %v5257_v49, 0.0  ;;  %v10359_v16 = vmax.f32 %v10295_v45, 0.0 }
 0x444   : > { %v14002_v63 = vpop.f32.mrb[40].mxu0  ;;  %v14730_v0 = vpop.f32.mrb[40].mxu1  ;;  %v5259_v3 = vadd.f32 %v19028_v18, %v5189_v43  ;;  %10468 = vst.msk [vmem:[%s19058_s29 + $0x80] sm:$0xff] %vm10451_vm4, %v10435_v44  ;;  %v10297_v60 = vadd.f32 %v19028_v18, %v10233_v50 }
 0x445   : > { %v5324_v1 = vmax.f32 %v5260_v48, 0.0  ;;  %v5192_v4 = vmul.f32 %v14002_v63, %v19023_v13  ;;  %v4962_v7 = vpop.f32.mrb[41].mxu0  ;;  %v10012_v8 = vpop.f32.mrb[41].mxu1  ;;  %v10236_v9 = vmul.f32 %v14730_v0, %v19023_v13  ;;  %v10362_v14 = vmax.f32 %v10298_v2, 0.0 }
 0x446   : > { %v5191_v10 = vmul.f32 %v19023_v13, %v4962_v7  ;;  %v5323_v15 = vmax.f32 %v5259_v3, 0.0  ;;  %v10361_v17 = vmax.f32 %v10297_v60, 0.0  ;;  %v10235_v20 = vmul.f32 %v19023_v13, %v10012_v8 }
 0x447   : > { %v5368_v12 = vmax.f32 %v5322_v41, %v5324_v1  ;;  %v5262_v19 = vadd.f32 %v19028_v18, %v5192_v4  ;;  %v10406_v24 = vmax.f32 %v10360_v59, %v10362_v14  ;;  %v10300_v33 = vadd.f32 %v19028_v18, %v10236_v9 }
 0x448   : > { %v14005_v21 = vpop.f32.mrb[42].mxu0  ;;  %v14733_v22 = vpop.f32.mrb[42].mxu1  ;;  %v5367_v25 = vmax.f32 %v5321_v11, %v5323_v15  ;;  %v10405_v29 = vmax.f32 %v10359_v16, %v10361_v17  ;;  %v5261_v34 = vadd.f32 %v19028_v18, %v5191_v10  ;;  %v10299_v5 = vadd.f32 %v19028_v18, %v10235_v20 }
 0x449   : > { %v5194_v26 = vmul.f32 %v14005_v21, %v19023_v13  ;;  %v4972_v27 = vpop.f32.mrb[43].mxu0  ;;  %v10022_v30 = vpop.f32.mrb[43].mxu1  ;;  %v10438_v35 = vmax.f32 %v5368_v12, %v10406_v24  ;;  %v10238_v32 = vmul.f32 %v14733_v22, %v19023_v13  ;;  %v5326_v40 = vmax.f32 %v5262_v19, 0.0 }
 0x44a   : > { %v5193_v37 = vmul.f32 %v19023_v13, %v4972_v27  ;;  %v10437_v38 = vmax.f32 %v5367_v25, %v10405_v29  ;;  %v10237_v23 = vmul.f32 %v19023_v13, %v10022_v30  ;;  %v10364_v28 = vmax.f32 %v10300_v33, 0.0 }
 0x44b   : > { %v5264_v36 = vadd.f32 %v19028_v18, %v5194_v26  ;;  %10471 = vst.msk [vmem:[%s19058_s29 + $0x98] sm:$0xff] %vm10451_vm4, %v10438_v35  ;;  %v10302_v47 = vadd.f32 %v19028_v18, %v10238_v32  ;;  %v5325_v31 = vmax.f32 %v5261_v34, 0.0  ;;  %v10363_v61 = vmax.f32 %v10299_v5, 0.0 }
 0x44c   : > { %v14008_v39 = vpop.f32.mrb[44].mxu0  ;;  %v14736_v6 = vpop.f32.mrb[44].mxu1  ;;  %v5263_v51 = vadd.f32 %v19028_v18, %v5193_v37  ;;  %10470 = vst.msk [vmem:[%s19058_s29 + $0x90] sm:$0xff] %vm10451_vm4, %v10437_v38  ;;  %v10301_v55 = vadd.f32 %v19028_v18, %v10237_v23 }
 0x44d   : > { %v5328_v46 = vmax.f32 %v5264_v36, 0.0  ;;  %v5196_v52 = vmul.f32 %v14008_v39, %v19023_v13  ;;  %v4982_v53 = vpop.f32.mrb[45].mxu0  ;;  %v10032_v54 = vpop.f32.mrb[45].mxu1  ;;  %v10240_v56 = vmul.f32 %v14736_v6, %v19023_v13  ;;  %v10366_v62 = vmax.f32 %v10302_v47, 0.0 }
 0x44e   : > { %v5195_v42 = vmul.f32 %v19023_v13, %v4982_v53  ;;  %v5327_v49 = vmax.f32 %v5263_v51, 0.0  ;;  %v10365_v48 = vmax.f32 %v10301_v55, 0.0  ;;  %v10239_v43 = vmul.f32 %v19023_v13, %v10032_v54 }
 0x44f   : > { %v5370_v58 = vmax.f32 %v5326_v40, %v5328_v46  ;;  %v5266_v57 = vadd.f32 %v19028_v18, %v5196_v52  ;;  %v10408_v45 = vmax.f32 %v10364_v28, %v10366_v62  ;;  %v10304_v3 = vadd.f32 %v19028_v18, %v10240_v56 }
 0x450   : > { %v14011_v44 = vpop.f32.mrb[46].mxu0  ;;  %v14739_v41 = vpop.f32.mrb[46].mxu1  ;;  %v5369_v50 = vmax.f32 %v5325_v31, %v5327_v49  ;;  %v10407_v2 = vmax.f32 %v10363_v61, %v10365_v48  ;;  %v5265_v4 = vadd.f32 %v19028_v18, %v5195_v42  ;;  %v10303_v11 = vadd.f32 %v19028_v18, %v10239_v43  ;;  %v19291_v43 = vld [vmem:[%s19425_s3] ss:$0 sm:$0xff] }
 0x451   : > { %v5198_v63 = vmul.f32 %v14011_v44, %v19023_v13  ;;  %v4992_v0 = vpop.f32.mrb[47].mxu0  ;;  %v10042_v1 = vpop.f32.mrb[47].mxu1  ;;  %v10440_v7 = vmax.f32 %v5370_v58, %v10408_v45  ;;  %v10242_v59 = vmul.f32 %v14739_v41, %v19023_v13  ;;  %v5330_v10 = vmax.f32 %v5266_v57, 0.0 }
 0x452   : > { %v5197_v60 = vmul.f32 %v19023_v13, %v4992_v0  ;;  %v10439_v9 = vmax.f32 %v5369_v50, %v10407_v2  ;;  %v10241_v12 = vmul.f32 %v19023_v13, %v10042_v1  ;;  %v10368_v24 = vmax.f32 %v10304_v3, 0.0  ;;  %v19299_v50 = vld [vmem:[%s19426_s4] ss:$0 sm:$0xff] }
 0x453   : > { %v5268_v8 = vadd.f32 %v19028_v18, %v5198_v63  ;;  %10473 = vst.msk [vmem:[%s19058_s29 + $0xa8] sm:$0xff] %vm10451_vm4, %v10440_v7  ;;  %v10306_v17 = vadd.f32 %v19028_v18, %v10242_v59  ;;  %v5329_v30 = vmax.f32 %v5265_v4, 0.0  ;;  %v10367_v35 = vmax.f32 %v10303_v11, 0.0 }
 0x454   : > { %v14014_v14 = vpop.f32.mrb[48].mxu0  ;;  %v14742_v15 = vpop.f32.mrb[48].mxu1  ;;  %v5267_v19 = vadd.f32 %v19028_v18, %v5197_v60  ;;  %10472 = vst.msk [vmem:[%s19058_s29 + $0xa0] sm:$0xff] %vm10451_vm4, %v10439_v9  ;;  %v10305_v25 = vadd.f32 %v19028_v18, %v10241_v12 }
 0x455   : > { %v5332_v16 = vmax.f32 %v5268_v8, 0.0  ;;  %v5200_v20 = vmul.f32 %v14014_v14, %v19023_v13  ;;  %v5002_v21 = vpop.f32.mrb[49].mxu0  ;;  %v10052_v22 = vpop.f32.mrb[49].mxu1  ;;  %v10244_v26 = vmul.f32 %v14742_v15, %v19023_v13  ;;  %v10370_v33 = vmax.f32 %v10306_v17, 0.0 }
 0x456   : > { %v5199_v27 = vmul.f32 %v19023_v13, %v5002_v21  ;;  %v5331_v34 = vmax.f32 %v5267_v19, 0.0  ;;  %v10369_v36 = vmax.f32 %v10305_v25, 0.0  ;;  %v10243_v37 = vmul.f32 %v19023_v13, %v10052_v22 }
 0x457   : > { %v5372_v29 = vmax.f32 %v5330_v10, %v5332_v16  ;;  %v5270_v32 = vadd.f32 %v19028_v18, %v5200_v20  ;;  %v10410_v5 = vmax.f32 %v10368_v24, %v10370_v33  ;;  %v10308_v51 = vadd.f32 %v19028_v18, %v10244_v26 }
 0x458   : > { %v14017_v38 = vpop.f32.mrb[50].mxu0  ;;  %v14745_v40 = vpop.f32.mrb[50].mxu1  ;;  %v5371_v23 = vmax.f32 %v5329_v30, %v5331_v34  ;;  %v10409_v47 = vmax.f32 %v10367_v35, %v10369_v36  ;;  %v5269_v52 = vadd.f32 %v19028_v18, %v5199_v27  ;;  %v10307_v31 = vadd.f32 %v19028_v18, %v10243_v37 }
 0x459   : > { %v5202_v39 = vmul.f32 %v14017_v38, %v19023_v13  ;;  %v5012_v6 = vpop.f32.mrb[51].mxu0  ;;  %v10062_v46 = vpop.f32.mrb[51].mxu1  ;;  %v10442_v53 = vmax.f32 %v5372_v29, %v10410_v5  ;;  %v10246_v28 = vmul.f32 %v14745_v40, %v19023_v13  ;;  %v5334_v42 = vmax.f32 %v5270_v32, 0.0 }
 0x45a   : > { %v5201_v55 = vmul.f32 %v19023_v13, %v5012_v6  ;;  %v10441_v56 = vmax.f32 %v5371_v23, %v10409_v47  ;;  %v10245_v58 = vmul.f32 %v19023_v13, %v10062_v46  ;;  %v10372_v13 = vmax.f32 %v10308_v51, 0.0 }
 0x45b   : > { %v5272_v54 = vadd.f32 %v19028_v18, %v5202_v39  ;;  %10475 = vst.msk [vmem:[%s19058_s29 + $0xb8] sm:$0xff] %vm10451_vm4, %v10442_v53  ;;  %v10310_v48 = vadd.f32 %v19028_v18, %v10246_v28  ;;  %v5333_v1 = vmax.f32 %v5269_v52, 0.0  ;;  %v10371_v7 = vmax.f32 %v10307_v31, 0.0 }
 0x45c   : > { %v14020_v62 = vpop.f32.mrb[52].mxu0  ;;  %v14748_v49 = vpop.f32.mrb[52].mxu1  ;;  %v5271_v57 = vadd.f32 %v19028_v18, %v5201_v55  ;;  %10474 = vst.msk [vmem:[%s19058_s29 + $0xb0] sm:$0xff] %vm10451_vm4, %v10441_v56  ;;  %v10309_v63 = vadd.f32 %v19299_v50, %v10245_v58 }
 0x45d   : > { %v5336_v61 = vmax.f32 %v5272_v54, 0.0  ;;  %v5204_v44 = vmul.f32 %v19291_v43, %v14020_v62  ;;  %v5022_v41 = vpop.f32.mrb[53].mxu0  ;;  %v10072_v45 = vpop.f32.mrb[53].mxu1  ;;  %v10248_v18 = vmul.f32 %v19291_v43, %v14748_v49  ;;  %v10374_v3 = vmax.f32 %v10310_v48, 0.0 }
 0x45e   : > { %v5203_v0 = vmul.f32 %v19291_v43, %v5022_v41  ;;  %v5335_v4 = vmax.f32 %v5271_v57, 0.0  ;;  %v10373_v8 = vmax.f32 %v10309_v63, 0.0  ;;  %v10247_v60 = vmul.f32 %v19291_v43, %v10072_v45 }
 0x45f   : > { %v5374_v2 = vmax.f32 %v5334_v42, %v5336_v61  ;;  %v5274_v59 = vadd.f32 %v19299_v50, %v5204_v44  ;;  %v10412_v11 = vmax.f32 %v10372_v13, %v10374_v3  ;;  %v10312_v19 = vadd.f32 %v19299_v50, %v10248_v18 }
 0x460   : > { %v14023_v9 = vpop.f32.mrb[54].mxu0  ;;  %v14751_v10 = vpop.f32.mrb[54].mxu1  ;;  %v5373_v12 = vmax.f32 %v5333_v1, %v5335_v4  ;;  %v10411_v17 = vmax.f32 %v10371_v7, %v10373_v8  ;;  %v5273_v20 = vadd.f32 %v19299_v50, %v5203_v0  ;;  %v10311_v30 = vadd.f32 %v19299_v50, %v10247_v60 }
 0x461   : > { %v5206_v14 = vmul.f32 %v19291_v43, %v14023_v9  ;;  %v5032_v15 = vpop.f32.mrb[55].mxu0  ;;  %v10082_v16 = vpop.f32.mrb[55].mxu1  ;;  %v10444_v21 = vmax.f32 %v5374_v2, %v10412_v11  ;;  %v10250_v24 = vmul.f32 %v19291_v43, %v14751_v10  ;;  %v5338_v27 = vmax.f32 %v5274_v59, 0.0 }
 0x462   : > { %v5205_v25 = vmul.f32 %v19291_v43, %v5032_v15  ;;  %v10443_v26 = vmax.f32 %v5373_v12, %v10411_v17  ;;  %v10249_v29 = vmul.f32 %v19291_v43, %v10082_v16  ;;  %v10376_v5 = vmax.f32 %v10312_v19, 0.0 }
 0x463   : > { %v5276_v22 = vadd.f32 %v19299_v50, %v5206_v14  ;;  %10477 = vst.msk [vmem:[%s19058_s29 + $0xc8] sm:$0xff] %vm10451_vm4, %v10444_v21  ;;  %v10314_v36 = vadd.f32 %v19299_v50, %v10250_v24  ;;  %v5337_v46 = vmax.f32 %v5273_v20, 0.0  ;;  %v10375_v53 = vmax.f32 %v10311_v30, 0.0 }
 0x464   : > { %v14026_v33 = vpop.f32.mrb[56].mxu0  ;;  %v14754_v34 = vpop.f32.mrb[56].mxu1  ;;  %v5275_v32 = vadd.f32 %v19299_v50, %v5205_v25  ;;  %10476 = vst.msk [vmem:[%s19058_s29 + $0xc0] sm:$0xff] %vm10451_vm4, %v10443_v26  ;;  %v10313_v23 = vadd.f32 %v19299_v50, %v10249_v29 }
 0x465   : > { %v5340_v35 = vmax.f32 %v5276_v22, 0.0  ;;  %v5208_v37 = vmul.f32 %v19291_v43, %v14026_v33  ;;  %v5042_v38 = vpop.f32.mrb[57].mxu0  ;;  %v10092_v40 = vpop.f32.mrb[57].mxu1  ;;  %v10252_v39 = vmul.f32 %v19291_v43, %v14754_v34  ;;  %v10378_v51 = vmax.f32 %v10314_v36, 0.0 }
 0x466   : > { %v5207_v6 = vmul.f32 %v19291_v43, %v5042_v38  ;;  %v5339_v52 = vmax.f32 %v5275_v32, 0.0  ;;  %v10377_v54 = vmax.f32 %v10313_v23, 0.0  ;;  %v10251_v55 = vmul.f32 %v19291_v43, %v10092_v40 }
 0x467   : > { %v5376_v47 = vmax.f32 %v5338_v27, %v5340_v35  ;;  %v5278_v28 = vadd.f32 %v19299_v50, %v5208_v37  ;;  %v10414_v31 = vmax.f32 %v10376_v5, %v10378_v51  ;;  %v10316_v57 = vadd.f32 %v19299_v50, %v10252_v39 }
 0x468   : > { %v14029_v56 = vpop.f32.mrb[58].mxu0  ;;  %v14757_v42 = vpop.f32.mrb[58].mxu1  ;;  %v5375_v58 = vmax.f32 %v5337_v46, %v5339_v52  ;;  %v10413_v48 = vmax.f32 %v10375_v53, %v10377_v54  ;;  %v5277_v44 = vadd.f32 %v19299_v50, %v5207_v6  ;;  %v10315_v1 = vadd.f32 %v19299_v50, %v10251_v55 }
 0x469   : > { %v5210_v62 = vmul.f32 %v19291_v43, %v14029_v56  ;;  %v5052_v49 = vpop.f32.mrb[59].mxu0  ;;  %v10102_v61 = vpop.f32.mrb[59].mxu1  ;;  %v10446_v41 = vmax.f32 %v5376_v47, %v10414_v31  ;;  %v10254_v13 = vmul.f32 %v19291_v43, %v14757_v42  ;;  %v5342_v0 = vmax.f32 %v5278_v28, 0.0 }
 0x46a   : > { %v5209_v63 = vmul.f32 %v19291_v43, %v5052_v49  ;;  %v10445_v18 = vmax.f32 %v5375_v58, %v10413_v48  ;;  %v10253_v2 = vmul.f32 %v19291_v43, %v10102_v61  ;;  %v10380_v11 = vmax.f32 %v10316_v57, 0.0 }
 0x46b   : > { %v5280_v45 = vadd.f32 %v19299_v50, %v5210_v62  ;;  %10479 = vst.msk [vmem:[%s19058_s29 + $0xd8] sm:$0xff] %vm10451_vm4, %v10446_v41  ;;  %v10318_v8 = vadd.f32 %v19299_v50, %v10254_v13  ;;  %v5341_v16 = vmax.f32 %v5277_v44, 0.0  ;;  %v10379_v21 = vmax.f32 %v10315_v1, 0.0 }
 0x46c   : > { %v14032_v3 = vpop.f32.mrb[60].mxu0  ;;  %v14760_v4 = vpop.f32.mrb[60].mxu1  ;;  %v5279_v59 = vadd.f32 %v19299_v50, %v5209_v63  ;;  %10478 = vst.msk [vmem:[%s19058_s29 + $0xd0] sm:$0xff] %vm10451_vm4, %v10445_v18  ;;  %v10317_v12 = vadd.f32 %v19299_v50, %v10253_v2 }
 0x46d   : > { %v5344_v7 = vmax.f32 %v5280_v45, 0.0  ;;  %v5212_v60 = vmul.f32 %v19291_v43, %v14032_v3  ;;  %v5062_v9 = vpop.f32.mrb[61].mxu0  ;;  %v10112_v10 = vpop.f32.mrb[61].mxu1  ;;  %v10256_v14 = vmul.f32 %v19291_v43, %v14760_v4  ;;  %v10382_v19 = vmax.f32 %v10318_v8, 0.0 }
 0x46e   : > { %v5211_v15 = vmul.f32 %v19291_v43, %v5062_v9  ;;  %v5343_v20 = vmax.f32 %v5279_v59, 0.0  ;;  %v10381_v22 = vmax.f32 %v10317_v12, 0.0  ;;  %v10255_v24 = vmul.f32 %v19291_v43, %v10112_v10 }
 0x46f   : > { %v5378_v17 = vmax.f32 %v5342_v0, %v5344_v7  ;;  %v10416_v27 = vmax.f32 %v10380_v11, %v10382_v19  ;;  %v5282_v29 = vadd.f32 %v19299_v50, %v5212_v60  ;;  %v10320_v32 = vadd.f32 %v19299_v50, %v10256_v14 }
 0x470   : > { %v14035_v25 = vpop.f32.mrb[62].mxu0  ;;  %v14763_v26 = vpop.f32.mrb[62].mxu1  ;;  %v5377_v30 = vmax.f32 %v5341_v16, %v5343_v20  ;;  %v10415_v36 = vmax.f32 %v10379_v21, %v10381_v22  ;;  %v5281_v37 = vadd.f32 %v19299_v50, %v5211_v15  ;;  %v10319_v6 = vadd.f32 %v19299_v50, %v10255_v24 }
 0x471   : > { %v5214_v33 = vmul.f32 %v19291_v43, %v14035_v25  ;;  %v5072_v34 = vpop.f32.mrb[63].mxu0  ;;  %v10122_v35 = vpop.f32.mrb[63].mxu1  ;;  %v10448_v38 = vmax.f32 %v5378_v17, %v10416_v27  ;;  %v10258_v5 = vmul.f32 %v19291_v43, %v14763_v26  ;;  %v5346_v47 = vmax.f32 %v5282_v29, 0.0 }
 0x472   : > { %v5213_v23 = vmul.f32 %v19291_v43, %v5072_v34  ;;  %v10447_v39 = vmax.f32 %v5377_v30, %v10415_v36  ;;  %v10257_v46 = vmul.f32 %v19291_v43, %v10122_v35  ;;  %v10384_v54 = vmax.f32 %v10320_v32, 0.0 }
 0x473   : > { %v5284_v40 = vadd.f32 %v19299_v50, %v5214_v33  ;;  %10481 = vst.msk [vmem:[%s19058_s29 + $0xe8] sm:$0xff] %vm10451_vm4, %v10448_v38  ;;  %v10322_v52 = vadd.f32 %v19299_v50, %v10258_v5  ;;  %v5345_v55 = vmax.f32 %v5281_v37, 0.0  ;;  %v10383_v31 = vmax.f32 %v10319_v6, 0.0 }
 0x474   : > { %v5283_v53 = vadd.f32 %v19299_v50, %v5213_v23  ;;  %10480 = vst.msk [vmem:[%s19058_s29 + $0xe0] sm:$0xff] %vm10451_vm4, %v10447_v39  ;;  %v10321_v28 = vadd.f32 %v19299_v50, %v10257_v46 }
 0x475   : > { %v5348_v51 = vmax.f32 %v5284_v40, 0.0  ;;  %v10386_v43 = vmax.f32 %v10322_v52, 0.0 }
 0x476   : > { %v5347_v42 = vmax.f32 %v5283_v53, 0.0  ;;  %v10385_v58 = vmax.f32 %v10321_v28, 0.0 }
 0x477   : > { %v5380_v56 = vmax.f32 %v5346_v47, %v5348_v51  ;;  %v10418_v62 = vmax.f32 %v10384_v54, %v10386_v43 }
 0x478   : > { %v5379_v49 = vmax.f32 %v5345_v55, %v5347_v42  ;;  %v10417_v61 = vmax.f32 %v10383_v31, %v10385_v58 }
 0x479   : > { %v10450_v48 = vmax.f32 %v5380_v56, %v10418_v62 }
 0x47a   : > { %v10449_v50 = vmax.f32 %v5379_v49, %v10417_v61 }
 0x47b   : > { %10483 = vst.msk [vmem:[%s19058_s29 + $0xf8] sm:$0xff] %vm10451_vm4, %v10450_v48 }
 0x47c   : > { %10482 = vst.msk [vmem:[%s19058_s29 + $0xf0] sm:$0xff] %vm10451_vm4, %v10449_v50 }
 0x47d   : > { %15746 = shalt.err (!%p15743_p5)
}
 0x47e   : > { %s15747_s8 = scalar_lea.hbm %s19366_s17, 4096  ;;  %s15751_s9 = scalar_lea.hbm %s19427_s5, 8192 }
 0x47f   : > { %p15748_p6 = scmp.ne.s32.totalorder %s19366_s17, %s15747_s8  ;;  %p15752_p10 = scmp.lt.u32.totalorder %s19366_s17, %s19427_s5 }
 0x480   : > { %p15753_p11 = scmp.lt.u32.totalorder %s15751_s9, %s15747_s8  ;;  %p15755_p13 = scmp.lt.u32.totalorder %s15747_s8, %s19366_s17 }
 0x481   : > { %p15749_p7 = pnand %p15748_p6, %p15887_p4 }
 0x482   : > { %p15754_p12 = por %p15753_p11, %p15752_p10 }
 0x483   : > { %p15750_p9 = pneg %p15749_p7 }
 0x484   : > { %p15756_p0 = por %p15755_p13, %p15754_p12 }
 0x486   : > { %p15757_p1 = pnand %p15756_p0, %p15750_p9 }
 0x488   : > { %15760 = shalt.err (!%p15757_p1)
}
 0x489   : > { %s15815_s13 = smov 128   ;;  %s15816_s15 = smov 8  }
 0x48a   : > { %15673 = dma.vmem_to_hbm [thread:$0]  (%p15887_p4), %s19368_s14, 4096, %s19366_s17, %s19376_s21, %s15815_s13, %s15815_s13, %s15816_s15  }
 0x48b PF: > { %p15679_p2 = scmp.ge.s32.totalorder %s15811_s23, 2  ;;  %s10516_s16 = sand.u32 1, %s15791_s18  }
 0x48c   : > { %s10517_s24 = scalar_lea.sflag [#allocation3], %s10516_s16 }
 0x48d   : > { %p15676_p3 = pnand %p15679_p2, %p15894_p8 }
 0x48f   : > { %15786 = dma.done.wait (!%p15676_p3), %s10517_s24, 4096  }
 0x490   : > { %15788 = vsyncadd (!%p15676_p3), %s10517_s24, 4294963200  ;;  %s18_s23 = sadd.s32 1, %s15811_s23   ;;  %s20103_s18 = smov %s15795_s19 }
 0x491   : > { %p15_p5 = scmp.ge.s32.totalorder %s18_s23, 4   ;;  %s20104_s19 = smov %s15799_s20 }
 0x492   : > { %s20105_s20 = smov %s15900_s6  ;;  %s20106_s21 = smov %s15807_s22 }
 0x493   : > { %s20107_s22 = smov %s20109_s26  ;;  %17 = sbr.rel (!%p15_p5) target bundleno = 4 (0x4), region = 98 }
 0x49a   :  { %10522 = vsyncpa [#allocation3], 1 }
 0x49b   :  { %10524 = vsyncpa [#allocation3 + $0x1], 1 }

</bundles_post_ra>
